<compile_context>
chip_gen: v7x
topology: tpu7x:2x2x1
jax: 0.10.0
libtpu: 0.0.40
codegen_flags: <defaults>
</compile_context>

<pallas_src>
import jax
import jax.numpy as jnp
from jax import lax
from jax.experimental import pallas as pl
from jax.experimental.pallas import tpu as pltpu

HIDDEN = 64
LANES = 128
N_ACC = 4            # independent partial accumulators (power of two)


def _round_up(x, m):
    return ((x + m - 1) // m) * m


def _default_compute_dtype():
    # bf16 VALU exists on v6e / v7x (2 elems packed per 32-bit lane, ~2x
    # elementwise throughput).  v5e and older have no bf16 VALU -> keep f32.
    try:
        kind = jax.devices()[0].device_kind.lower()
    except Exception:
        return jnp.float32
    if any(tok in kind for tok in ("v6", "v7", "7x", "trillium")):
        return jnp.bfloat16
    return jnp.float32


def _make_mlp_kernel(compute_dtype, chunk_rows):
    cdt = compute_dtype

    def kernel(x_ref, w1_ref, b1_ref, w2_ref, b2_ref, o_ref):
        # x_ref/o_ref: (block_rows, 128) f32 in VMEM, batch on lanes+sublanes.
        # w1/b1/w2: (64,) f32 in SMEM, b2: (1,) f32 in SMEM (scalar path).
        # Hoist all SMEM scalar reads + casts out of the row-chunk loop
        # (3*64 scalar loads once per grid step).
        w1 = [w1_ref[j].astype(cdt) for j in range(HIDDEN)]
        b1 = [b1_ref[j].astype(cdt) for j in range(HIDDEN)]
        w2 = [w2_ref[j].astype(cdt) for j in range(HIDDEN)]
        b2 = b2_ref[0]                      # stays f32; folded into final sum
        zero = jnp.zeros((), cdt)

        n_chunks = x_ref.shape[0] // chunk_rows

        def chunk_body(c, carry):
            r0 = pl.multiple_of(c * chunk_rows, chunk_rows)
            x = x_ref[pl.ds(r0, chunk_rows), :].astype(cdt)

            # N_ACC independent partial accumulators over strided subsets of
            # the hidden units: breaks the serial 64-deep add chain so the 4
            # VALU ports see independent work.  Each accumulator starts from
            # its first term instead of a zero fill.
            accs = []
            for a in range(N_ACC):
                h = jnp.maximum(w1[a] * x + b1[a], zero)
                accs.append(w2[a] * h)
            for j in range(N_ACC, HIDDEN):
                a = j % N_ACC
                h = jnp.maximum(w1[j] * x + b1[j], zero)
                accs[a] = accs[a] + w2[j] * h

            # Pairwise-reduce the partials in f32; fold in b2 and the output
            # cast so there is no separate full-block epilogue pass.
            parts = [p.astype(jnp.float32) for p in accs]
            while len(parts) > 1:
                parts = [parts[i] + parts[i + 1] for i in range(0, len(parts), 2)]
            o_ref[pl.ds(r0, chunk_rows), :] = (parts[0] + b2).astype(o_ref.dtype)
            return carry

        lax.fori_loop(0, n_chunks, chunk_body, 0)

    return kernel


def mlp_forward(x, w1, b1, w2, b2, *, block_rows=1024, compute_dtype=None):
    """x: (B, 1). w1: (1,64), b1: (1,64), w2: (64,1), b2: (1,1). Returns (B, 1)."""
    B = x.shape[0]
    out_dtype = x.dtype
    if compute_dtype is None:
        compute_dtype = _default_compute_dtype()
    # Row-chunk size keeps ~4 vregs per live array (x + 4 accumulators + temps
    # ~= 28 vregs, well under the 64-vreg file): 64 rows bf16 / 32 rows f32.
    chunk_rows = 64 if compute_dtype == jnp.bfloat16 else 32

    # Lane-dense layout: flatten batch, pad, and view as (rows_padded, 128).
    rows = pl.cdiv(B, LANES)

    # Tile rows: a multiple of chunk_rows, capped by block_rows, and capped
    # near ceil(rows/2) so the grid has >=2 blocks whenever possible (v7x
    # megacore keeps both TensorCores busy).
    half = _round_up(-(-rows // 2), chunk_rows)
    br = min(block_rows, max(chunk_rows, half))
    br = min(br, _round_up(rows, chunk_rows))
    rows_padded = _round_up(rows, br)

    total = rows_padded * LANES
    xf = x.reshape(-1).astype(jnp.float32)
    xf = jnp.pad(xf, (0, total - B))        # zero-padded tail; discarded below
    x2d = xf.reshape(rows_padded, LANES)

    # Flatten parameters for SMEM residency (scalar-path reads in the kernel).
    w1f = w1.reshape(HIDDEN).astype(jnp.float32)
    b1f = b1.reshape(HIDDEN).astype(jnp.float32)
    w2f = w2.reshape(HIDDEN).astype(jnp.float32)
    b2f = b2.reshape(1).astype(jnp.float32)

    grid = (rows_padded // br,)
    y2d = pl.pallas_call(
        _make_mlp_kernel(compute_dtype, chunk_rows),
        out_shape=jax.ShapeDtypeStruct((rows_padded, LANES), jnp.float32),
        grid=grid,
        in_specs=[
            pl.BlockSpec((br, LANES), lambda i: (i, 0)),
            pl.BlockSpec(memory_space=pltpu.MemorySpace.SMEM),
            pl.BlockSpec(memory_space=pltpu.MemorySpace.SMEM),
            pl.BlockSpec(memory_space=pltpu.MemorySpace.SMEM),
            pl.BlockSpec(memory_space=pltpu.MemorySpace.SMEM),
        ],
        out_specs=pl.BlockSpec((br, LANES), lambda i: (i, 0)),
        compiler_params=pltpu.CompilerParams(
            dimension_semantics=("parallel",)),
    )(x2d, w1f, b1f, w2f, b2f)

    # Back to the PyTorch-style (B, 1) layout outside the kernel.  Padded tail
    # rows compute garbage (b2 + sum w2*relu(b1)) but are discarded here.
    return y2d.reshape(-1)[:B].reshape(B, 1).astype(out_dtype)


def init_params(key):
    # Deterministic init mimicking PyTorch nn.Linear (uniform +/- 1/sqrt(fan_in)).
    k1, k2, k3, k4 = jax.random.split(key, 4)
    bound1 = 1.0  # fan_in = 1
    w1 = jax.random.uniform(k1, (1, HIDDEN), jnp.float32, -bound1, bound1)
    b1 = jax.random.uniform(k2, (1, HIDDEN), jnp.float32, -bound1, bound1)
    bound2 = 1.0 / jnp.sqrt(float(HIDDEN))  # fan_in = 64
    w2 = jax.random.uniform(k3, (HIDDEN, 1), jnp.float32, -bound2, bound2)
    b2 = jax.random.uniform(k4, (1, 1), jnp.float32, -bound2, bound2)
    return w1, b1, w2, b2


def _reference(x, w1, b1, w2, b2):
    return jnp.maximum(x @ w1 + b1, 0.0) @ w2 + b2


if __name__ == "__main__":
    key = jax.random.PRNGKey(0)
    k_x, k_x2, k_x3, k_p = jax.random.split(key, 4)
    w1, b1, w2, b2 = init_params(k_p)

    cdt = _default_compute_dtype()
    tol = 1e-5 if cdt == jnp.float32 else 5e-2   # bf16 elementwise on v6e/v7x

    # Small batch of scalar inputs, matching Linear(1, ...) input convention.
    x = jax.random.normal(k_x, (8, 1), jnp.float32)
    out = jax.block_until_ready(mlp_forward(x, w1, b1, w2, b2))
    ref = _reference(x, w1, b1, w2, b2)
    assert out.shape == (8, 1)
    assert jnp.allclose(out, ref, atol=tol, rtol=tol)

    # Exercises the lane/row padding + tail-discard path.
    x2 = jax.random.normal(k_x2, (300, 1), jnp.float32)
    out2 = jax.block_until_ready(mlp_forward(x2, w1, b1, w2, b2))
    ref2 = _reference(x2, w1, b1, w2, b2)
    assert out2.shape == (300, 1)
    assert jnp.allclose(out2, ref2, atol=tol, rtol=tol)

    # Exercises multi-block grid (megacore path) and the inner chunk loop.
    x3 = jax.random.normal(k_x3, (5000, 1), jnp.float32)
    out3 = jax.block_until_ready(mlp_forward(x3, w1, b1, w2, b2))
    ref3 = _reference(x3, w1, b1, w2, b2)
    assert out3.shape == (5000, 1)
    assert jnp.allclose(out3, ref3, atol=tol, rtol=tol)

    print("KERNEL_OK")
</pallas_src>

<mosaic_0001>
module attributes {stable_mosaic.version = 11 : i64} {
  func.func @kernel(%arg0: i32, %arg1: memref<32x128xf32, #tpu.memory_space<vmem>>, %arg2: memref<64xf32, #tpu.memory_space<smem>>, %arg3: memref<64xf32, #tpu.memory_space<smem>>, %arg4: memref<64xf32, #tpu.memory_space<smem>>, %arg5: memref<1xf32, #tpu.memory_space<smem>>, %arg6: memref<32x128xf32, #tpu.memory_space<vmem>>) attributes {dimension_semantics = [#tpu.dimension_semantics<parallel>], iteration_bounds = array<i64: 1>, scalar_prefetch = 0 : i64, scratch_operands = 0 : i64, tpu.core_type = #tpu.core_type<tc>, window_params = [{transform_indices = @transform_0, window_bounds = array<i64: 32, 128>}, {transform_indices = @transform_1, window_bounds = array<i64: 64>}, {transform_indices = @transform_2, window_bounds = array<i64: 64>}, {transform_indices = @transform_3, window_bounds = array<i64: 64>}, {transform_indices = @transform_4, window_bounds = array<i64: 1>}, {transform_indices = @transform_5, window_bounds = array<i64: 32, 128>}]} {
    %c0 = arith.constant 0 : index
    %0 = memref.load %arg2[%c0] : memref<64xf32, #tpu.memory_space<smem>>
    %c1 = arith.constant 1 : index
    %1 = memref.load %arg2[%c1] : memref<64xf32, #tpu.memory_space<smem>>
    %c2 = arith.constant 2 : index
    %2 = memref.load %arg2[%c2] : memref<64xf32, #tpu.memory_space<smem>>
    %c3 = arith.constant 3 : index
    %3 = memref.load %arg2[%c3] : memref<64xf32, #tpu.memory_space<smem>>
    %c4 = arith.constant 4 : index
    %4 = memref.load %arg2[%c4] : memref<64xf32, #tpu.memory_space<smem>>
    %c5 = arith.constant 5 : index
    %5 = memref.load %arg2[%c5] : memref<64xf32, #tpu.memory_space<smem>>
    %c6 = arith.constant 6 : index
    %6 = memref.load %arg2[%c6] : memref<64xf32, #tpu.memory_space<smem>>
    %c7 = arith.constant 7 : index
    %7 = memref.load %arg2[%c7] : memref<64xf32, #tpu.memory_space<smem>>
    %c8 = arith.constant 8 : index
    %8 = memref.load %arg2[%c8] : memref<64xf32, #tpu.memory_space<smem>>
    %c9 = arith.constant 9 : index
    %9 = memref.load %arg2[%c9] : memref<64xf32, #tpu.memory_space<smem>>
    %c10 = arith.constant 10 : index
    %10 = memref.load %arg2[%c10] : memref<64xf32, #tpu.memory_space<smem>>
    %c11 = arith.constant 11 : index
    %11 = memref.load %arg2[%c11] : memref<64xf32, #tpu.memory_space<smem>>
    %c12 = arith.constant 12 : index
    %12 = memref.load %arg2[%c12] : memref<64xf32, #tpu.memory_space<smem>>
    %c13 = arith.constant 13 : index
    %13 = memref.load %arg2[%c13] : memref<64xf32, #tpu.memory_space<smem>>
    %c14 = arith.constant 14 : index
    %14 = memref.load %arg2[%c14] : memref<64xf32, #tpu.memory_space<smem>>
    %c15 = arith.constant 15 : index
    %15 = memref.load %arg2[%c15] : memref<64xf32, #tpu.memory_space<smem>>
    %c16 = arith.constant 16 : index
    %16 = memref.load %arg2[%c16] : memref<64xf32, #tpu.memory_space<smem>>
    %c17 = arith.constant 17 : index
    %17 = memref.load %arg2[%c17] : memref<64xf32, #tpu.memory_space<smem>>
    %c18 = arith.constant 18 : index
    %18 = memref.load %arg2[%c18] : memref<64xf32, #tpu.memory_space<smem>>
    %c19 = arith.constant 19 : index
    %19 = memref.load %arg2[%c19] : memref<64xf32, #tpu.memory_space<smem>>
    %c20 = arith.constant 20 : index
    %20 = memref.load %arg2[%c20] : memref<64xf32, #tpu.memory_space<smem>>
    %c21 = arith.constant 21 : index
    %21 = memref.load %arg2[%c21] : memref<64xf32, #tpu.memory_space<smem>>
    %c22 = arith.constant 22 : index
    %22 = memref.load %arg2[%c22] : memref<64xf32, #tpu.memory_space<smem>>
    %c23 = arith.constant 23 : index
    %23 = memref.load %arg2[%c23] : memref<64xf32, #tpu.memory_space<smem>>
    %c24 = arith.constant 24 : index
    %24 = memref.load %arg2[%c24] : memref<64xf32, #tpu.memory_space<smem>>
    %c25 = arith.constant 25 : index
    %25 = memref.load %arg2[%c25] : memref<64xf32, #tpu.memory_space<smem>>
    %c26 = arith.constant 26 : index
    %26 = memref.load %arg2[%c26] : memref<64xf32, #tpu.memory_space<smem>>
    %c27 = arith.constant 27 : index
    %27 = memref.load %arg2[%c27] : memref<64xf32, #tpu.memory_space<smem>>
    %c28 = arith.constant 28 : index
    %28 = memref.load %arg2[%c28] : memref<64xf32, #tpu.memory_space<smem>>
    %c29 = arith.constant 29 : index
    %29 = memref.load %arg2[%c29] : memref<64xf32, #tpu.memory_space<smem>>
    %c30 = arith.constant 30 : index
    %30 = memref.load %arg2[%c30] : memref<64xf32, #tpu.memory_space<smem>>
    %c31 = arith.constant 31 : index
    %31 = memref.load %arg2[%c31] : memref<64xf32, #tpu.memory_space<smem>>
    %c32 = arith.constant 32 : index
    %32 = memref.load %arg2[%c32] : memref<64xf32, #tpu.memory_space<smem>>
    %c33 = arith.constant 33 : index
    %33 = memref.load %arg2[%c33] : memref<64xf32, #tpu.memory_space<smem>>
    %c34 = arith.constant 34 : index
    %34 = memref.load %arg2[%c34] : memref<64xf32, #tpu.memory_space<smem>>
    %c35 = arith.constant 35 : index
    %35 = memref.load %arg2[%c35] : memref<64xf32, #tpu.memory_space<smem>>
    %c36 = arith.constant 36 : index
    %36 = memref.load %arg2[%c36] : memref<64xf32, #tpu.memory_space<smem>>
    %c37 = arith.constant 37 : index
    %37 = memref.load %arg2[%c37] : memref<64xf32, #tpu.memory_space<smem>>
    %c38 = arith.constant 38 : index
    %38 = memref.load %arg2[%c38] : memref<64xf32, #tpu.memory_space<smem>>
    %c39 = arith.constant 39 : index
    %39 = memref.load %arg2[%c39] : memref<64xf32, #tpu.memory_space<smem>>
    %c40 = arith.constant 40 : index
    %40 = memref.load %arg2[%c40] : memref<64xf32, #tpu.memory_space<smem>>
    %c41 = arith.constant 41 : index
    %41 = memref.load %arg2[%c41] : memref<64xf32, #tpu.memory_space<smem>>
    %c42 = arith.constant 42 : index
    %42 = memref.load %arg2[%c42] : memref<64xf32, #tpu.memory_space<smem>>
    %c43 = arith.constant 43 : index
    %43 = memref.load %arg2[%c43] : memref<64xf32, #tpu.memory_space<smem>>
    %c44 = arith.constant 44 : index
    %44 = memref.load %arg2[%c44] : memref<64xf32, #tpu.memory_space<smem>>
    %c45 = arith.constant 45 : index
    %45 = memref.load %arg2[%c45] : memref<64xf32, #tpu.memory_space<smem>>
    %c46 = arith.constant 46 : index
    %46 = memref.load %arg2[%c46] : memref<64xf32, #tpu.memory_space<smem>>
    %c47 = arith.constant 47 : index
    %47 = memref.load %arg2[%c47] : memref<64xf32, #tpu.memory_space<smem>>
    %c48 = arith.constant 48 : index
    %48 = memref.load %arg2[%c48] : memref<64xf32, #tpu.memory_space<smem>>
    %c49 = arith.constant 49 : index
    %49 = memref.load %arg2[%c49] : memref<64xf32, #tpu.memory_space<smem>>
    %c50 = arith.constant 50 : index
    %50 = memref.load %arg2[%c50] : memref<64xf32, #tpu.memory_space<smem>>
    %c51 = arith.constant 51 : index
    %51 = memref.load %arg2[%c51] : memref<64xf32, #tpu.memory_space<smem>>
    %c52 = arith.constant 52 : index
    %52 = memref.load %arg2[%c52] : memref<64xf32, #tpu.memory_space<smem>>
    %c53 = arith.constant 53 : index
    %53 = memref.load %arg2[%c53] : memref<64xf32, #tpu.memory_space<smem>>
    %c54 = arith.constant 54 : index
    %54 = memref.load %arg2[%c54] : memref<64xf32, #tpu.memory_space<smem>>
    %c55 = arith.constant 55 : index
    %55 = memref.load %arg2[%c55] : memref<64xf32, #tpu.memory_space<smem>>
    %c56 = arith.constant 56 : index
    %56 = memref.load %arg2[%c56] : memref<64xf32, #tpu.memory_space<smem>>
    %c57 = arith.constant 57 : index
    %57 = memref.load %arg2[%c57] : memref<64xf32, #tpu.memory_space<smem>>
    %c58 = arith.constant 58 : index
    %58 = memref.load %arg2[%c58] : memref<64xf32, #tpu.memory_space<smem>>
    %c59 = arith.constant 59 : index
    %59 = memref.load %arg2[%c59] : memref<64xf32, #tpu.memory_space<smem>>
    %c60 = arith.constant 60 : index
    %60 = memref.load %arg2[%c60] : memref<64xf32, #tpu.memory_space<smem>>
    %c61 = arith.constant 61 : index
    %61 = memref.load %arg2[%c61] : memref<64xf32, #tpu.memory_space<smem>>
    %c62 = arith.constant 62 : index
    %62 = memref.load %arg2[%c62] : memref<64xf32, #tpu.memory_space<smem>>
    %c63 = arith.constant 63 : index
    %63 = memref.load %arg2[%c63] : memref<64xf32, #tpu.memory_space<smem>>
    %c0_0 = arith.constant 0 : index
    %64 = memref.load %arg3[%c0_0] : memref<64xf32, #tpu.memory_space<smem>>
    %c1_1 = arith.constant 1 : index
    %65 = memref.load %arg3[%c1_1] : memref<64xf32, #tpu.memory_space<smem>>
    %c2_2 = arith.constant 2 : index
    %66 = memref.load %arg3[%c2_2] : memref<64xf32, #tpu.memory_space<smem>>
    %c3_3 = arith.constant 3 : index
    %67 = memref.load %arg3[%c3_3] : memref<64xf32, #tpu.memory_space<smem>>
    %c4_4 = arith.constant 4 : index
    %68 = memref.load %arg3[%c4_4] : memref<64xf32, #tpu.memory_space<smem>>
    %c5_5 = arith.constant 5 : index
    %69 = memref.load %arg3[%c5_5] : memref<64xf32, #tpu.memory_space<smem>>
    %c6_6 = arith.constant 6 : index
    %70 = memref.load %arg3[%c6_6] : memref<64xf32, #tpu.memory_space<smem>>
    %c7_7 = arith.constant 7 : index
    %71 = memref.load %arg3[%c7_7] : memref<64xf32, #tpu.memory_space<smem>>
    %c8_8 = arith.constant 8 : index
    %72 = memref.load %arg3[%c8_8] : memref<64xf32, #tpu.memory_space<smem>>
    %c9_9 = arith.constant 9 : index
    %73 = memref.load %arg3[%c9_9] : memref<64xf32, #tpu.memory_space<smem>>
    %c10_10 = arith.constant 10 : index
    %74 = memref.load %arg3[%c10_10] : memref<64xf32, #tpu.memory_space<smem>>
    %c11_11 = arith.constant 11 : index
    %75 = memref.load %arg3[%c11_11] : memref<64xf32, #tpu.memory_space<smem>>
    %c12_12 = arith.constant 12 : index
    %76 = memref.load %arg3[%c12_12] : memref<64xf32, #tpu.memory_space<smem>>
    %c13_13 = arith.constant 13 : index
    %77 = memref.load %arg3[%c13_13] : memref<64xf32, #tpu.memory_space<smem>>
    %c14_14 = arith.constant 14 : index
    %78 = memref.load %arg3[%c14_14] : memref<64xf32, #tpu.memory_space<smem>>
    %c15_15 = arith.constant 15 : index
    %79 = memref.load %arg3[%c15_15] : memref<64xf32, #tpu.memory_space<smem>>
    %c16_16 = arith.constant 16 : index
    %80 = memref.load %arg3[%c16_16] : memref<64xf32, #tpu.memory_space<smem>>
    %c17_17 = arith.constant 17 : index
    %81 = memref.load %arg3[%c17_17] : memref<64xf32, #tpu.memory_space<smem>>
    %c18_18 = arith.constant 18 : index
    %82 = memref.load %arg3[%c18_18] : memref<64xf32, #tpu.memory_space<smem>>
    %c19_19 = arith.constant 19 : index
    %83 = memref.load %arg3[%c19_19] : memref<64xf32, #tpu.memory_space<smem>>
    %c20_20 = arith.constant 20 : index
    %84 = memref.load %arg3[%c20_20] : memref<64xf32, #tpu.memory_space<smem>>
    %c21_21 = arith.constant 21 : index
    %85 = memref.load %arg3[%c21_21] : memref<64xf32, #tpu.memory_space<smem>>
    %c22_22 = arith.constant 22 : index
    %86 = memref.load %arg3[%c22_22] : memref<64xf32, #tpu.memory_space<smem>>
    %c23_23 = arith.constant 23 : index
    %87 = memref.load %arg3[%c23_23] : memref<64xf32, #tpu.memory_space<smem>>
    %c24_24 = arith.constant 24 : index
    %88 = memref.load %arg3[%c24_24] : memref<64xf32, #tpu.memory_space<smem>>
    %c25_25 = arith.constant 25 : index
    %89 = memref.load %arg3[%c25_25] : memref<64xf32, #tpu.memory_space<smem>>
    %c26_26 = arith.constant 26 : index
    %90 = memref.load %arg3[%c26_26] : memref<64xf32, #tpu.memory_space<smem>>
    %c27_27 = arith.constant 27 : index
    %91 = memref.load %arg3[%c27_27] : memref<64xf32, #tpu.memory_space<smem>>
    %c28_28 = arith.constant 28 : index
    %92 = memref.load %arg3[%c28_28] : memref<64xf32, #tpu.memory_space<smem>>
    %c29_29 = arith.constant 29 : index
    %93 = memref.load %arg3[%c29_29] : memref<64xf32, #tpu.memory_space<smem>>
    %c30_30 = arith.constant 30 : index
    %94 = memref.load %arg3[%c30_30] : memref<64xf32, #tpu.memory_space<smem>>
    %c31_31 = arith.constant 31 : index
    %95 = memref.load %arg3[%c31_31] : memref<64xf32, #tpu.memory_space<smem>>
    %c32_32 = arith.constant 32 : index
    %96 = memref.load %arg3[%c32_32] : memref<64xf32, #tpu.memory_space<smem>>
    %c33_33 = arith.constant 33 : index
    %97 = memref.load %arg3[%c33_33] : memref<64xf32, #tpu.memory_space<smem>>
    %c34_34 = arith.constant 34 : index
    %98 = memref.load %arg3[%c34_34] : memref<64xf32, #tpu.memory_space<smem>>
    %c35_35 = arith.constant 35 : index
    %99 = memref.load %arg3[%c35_35] : memref<64xf32, #tpu.memory_space<smem>>
    %c36_36 = arith.constant 36 : index
    %100 = memref.load %arg3[%c36_36] : memref<64xf32, #tpu.memory_space<smem>>
    %c37_37 = arith.constant 37 : index
    %101 = memref.load %arg3[%c37_37] : memref<64xf32, #tpu.memory_space<smem>>
    %c38_38 = arith.constant 38 : index
    %102 = memref.load %arg3[%c38_38] : memref<64xf32, #tpu.memory_space<smem>>
    %c39_39 = arith.constant 39 : index
    %103 = memref.load %arg3[%c39_39] : memref<64xf32, #tpu.memory_space<smem>>
    %c40_40 = arith.constant 40 : index
    %104 = memref.load %arg3[%c40_40] : memref<64xf32, #tpu.memory_space<smem>>
    %c41_41 = arith.constant 41 : index
    %105 = memref.load %arg3[%c41_41] : memref<64xf32, #tpu.memory_space<smem>>
    %c42_42 = arith.constant 42 : index
    %106 = memref.load %arg3[%c42_42] : memref<64xf32, #tpu.memory_space<smem>>
    %c43_43 = arith.constant 43 : index
    %107 = memref.load %arg3[%c43_43] : memref<64xf32, #tpu.memory_space<smem>>
    %c44_44 = arith.constant 44 : index
    %108 = memref.load %arg3[%c44_44] : memref<64xf32, #tpu.memory_space<smem>>
    %c45_45 = arith.constant 45 : index
    %109 = memref.load %arg3[%c45_45] : memref<64xf32, #tpu.memory_space<smem>>
    %c46_46 = arith.constant 46 : index
    %110 = memref.load %arg3[%c46_46] : memref<64xf32, #tpu.memory_space<smem>>
    %c47_47 = arith.constant 47 : index
    %111 = memref.load %arg3[%c47_47] : memref<64xf32, #tpu.memory_space<smem>>
    %c48_48 = arith.constant 48 : index
    %112 = memref.load %arg3[%c48_48] : memref<64xf32, #tpu.memory_space<smem>>
    %c49_49 = arith.constant 49 : index
    %113 = memref.load %arg3[%c49_49] : memref<64xf32, #tpu.memory_space<smem>>
    %c50_50 = arith.constant 50 : index
    %114 = memref.load %arg3[%c50_50] : memref<64xf32, #tpu.memory_space<smem>>
    %c51_51 = arith.constant 51 : index
    %115 = memref.load %arg3[%c51_51] : memref<64xf32, #tpu.memory_space<smem>>
    %c52_52 = arith.constant 52 : index
    %116 = memref.load %arg3[%c52_52] : memref<64xf32, #tpu.memory_space<smem>>
    %c53_53 = arith.constant 53 : index
    %117 = memref.load %arg3[%c53_53] : memref<64xf32, #tpu.memory_space<smem>>
    %c54_54 = arith.constant 54 : index
    %118 = memref.load %arg3[%c54_54] : memref<64xf32, #tpu.memory_space<smem>>
    %c55_55 = arith.constant 55 : index
    %119 = memref.load %arg3[%c55_55] : memref<64xf32, #tpu.memory_space<smem>>
    %c56_56 = arith.constant 56 : index
    %120 = memref.load %arg3[%c56_56] : memref<64xf32, #tpu.memory_space<smem>>
    %c57_57 = arith.constant 57 : index
    %121 = memref.load %arg3[%c57_57] : memref<64xf32, #tpu.memory_space<smem>>
    %c58_58 = arith.constant 58 : index
    %122 = memref.load %arg3[%c58_58] : memref<64xf32, #tpu.memory_space<smem>>
    %c59_59 = arith.constant 59 : index
    %123 = memref.load %arg3[%c59_59] : memref<64xf32, #tpu.memory_space<smem>>
    %c60_60 = arith.constant 60 : index
    %124 = memref.load %arg3[%c60_60] : memref<64xf32, #tpu.memory_space<smem>>
    %c61_61 = arith.constant 61 : index
    %125 = memref.load %arg3[%c61_61] : memref<64xf32, #tpu.memory_space<smem>>
    %c62_62 = arith.constant 62 : index
    %126 = memref.load %arg3[%c62_62] : memref<64xf32, #tpu.memory_space<smem>>
    %c63_63 = arith.constant 63 : index
    %127 = memref.load %arg3[%c63_63] : memref<64xf32, #tpu.memory_space<smem>>
    %c0_64 = arith.constant 0 : index
    %128 = memref.load %arg4[%c0_64] : memref<64xf32, #tpu.memory_space<smem>>
    %c1_65 = arith.constant 1 : index
    %129 = memref.load %arg4[%c1_65] : memref<64xf32, #tpu.memory_space<smem>>
    %c2_66 = arith.constant 2 : index
    %130 = memref.load %arg4[%c2_66] : memref<64xf32, #tpu.memory_space<smem>>
    %c3_67 = arith.constant 3 : index
    %131 = memref.load %arg4[%c3_67] : memref<64xf32, #tpu.memory_space<smem>>
    %c4_68 = arith.constant 4 : index
    %132 = memref.load %arg4[%c4_68] : memref<64xf32, #tpu.memory_space<smem>>
    %c5_69 = arith.constant 5 : index
    %133 = memref.load %arg4[%c5_69] : memref<64xf32, #tpu.memory_space<smem>>
    %c6_70 = arith.constant 6 : index
    %134 = memref.load %arg4[%c6_70] : memref<64xf32, #tpu.memory_space<smem>>
    %c7_71 = arith.constant 7 : index
    %135 = memref.load %arg4[%c7_71] : memref<64xf32, #tpu.memory_space<smem>>
    %c8_72 = arith.constant 8 : index
    %136 = memref.load %arg4[%c8_72] : memref<64xf32, #tpu.memory_space<smem>>
    %c9_73 = arith.constant 9 : index
    %137 = memref.load %arg4[%c9_73] : memref<64xf32, #tpu.memory_space<smem>>
    %c10_74 = arith.constant 10 : index
    %138 = memref.load %arg4[%c10_74] : memref<64xf32, #tpu.memory_space<smem>>
    %c11_75 = arith.constant 11 : index
    %139 = memref.load %arg4[%c11_75] : memref<64xf32, #tpu.memory_space<smem>>
    %c12_76 = arith.constant 12 : index
    %140 = memref.load %arg4[%c12_76] : memref<64xf32, #tpu.memory_space<smem>>
    %c13_77 = arith.constant 13 : index
    %141 = memref.load %arg4[%c13_77] : memref<64xf32, #tpu.memory_space<smem>>
    %c14_78 = arith.constant 14 : index
    %142 = memref.load %arg4[%c14_78] : memref<64xf32, #tpu.memory_space<smem>>
    %c15_79 = arith.constant 15 : index
    %143 = memref.load %arg4[%c15_79] : memref<64xf32, #tpu.memory_space<smem>>
    %c16_80 = arith.constant 16 : index
    %144 = memref.load %arg4[%c16_80] : memref<64xf32, #tpu.memory_space<smem>>
    %c17_81 = arith.constant 17 : index
    %145 = memref.load %arg4[%c17_81] : memref<64xf32, #tpu.memory_space<smem>>
    %c18_82 = arith.constant 18 : index
    %146 = memref.load %arg4[%c18_82] : memref<64xf32, #tpu.memory_space<smem>>
    %c19_83 = arith.constant 19 : index
    %147 = memref.load %arg4[%c19_83] : memref<64xf32, #tpu.memory_space<smem>>
    %c20_84 = arith.constant 20 : index
    %148 = memref.load %arg4[%c20_84] : memref<64xf32, #tpu.memory_space<smem>>
    %c21_85 = arith.constant 21 : index
    %149 = memref.load %arg4[%c21_85] : memref<64xf32, #tpu.memory_space<smem>>
    %c22_86 = arith.constant 22 : index
    %150 = memref.load %arg4[%c22_86] : memref<64xf32, #tpu.memory_space<smem>>
    %c23_87 = arith.constant 23 : index
    %151 = memref.load %arg4[%c23_87] : memref<64xf32, #tpu.memory_space<smem>>
    %c24_88 = arith.constant 24 : index
    %152 = memref.load %arg4[%c24_88] : memref<64xf32, #tpu.memory_space<smem>>
    %c25_89 = arith.constant 25 : index
    %153 = memref.load %arg4[%c25_89] : memref<64xf32, #tpu.memory_space<smem>>
    %c26_90 = arith.constant 26 : index
    %154 = memref.load %arg4[%c26_90] : memref<64xf32, #tpu.memory_space<smem>>
    %c27_91 = arith.constant 27 : index
    %155 = memref.load %arg4[%c27_91] : memref<64xf32, #tpu.memory_space<smem>>
    %c28_92 = arith.constant 28 : index
    %156 = memref.load %arg4[%c28_92] : memref<64xf32, #tpu.memory_space<smem>>
    %c29_93 = arith.constant 29 : index
    %157 = memref.load %arg4[%c29_93] : memref<64xf32, #tpu.memory_space<smem>>
    %c30_94 = arith.constant 30 : index
    %158 = memref.load %arg4[%c30_94] : memref<64xf32, #tpu.memory_space<smem>>
    %c31_95 = arith.constant 31 : index
    %159 = memref.load %arg4[%c31_95] : memref<64xf32, #tpu.memory_space<smem>>
    %c32_96 = arith.constant 32 : index
    %160 = memref.load %arg4[%c32_96] : memref<64xf32, #tpu.memory_space<smem>>
    %c33_97 = arith.constant 33 : index
    %161 = memref.load %arg4[%c33_97] : memref<64xf32, #tpu.memory_space<smem>>
    %c34_98 = arith.constant 34 : index
    %162 = memref.load %arg4[%c34_98] : memref<64xf32, #tpu.memory_space<smem>>
    %c35_99 = arith.constant 35 : index
    %163 = memref.load %arg4[%c35_99] : memref<64xf32, #tpu.memory_space<smem>>
    %c36_100 = arith.constant 36 : index
    %164 = memref.load %arg4[%c36_100] : memref<64xf32, #tpu.memory_space<smem>>
    %c37_101 = arith.constant 37 : index
    %165 = memref.load %arg4[%c37_101] : memref<64xf32, #tpu.memory_space<smem>>
    %c38_102 = arith.constant 38 : index
    %166 = memref.load %arg4[%c38_102] : memref<64xf32, #tpu.memory_space<smem>>
    %c39_103 = arith.constant 39 : index
    %167 = memref.load %arg4[%c39_103] : memref<64xf32, #tpu.memory_space<smem>>
    %c40_104 = arith.constant 40 : index
    %168 = memref.load %arg4[%c40_104] : memref<64xf32, #tpu.memory_space<smem>>
    %c41_105 = arith.constant 41 : index
    %169 = memref.load %arg4[%c41_105] : memref<64xf32, #tpu.memory_space<smem>>
    %c42_106 = arith.constant 42 : index
    %170 = memref.load %arg4[%c42_106] : memref<64xf32, #tpu.memory_space<smem>>
    %c43_107 = arith.constant 43 : index
    %171 = memref.load %arg4[%c43_107] : memref<64xf32, #tpu.memory_space<smem>>
    %c44_108 = arith.constant 44 : index
    %172 = memref.load %arg4[%c44_108] : memref<64xf32, #tpu.memory_space<smem>>
    %c45_109 = arith.constant 45 : index
    %173 = memref.load %arg4[%c45_109] : memref<64xf32, #tpu.memory_space<smem>>
    %c46_110 = arith.constant 46 : index
    %174 = memref.load %arg4[%c46_110] : memref<64xf32, #tpu.memory_space<smem>>
    %c47_111 = arith.constant 47 : index
    %175 = memref.load %arg4[%c47_111] : memref<64xf32, #tpu.memory_space<smem>>
    %c48_112 = arith.constant 48 : index
    %176 = memref.load %arg4[%c48_112] : memref<64xf32, #tpu.memory_space<smem>>
    %c49_113 = arith.constant 49 : index
    %177 = memref.load %arg4[%c49_113] : memref<64xf32, #tpu.memory_space<smem>>
    %c50_114 = arith.constant 50 : index
    %178 = memref.load %arg4[%c50_114] : memref<64xf32, #tpu.memory_space<smem>>
    %c51_115 = arith.constant 51 : index
    %179 = memref.load %arg4[%c51_115] : memref<64xf32, #tpu.memory_space<smem>>
    %c52_116 = arith.constant 52 : index
    %180 = memref.load %arg4[%c52_116] : memref<64xf32, #tpu.memory_space<smem>>
    %c53_117 = arith.constant 53 : index
    %181 = memref.load %arg4[%c53_117] : memref<64xf32, #tpu.memory_space<smem>>
    %c54_118 = arith.constant 54 : index
    %182 = memref.load %arg4[%c54_118] : memref<64xf32, #tpu.memory_space<smem>>
    %c55_119 = arith.constant 55 : index
    %183 = memref.load %arg4[%c55_119] : memref<64xf32, #tpu.memory_space<smem>>
    %c56_120 = arith.constant 56 : index
    %184 = memref.load %arg4[%c56_120] : memref<64xf32, #tpu.memory_space<smem>>
    %c57_121 = arith.constant 57 : index
    %185 = memref.load %arg4[%c57_121] : memref<64xf32, #tpu.memory_space<smem>>
    %c58_122 = arith.constant 58 : index
    %186 = memref.load %arg4[%c58_122] : memref<64xf32, #tpu.memory_space<smem>>
    %c59_123 = arith.constant 59 : index
    %187 = memref.load %arg4[%c59_123] : memref<64xf32, #tpu.memory_space<smem>>
    %c60_124 = arith.constant 60 : index
    %188 = memref.load %arg4[%c60_124] : memref<64xf32, #tpu.memory_space<smem>>
    %c61_125 = arith.constant 61 : index
    %189 = memref.load %arg4[%c61_125] : memref<64xf32, #tpu.memory_space<smem>>
    %c62_126 = arith.constant 62 : index
    %190 = memref.load %arg4[%c62_126] : memref<64xf32, #tpu.memory_space<smem>>
    %c63_127 = arith.constant 63 : index
    %191 = memref.load %arg4[%c63_127] : memref<64xf32, #tpu.memory_space<smem>>
    %c0_128 = arith.constant 0 : index
    %192 = memref.load %arg5[%c0_128] : memref<1xf32, #tpu.memory_space<smem>>
    %cst = arith.constant 0.000000e+00 : f32
    %c0_i32 = arith.constant 0 : i32
    %c32_i32 = arith.constant 32 : i32
    %193 = arith.muli %c0_i32, %c32_i32 : i32
    %194 = tpu.assume_multiple %193, 32 : i32
    %195 = arith.index_cast %194 : i32 to index
    %c0_129 = arith.constant 0 : index
    %196 = vector.load %arg1[%195, %c0_129] : memref<32x128xf32, #tpu.memory_space<vmem>>, vector<32x128xf32>
    %197 = vector.broadcast %0 : f32 to vector<32x128xf32>
    %198 = arith.mulf %197, %196 : vector<32x128xf32>
    %199 = vector.broadcast %64 : f32 to vector<32x128xf32>
    %200 = arith.addf %198, %199 : vector<32x128xf32>
    %201 = vector.broadcast %cst : f32 to vector<32x128xf32>
    %202 = arith.maximumf %200, %201 : vector<32x128xf32>
    %203 = vector.broadcast %128 : f32 to vector<32x128xf32>
    %204 = arith.mulf %203, %202 : vector<32x128xf32>
    %205 = vector.broadcast %1 : f32 to vector<32x128xf32>
    %206 = arith.mulf %205, %196 : vector<32x128xf32>
    %207 = vector.broadcast %65 : f32 to vector<32x128xf32>
    %208 = arith.addf %206, %207 : vector<32x128xf32>
    %209 = vector.broadcast %cst : f32 to vector<32x128xf32>
    %210 = arith.maximumf %208, %209 : vector<32x128xf32>
    %211 = vector.broadcast %129 : f32 to vector<32x128xf32>
    %212 = arith.mulf %211, %210 : vector<32x128xf32>
    %213 = vector.broadcast %2 : f32 to vector<32x128xf32>
    %214 = arith.mulf %213, %196 : vector<32x128xf32>
    %215 = vector.broadcast %66 : f32 to vector<32x128xf32>
    %216 = arith.addf %214, %215 : vector<32x128xf32>
    %217 = vector.broadcast %cst : f32 to vector<32x128xf32>
    %218 = arith.maximumf %216, %217 : vector<32x128xf32>
    %219 = vector.broadcast %130 : f32 to vector<32x128xf32>
    %220 = arith.mulf %219, %218 : vector<32x128xf32>
    %221 = vector.broadcast %3 : f32 to vector<32x128xf32>
    %222 = arith.mulf %221, %196 : vector<32x128xf32>
    %223 = vector.broadcast %67 : f32 to vector<32x128xf32>
    %224 = arith.addf %222, %223 : vector<32x128xf32>
    %225 = vector.broadcast %cst : f32 to vector<32x128xf32>
    %226 = arith.maximumf %224, %225 : vector<32x128xf32>
    %227 = vector.broadcast %131 : f32 to vector<32x128xf32>
    %228 = arith.mulf %227, %226 : vector<32x128xf32>
    %229 = vector.broadcast %4 : f32 to vector<32x128xf32>
    %230 = arith.mulf %229, %196 : vector<32x128xf32>
    %231 = vector.broadcast %68 : f32 to vector<32x128xf32>
    %232 = arith.addf %230, %231 : vector<32x128xf32>
    %233 = vector.broadcast %cst : f32 to vector<32x128xf32>
    %234 = arith.maximumf %232, %233 : vector<32x128xf32>
    %235 = vector.broadcast %132 : f32 to vector<32x128xf32>
    %236 = arith.mulf %235, %234 : vector<32x128xf32>
    %237 = arith.addf %204, %236 : vector<32x128xf32>
    %238 = vector.broadcast %5 : f32 to vector<32x128xf32>
    %239 = arith.mulf %238, %196 : vector<32x128xf32>
    %240 = vector.broadcast %69 : f32 to vector<32x128xf32>
    %241 = arith.addf %239, %240 : vector<32x128xf32>
    %242 = vector.broadcast %cst : f32 to vector<32x128xf32>
    %243 = arith.maximumf %241, %242 : vector<32x128xf32>
    %244 = vector.broadcast %133 : f32 to vector<32x128xf32>
    %245 = arith.mulf %244, %243 : vector<32x128xf32>
    %246 = arith.addf %212, %245 : vector<32x128xf32>
    %247 = vector.broadcast %6 : f32 to vector<32x128xf32>
    %248 = arith.mulf %247, %196 : vector<32x128xf32>
    %249 = vector.broadcast %70 : f32 to vector<32x128xf32>
    %250 = arith.addf %248, %249 : vector<32x128xf32>
    %251 = vector.broadcast %cst : f32 to vector<32x128xf32>
    %252 = arith.maximumf %250, %251 : vector<32x128xf32>
    %253 = vector.broadcast %134 : f32 to vector<32x128xf32>
    %254 = arith.mulf %253, %252 : vector<32x128xf32>
    %255 = arith.addf %220, %254 : vector<32x128xf32>
    %256 = vector.broadcast %7 : f32 to vector<32x128xf32>
    %257 = arith.mulf %256, %196 : vector<32x128xf32>
    %258 = vector.broadcast %71 : f32 to vector<32x128xf32>
    %259 = arith.addf %257, %258 : vector<32x128xf32>
    %260 = vector.broadcast %cst : f32 to vector<32x128xf32>
    %261 = arith.maximumf %259, %260 : vector<32x128xf32>
    %262 = vector.broadcast %135 : f32 to vector<32x128xf32>
    %263 = arith.mulf %262, %261 : vector<32x128xf32>
    %264 = arith.addf %228, %263 : vector<32x128xf32>
    %265 = vector.broadcast %8 : f32 to vector<32x128xf32>
    %266 = arith.mulf %265, %196 : vector<32x128xf32>
    %267 = vector.broadcast %72 : f32 to vector<32x128xf32>
    %268 = arith.addf %266, %267 : vector<32x128xf32>
    %269 = vector.broadcast %cst : f32 to vector<32x128xf32>
    %270 = arith.maximumf %268, %269 : vector<32x128xf32>
    %271 = vector.broadcast %136 : f32 to vector<32x128xf32>
    %272 = arith.mulf %271, %270 : vector<32x128xf32>
    %273 = arith.addf %237, %272 : vector<32x128xf32>
    %274 = vector.broadcast %9 : f32 to vector<32x128xf32>
    %275 = arith.mulf %274, %196 : vector<32x128xf32>
    %276 = vector.broadcast %73 : f32 to vector<32x128xf32>
    %277 = arith.addf %275, %276 : vector<32x128xf32>
    %278 = vector.broadcast %cst : f32 to vector<32x128xf32>
    %279 = arith.maximumf %277, %278 : vector<32x128xf32>
    %280 = vector.broadcast %137 : f32 to vector<32x128xf32>
    %281 = arith.mulf %280, %279 : vector<32x128xf32>
    %282 = arith.addf %246, %281 : vector<32x128xf32>
    %283 = vector.broadcast %10 : f32 to vector<32x128xf32>
    %284 = arith.mulf %283, %196 : vector<32x128xf32>
    %285 = vector.broadcast %74 : f32 to vector<32x128xf32>
    %286 = arith.addf %284, %285 : vector<32x128xf32>
    %287 = vector.broadcast %cst : f32 to vector<32x128xf32>
    %288 = arith.maximumf %286, %287 : vector<32x128xf32>
    %289 = vector.broadcast %138 : f32 to vector<32x128xf32>
    %290 = arith.mulf %289, %288 : vector<32x128xf32>
    %291 = arith.addf %255, %290 : vector<32x128xf32>
    %292 = vector.broadcast %11 : f32 to vector<32x128xf32>
    %293 = arith.mulf %292, %196 : vector<32x128xf32>
    %294 = vector.broadcast %75 : f32 to vector<32x128xf32>
    %295 = arith.addf %293, %294 : vector<32x128xf32>
    %296 = vector.broadcast %cst : f32 to vector<32x128xf32>
    %297 = arith.maximumf %295, %296 : vector<32x128xf32>
    %298 = vector.broadcast %139 : f32 to vector<32x128xf32>
    %299 = arith.mulf %298, %297 : vector<32x128xf32>
    %300 = arith.addf %264, %299 : vector<32x128xf32>
    %301 = vector.broadcast %12 : f32 to vector<32x128xf32>
    %302 = arith.mulf %301, %196 : vector<32x128xf32>
    %303 = vector.broadcast %76 : f32 to vector<32x128xf32>
    %304 = arith.addf %302, %303 : vector<32x128xf32>
    %305 = vector.broadcast %cst : f32 to vector<32x128xf32>
    %306 = arith.maximumf %304, %305 : vector<32x128xf32>
    %307 = vector.broadcast %140 : f32 to vector<32x128xf32>
    %308 = arith.mulf %307, %306 : vector<32x128xf32>
    %309 = arith.addf %273, %308 : vector<32x128xf32>
    %310 = vector.broadcast %13 : f32 to vector<32x128xf32>
    %311 = arith.mulf %310, %196 : vector<32x128xf32>
    %312 = vector.broadcast %77 : f32 to vector<32x128xf32>
    %313 = arith.addf %311, %312 : vector<32x128xf32>
    %314 = vector.broadcast %cst : f32 to vector<32x128xf32>
    %315 = arith.maximumf %313, %314 : vector<32x128xf32>
    %316 = vector.broadcast %141 : f32 to vector<32x128xf32>
    %317 = arith.mulf %316, %315 : vector<32x128xf32>
    %318 = arith.addf %282, %317 : vector<32x128xf32>
    %319 = vector.broadcast %14 : f32 to vector<32x128xf32>
    %320 = arith.mulf %319, %196 : vector<32x128xf32>
    %321 = vector.broadcast %78 : f32 to vector<32x128xf32>
    %322 = arith.addf %320, %321 : vector<32x128xf32>
    %323 = vector.broadcast %cst : f32 to vector<32x128xf32>
    %324 = arith.maximumf %322, %323 : vector<32x128xf32>
    %325 = vector.broadcast %142 : f32 to vector<32x128xf32>
    %326 = arith.mulf %325, %324 : vector<32x128xf32>
    %327 = arith.addf %291, %326 : vector<32x128xf32>
    %328 = vector.broadcast %15 : f32 to vector<32x128xf32>
    %329 = arith.mulf %328, %196 : vector<32x128xf32>
    %330 = vector.broadcast %79 : f32 to vector<32x128xf32>
    %331 = arith.addf %329, %330 : vector<32x128xf32>
    %332 = vector.broadcast %cst : f32 to vector<32x128xf32>
    %333 = arith.maximumf %331, %332 : vector<32x128xf32>
    %334 = vector.broadcast %143 : f32 to vector<32x128xf32>
    %335 = arith.mulf %334, %333 : vector<32x128xf32>
    %336 = arith.addf %300, %335 : vector<32x128xf32>
    %337 = vector.broadcast %16 : f32 to vector<32x128xf32>
    %338 = arith.mulf %337, %196 : vector<32x128xf32>
    %339 = vector.broadcast %80 : f32 to vector<32x128xf32>
    %340 = arith.addf %338, %339 : vector<32x128xf32>
    %341 = vector.broadcast %cst : f32 to vector<32x128xf32>
    %342 = arith.maximumf %340, %341 : vector<32x128xf32>
    %343 = vector.broadcast %144 : f32 to vector<32x128xf32>
    %344 = arith.mulf %343, %342 : vector<32x128xf32>
    %345 = arith.addf %309, %344 : vector<32x128xf32>
    %346 = vector.broadcast %17 : f32 to vector<32x128xf32>
    %347 = arith.mulf %346, %196 : vector<32x128xf32>
    %348 = vector.broadcast %81 : f32 to vector<32x128xf32>
    %349 = arith.addf %347, %348 : vector<32x128xf32>
    %350 = vector.broadcast %cst : f32 to vector<32x128xf32>
    %351 = arith.maximumf %349, %350 : vector<32x128xf32>
    %352 = vector.broadcast %145 : f32 to vector<32x128xf32>
    %353 = arith.mulf %352, %351 : vector<32x128xf32>
    %354 = arith.addf %318, %353 : vector<32x128xf32>
    %355 = vector.broadcast %18 : f32 to vector<32x128xf32>
    %356 = arith.mulf %355, %196 : vector<32x128xf32>
    %357 = vector.broadcast %82 : f32 to vector<32x128xf32>
    %358 = arith.addf %356, %357 : vector<32x128xf32>
    %359 = vector.broadcast %cst : f32 to vector<32x128xf32>
    %360 = arith.maximumf %358, %359 : vector<32x128xf32>
    %361 = vector.broadcast %146 : f32 to vector<32x128xf32>
    %362 = arith.mulf %361, %360 : vector<32x128xf32>
    %363 = arith.addf %327, %362 : vector<32x128xf32>
    %364 = vector.broadcast %19 : f32 to vector<32x128xf32>
    %365 = arith.mulf %364, %196 : vector<32x128xf32>
    %366 = vector.broadcast %83 : f32 to vector<32x128xf32>
    %367 = arith.addf %365, %366 : vector<32x128xf32>
    %368 = vector.broadcast %cst : f32 to vector<32x128xf32>
    %369 = arith.maximumf %367, %368 : vector<32x128xf32>
    %370 = vector.broadcast %147 : f32 to vector<32x128xf32>
    %371 = arith.mulf %370, %369 : vector<32x128xf32>
    %372 = arith.addf %336, %371 : vector<32x128xf32>
    %373 = vector.broadcast %20 : f32 to vector<32x128xf32>
    %374 = arith.mulf %373, %196 : vector<32x128xf32>
    %375 = vector.broadcast %84 : f32 to vector<32x128xf32>
    %376 = arith.addf %374, %375 : vector<32x128xf32>
    %377 = vector.broadcast %cst : f32 to vector<32x128xf32>
    %378 = arith.maximumf %376, %377 : vector<32x128xf32>
    %379 = vector.broadcast %148 : f32 to vector<32x128xf32>
    %380 = arith.mulf %379, %378 : vector<32x128xf32>
    %381 = arith.addf %345, %380 : vector<32x128xf32>
    %382 = vector.broadcast %21 : f32 to vector<32x128xf32>
    %383 = arith.mulf %382, %196 : vector<32x128xf32>
    %384 = vector.broadcast %85 : f32 to vector<32x128xf32>
    %385 = arith.addf %383, %384 : vector<32x128xf32>
    %386 = vector.broadcast %cst : f32 to vector<32x128xf32>
    %387 = arith.maximumf %385, %386 : vector<32x128xf32>
    %388 = vector.broadcast %149 : f32 to vector<32x128xf32>
    %389 = arith.mulf %388, %387 : vector<32x128xf32>
    %390 = arith.addf %354, %389 : vector<32x128xf32>
    %391 = vector.broadcast %22 : f32 to vector<32x128xf32>
    %392 = arith.mulf %391, %196 : vector<32x128xf32>
    %393 = vector.broadcast %86 : f32 to vector<32x128xf32>
    %394 = arith.addf %392, %393 : vector<32x128xf32>
    %395 = vector.broadcast %cst : f32 to vector<32x128xf32>
    %396 = arith.maximumf %394, %395 : vector<32x128xf32>
    %397 = vector.broadcast %150 : f32 to vector<32x128xf32>
    %398 = arith.mulf %397, %396 : vector<32x128xf32>
    %399 = arith.addf %363, %398 : vector<32x128xf32>
    %400 = vector.broadcast %23 : f32 to vector<32x128xf32>
    %401 = arith.mulf %400, %196 : vector<32x128xf32>
    %402 = vector.broadcast %87 : f32 to vector<32x128xf32>
    %403 = arith.addf %401, %402 : vector<32x128xf32>
    %404 = vector.broadcast %cst : f32 to vector<32x128xf32>
    %405 = arith.maximumf %403, %404 : vector<32x128xf32>
    %406 = vector.broadcast %151 : f32 to vector<32x128xf32>
    %407 = arith.mulf %406, %405 : vector<32x128xf32>
    %408 = arith.addf %372, %407 : vector<32x128xf32>
    %409 = vector.broadcast %24 : f32 to vector<32x128xf32>
    %410 = arith.mulf %409, %196 : vector<32x128xf32>
    %411 = vector.broadcast %88 : f32 to vector<32x128xf32>
    %412 = arith.addf %410, %411 : vector<32x128xf32>
    %413 = vector.broadcast %cst : f32 to vector<32x128xf32>
    %414 = arith.maximumf %412, %413 : vector<32x128xf32>
    %415 = vector.broadcast %152 : f32 to vector<32x128xf32>
    %416 = arith.mulf %415, %414 : vector<32x128xf32>
    %417 = arith.addf %381, %416 : vector<32x128xf32>
    %418 = vector.broadcast %25 : f32 to vector<32x128xf32>
    %419 = arith.mulf %418, %196 : vector<32x128xf32>
    %420 = vector.broadcast %89 : f32 to vector<32x128xf32>
    %421 = arith.addf %419, %420 : vector<32x128xf32>
    %422 = vector.broadcast %cst : f32 to vector<32x128xf32>
    %423 = arith.maximumf %421, %422 : vector<32x128xf32>
    %424 = vector.broadcast %153 : f32 to vector<32x128xf32>
    %425 = arith.mulf %424, %423 : vector<32x128xf32>
    %426 = arith.addf %390, %425 : vector<32x128xf32>
    %427 = vector.broadcast %26 : f32 to vector<32x128xf32>
    %428 = arith.mulf %427, %196 : vector<32x128xf32>
    %429 = vector.broadcast %90 : f32 to vector<32x128xf32>
    %430 = arith.addf %428, %429 : vector<32x128xf32>
    %431 = vector.broadcast %cst : f32 to vector<32x128xf32>
    %432 = arith.maximumf %430, %431 : vector<32x128xf32>
    %433 = vector.broadcast %154 : f32 to vector<32x128xf32>
    %434 = arith.mulf %433, %432 : vector<32x128xf32>
    %435 = arith.addf %399, %434 : vector<32x128xf32>
    %436 = vector.broadcast %27 : f32 to vector<32x128xf32>
    %437 = arith.mulf %436, %196 : vector<32x128xf32>
    %438 = vector.broadcast %91 : f32 to vector<32x128xf32>
    %439 = arith.addf %437, %438 : vector<32x128xf32>
    %440 = vector.broadcast %cst : f32 to vector<32x128xf32>
    %441 = arith.maximumf %439, %440 : vector<32x128xf32>
    %442 = vector.broadcast %155 : f32 to vector<32x128xf32>
    %443 = arith.mulf %442, %441 : vector<32x128xf32>
    %444 = arith.addf %408, %443 : vector<32x128xf32>
    %445 = vector.broadcast %28 : f32 to vector<32x128xf32>
    %446 = arith.mulf %445, %196 : vector<32x128xf32>
    %447 = vector.broadcast %92 : f32 to vector<32x128xf32>
    %448 = arith.addf %446, %447 : vector<32x128xf32>
    %449 = vector.broadcast %cst : f32 to vector<32x128xf32>
    %450 = arith.maximumf %448, %449 : vector<32x128xf32>
    %451 = vector.broadcast %156 : f32 to vector<32x128xf32>
    %452 = arith.mulf %451, %450 : vector<32x128xf32>
    %453 = arith.addf %417, %452 : vector<32x128xf32>
    %454 = vector.broadcast %29 : f32 to vector<32x128xf32>
    %455 = arith.mulf %454, %196 : vector<32x128xf32>
    %456 = vector.broadcast %93 : f32 to vector<32x128xf32>
    %457 = arith.addf %455, %456 : vector<32x128xf32>
    %458 = vector.broadcast %cst : f32 to vector<32x128xf32>
    %459 = arith.maximumf %457, %458 : vector<32x128xf32>
    %460 = vector.broadcast %157 : f32 to vector<32x128xf32>
    %461 = arith.mulf %460, %459 : vector<32x128xf32>
    %462 = arith.addf %426, %461 : vector<32x128xf32>
    %463 = vector.broadcast %30 : f32 to vector<32x128xf32>
    %464 = arith.mulf %463, %196 : vector<32x128xf32>
    %465 = vector.broadcast %94 : f32 to vector<32x128xf32>
    %466 = arith.addf %464, %465 : vector<32x128xf32>
    %467 = vector.broadcast %cst : f32 to vector<32x128xf32>
    %468 = arith.maximumf %466, %467 : vector<32x128xf32>
    %469 = vector.broadcast %158 : f32 to vector<32x128xf32>
    %470 = arith.mulf %469, %468 : vector<32x128xf32>
    %471 = arith.addf %435, %470 : vector<32x128xf32>
    %472 = vector.broadcast %31 : f32 to vector<32x128xf32>
    %473 = arith.mulf %472, %196 : vector<32x128xf32>
    %474 = vector.broadcast %95 : f32 to vector<32x128xf32>
    %475 = arith.addf %473, %474 : vector<32x128xf32>
    %476 = vector.broadcast %cst : f32 to vector<32x128xf32>
    %477 = arith.maximumf %475, %476 : vector<32x128xf32>
    %478 = vector.broadcast %159 : f32 to vector<32x128xf32>
    %479 = arith.mulf %478, %477 : vector<32x128xf32>
    %480 = arith.addf %444, %479 : vector<32x128xf32>
    %481 = vector.broadcast %32 : f32 to vector<32x128xf32>
    %482 = arith.mulf %481, %196 : vector<32x128xf32>
    %483 = vector.broadcast %96 : f32 to vector<32x128xf32>
    %484 = arith.addf %482, %483 : vector<32x128xf32>
    %485 = vector.broadcast %cst : f32 to vector<32x128xf32>
    %486 = arith.maximumf %484, %485 : vector<32x128xf32>
    %487 = vector.broadcast %160 : f32 to vector<32x128xf32>
    %488 = arith.mulf %487, %486 : vector<32x128xf32>
    %489 = arith.addf %453, %488 : vector<32x128xf32>
    %490 = vector.broadcast %33 : f32 to vector<32x128xf32>
    %491 = arith.mulf %490, %196 : vector<32x128xf32>
    %492 = vector.broadcast %97 : f32 to vector<32x128xf32>
    %493 = arith.addf %491, %492 : vector<32x128xf32>
    %494 = vector.broadcast %cst : f32 to vector<32x128xf32>
    %495 = arith.maximumf %493, %494 : vector<32x128xf32>
    %496 = vector.broadcast %161 : f32 to vector<32x128xf32>
    %497 = arith.mulf %496, %495 : vector<32x128xf32>
    %498 = arith.addf %462, %497 : vector<32x128xf32>
    %499 = vector.broadcast %34 : f32 to vector<32x128xf32>
    %500 = arith.mulf %499, %196 : vector<32x128xf32>
    %501 = vector.broadcast %98 : f32 to vector<32x128xf32>
    %502 = arith.addf %500, %501 : vector<32x128xf32>
    %503 = vector.broadcast %cst : f32 to vector<32x128xf32>
    %504 = arith.maximumf %502, %503 : vector<32x128xf32>
    %505 = vector.broadcast %162 : f32 to vector<32x128xf32>
    %506 = arith.mulf %505, %504 : vector<32x128xf32>
    %507 = arith.addf %471, %506 : vector<32x128xf32>
    %508 = vector.broadcast %35 : f32 to vector<32x128xf32>
    %509 = arith.mulf %508, %196 : vector<32x128xf32>
    %510 = vector.broadcast %99 : f32 to vector<32x128xf32>
    %511 = arith.addf %509, %510 : vector<32x128xf32>
    %512 = vector.broadcast %cst : f32 to vector<32x128xf32>
    %513 = arith.maximumf %511, %512 : vector<32x128xf32>
    %514 = vector.broadcast %163 : f32 to vector<32x128xf32>
    %515 = arith.mulf %514, %513 : vector<32x128xf32>
    %516 = arith.addf %480, %515 : vector<32x128xf32>
    %517 = vector.broadcast %36 : f32 to vector<32x128xf32>
    %518 = arith.mulf %517, %196 : vector<32x128xf32>
    %519 = vector.broadcast %100 : f32 to vector<32x128xf32>
    %520 = arith.addf %518, %519 : vector<32x128xf32>
    %521 = vector.broadcast %cst : f32 to vector<32x128xf32>
    %522 = arith.maximumf %520, %521 : vector<32x128xf32>
    %523 = vector.broadcast %164 : f32 to vector<32x128xf32>
    %524 = arith.mulf %523, %522 : vector<32x128xf32>
    %525 = arith.addf %489, %524 : vector<32x128xf32>
    %526 = vector.broadcast %37 : f32 to vector<32x128xf32>
    %527 = arith.mulf %526, %196 : vector<32x128xf32>
    %528 = vector.broadcast %101 : f32 to vector<32x128xf32>
    %529 = arith.addf %527, %528 : vector<32x128xf32>
    %530 = vector.broadcast %cst : f32 to vector<32x128xf32>
    %531 = arith.maximumf %529, %530 : vector<32x128xf32>
    %532 = vector.broadcast %165 : f32 to vector<32x128xf32>
    %533 = arith.mulf %532, %531 : vector<32x128xf32>
    %534 = arith.addf %498, %533 : vector<32x128xf32>
    %535 = vector.broadcast %38 : f32 to vector<32x128xf32>
    %536 = arith.mulf %535, %196 : vector<32x128xf32>
    %537 = vector.broadcast %102 : f32 to vector<32x128xf32>
    %538 = arith.addf %536, %537 : vector<32x128xf32>
    %539 = vector.broadcast %cst : f32 to vector<32x128xf32>
    %540 = arith.maximumf %538, %539 : vector<32x128xf32>
    %541 = vector.broadcast %166 : f32 to vector<32x128xf32>
    %542 = arith.mulf %541, %540 : vector<32x128xf32>
    %543 = arith.addf %507, %542 : vector<32x128xf32>
    %544 = vector.broadcast %39 : f32 to vector<32x128xf32>
    %545 = arith.mulf %544, %196 : vector<32x128xf32>
    %546 = vector.broadcast %103 : f32 to vector<32x128xf32>
    %547 = arith.addf %545, %546 : vector<32x128xf32>
    %548 = vector.broadcast %cst : f32 to vector<32x128xf32>
    %549 = arith.maximumf %547, %548 : vector<32x128xf32>
    %550 = vector.broadcast %167 : f32 to vector<32x128xf32>
    %551 = arith.mulf %550, %549 : vector<32x128xf32>
    %552 = arith.addf %516, %551 : vector<32x128xf32>
    %553 = vector.broadcast %40 : f32 to vector<32x128xf32>
    %554 = arith.mulf %553, %196 : vector<32x128xf32>
    %555 = vector.broadcast %104 : f32 to vector<32x128xf32>
    %556 = arith.addf %554, %555 : vector<32x128xf32>
    %557 = vector.broadcast %cst : f32 to vector<32x128xf32>
    %558 = arith.maximumf %556, %557 : vector<32x128xf32>
    %559 = vector.broadcast %168 : f32 to vector<32x128xf32>
    %560 = arith.mulf %559, %558 : vector<32x128xf32>
    %561 = arith.addf %525, %560 : vector<32x128xf32>
    %562 = vector.broadcast %41 : f32 to vector<32x128xf32>
    %563 = arith.mulf %562, %196 : vector<32x128xf32>
    %564 = vector.broadcast %105 : f32 to vector<32x128xf32>
    %565 = arith.addf %563, %564 : vector<32x128xf32>
    %566 = vector.broadcast %cst : f32 to vector<32x128xf32>
    %567 = arith.maximumf %565, %566 : vector<32x128xf32>
    %568 = vector.broadcast %169 : f32 to vector<32x128xf32>
    %569 = arith.mulf %568, %567 : vector<32x128xf32>
    %570 = arith.addf %534, %569 : vector<32x128xf32>
    %571 = vector.broadcast %42 : f32 to vector<32x128xf32>
    %572 = arith.mulf %571, %196 : vector<32x128xf32>
    %573 = vector.broadcast %106 : f32 to vector<32x128xf32>
    %574 = arith.addf %572, %573 : vector<32x128xf32>
    %575 = vector.broadcast %cst : f32 to vector<32x128xf32>
    %576 = arith.maximumf %574, %575 : vector<32x128xf32>
    %577 = vector.broadcast %170 : f32 to vector<32x128xf32>
    %578 = arith.mulf %577, %576 : vector<32x128xf32>
    %579 = arith.addf %543, %578 : vector<32x128xf32>
    %580 = vector.broadcast %43 : f32 to vector<32x128xf32>
    %581 = arith.mulf %580, %196 : vector<32x128xf32>
    %582 = vector.broadcast %107 : f32 to vector<32x128xf32>
    %583 = arith.addf %581, %582 : vector<32x128xf32>
    %584 = vector.broadcast %cst : f32 to vector<32x128xf32>
    %585 = arith.maximumf %583, %584 : vector<32x128xf32>
    %586 = vector.broadcast %171 : f32 to vector<32x128xf32>
    %587 = arith.mulf %586, %585 : vector<32x128xf32>
    %588 = arith.addf %552, %587 : vector<32x128xf32>
    %589 = vector.broadcast %44 : f32 to vector<32x128xf32>
    %590 = arith.mulf %589, %196 : vector<32x128xf32>
    %591 = vector.broadcast %108 : f32 to vector<32x128xf32>
    %592 = arith.addf %590, %591 : vector<32x128xf32>
    %593 = vector.broadcast %cst : f32 to vector<32x128xf32>
    %594 = arith.maximumf %592, %593 : vector<32x128xf32>
    %595 = vector.broadcast %172 : f32 to vector<32x128xf32>
    %596 = arith.mulf %595, %594 : vector<32x128xf32>
    %597 = arith.addf %561, %596 : vector<32x128xf32>
    %598 = vector.broadcast %45 : f32 to vector<32x128xf32>
    %599 = arith.mulf %598, %196 : vector<32x128xf32>
    %600 = vector.broadcast %109 : f32 to vector<32x128xf32>
    %601 = arith.addf %599, %600 : vector<32x128xf32>
    %602 = vector.broadcast %cst : f32 to vector<32x128xf32>
    %603 = arith.maximumf %601, %602 : vector<32x128xf32>
    %604 = vector.broadcast %173 : f32 to vector<32x128xf32>
    %605 = arith.mulf %604, %603 : vector<32x128xf32>
    %606 = arith.addf %570, %605 : vector<32x128xf32>
    %607 = vector.broadcast %46 : f32 to vector<32x128xf32>
    %608 = arith.mulf %607, %196 : vector<32x128xf32>
    %609 = vector.broadcast %110 : f32 to vector<32x128xf32>
    %610 = arith.addf %608, %609 : vector<32x128xf32>
    %611 = vector.broadcast %cst : f32 to vector<32x128xf32>
    %612 = arith.maximumf %610, %611 : vector<32x128xf32>
    %613 = vector.broadcast %174 : f32 to vector<32x128xf32>
    %614 = arith.mulf %613, %612 : vector<32x128xf32>
    %615 = arith.addf %579, %614 : vector<32x128xf32>
    %616 = vector.broadcast %47 : f32 to vector<32x128xf32>
    %617 = arith.mulf %616, %196 : vector<32x128xf32>
    %618 = vector.broadcast %111 : f32 to vector<32x128xf32>
    %619 = arith.addf %617, %618 : vector<32x128xf32>
    %620 = vector.broadcast %cst : f32 to vector<32x128xf32>
    %621 = arith.maximumf %619, %620 : vector<32x128xf32>
    %622 = vector.broadcast %175 : f32 to vector<32x128xf32>
    %623 = arith.mulf %622, %621 : vector<32x128xf32>
    %624 = arith.addf %588, %623 : vector<32x128xf32>
    %625 = vector.broadcast %48 : f32 to vector<32x128xf32>
    %626 = arith.mulf %625, %196 : vector<32x128xf32>
    %627 = vector.broadcast %112 : f32 to vector<32x128xf32>
    %628 = arith.addf %626, %627 : vector<32x128xf32>
    %629 = vector.broadcast %cst : f32 to vector<32x128xf32>
    %630 = arith.maximumf %628, %629 : vector<32x128xf32>
    %631 = vector.broadcast %176 : f32 to vector<32x128xf32>
    %632 = arith.mulf %631, %630 : vector<32x128xf32>
    %633 = arith.addf %597, %632 : vector<32x128xf32>
    %634 = vector.broadcast %49 : f32 to vector<32x128xf32>
    %635 = arith.mulf %634, %196 : vector<32x128xf32>
    %636 = vector.broadcast %113 : f32 to vector<32x128xf32>
    %637 = arith.addf %635, %636 : vector<32x128xf32>
    %638 = vector.broadcast %cst : f32 to vector<32x128xf32>
    %639 = arith.maximumf %637, %638 : vector<32x128xf32>
    %640 = vector.broadcast %177 : f32 to vector<32x128xf32>
    %641 = arith.mulf %640, %639 : vector<32x128xf32>
    %642 = arith.addf %606, %641 : vector<32x128xf32>
    %643 = vector.broadcast %50 : f32 to vector<32x128xf32>
    %644 = arith.mulf %643, %196 : vector<32x128xf32>
    %645 = vector.broadcast %114 : f32 to vector<32x128xf32>
    %646 = arith.addf %644, %645 : vector<32x128xf32>
    %647 = vector.broadcast %cst : f32 to vector<32x128xf32>
    %648 = arith.maximumf %646, %647 : vector<32x128xf32>
    %649 = vector.broadcast %178 : f32 to vector<32x128xf32>
    %650 = arith.mulf %649, %648 : vector<32x128xf32>
    %651 = arith.addf %615, %650 : vector<32x128xf32>
    %652 = vector.broadcast %51 : f32 to vector<32x128xf32>
    %653 = arith.mulf %652, %196 : vector<32x128xf32>
    %654 = vector.broadcast %115 : f32 to vector<32x128xf32>
    %655 = arith.addf %653, %654 : vector<32x128xf32>
    %656 = vector.broadcast %cst : f32 to vector<32x128xf32>
    %657 = arith.maximumf %655, %656 : vector<32x128xf32>
    %658 = vector.broadcast %179 : f32 to vector<32x128xf32>
    %659 = arith.mulf %658, %657 : vector<32x128xf32>
    %660 = arith.addf %624, %659 : vector<32x128xf32>
    %661 = vector.broadcast %52 : f32 to vector<32x128xf32>
    %662 = arith.mulf %661, %196 : vector<32x128xf32>
    %663 = vector.broadcast %116 : f32 to vector<32x128xf32>
    %664 = arith.addf %662, %663 : vector<32x128xf32>
    %665 = vector.broadcast %cst : f32 to vector<32x128xf32>
    %666 = arith.maximumf %664, %665 : vector<32x128xf32>
    %667 = vector.broadcast %180 : f32 to vector<32x128xf32>
    %668 = arith.mulf %667, %666 : vector<32x128xf32>
    %669 = arith.addf %633, %668 : vector<32x128xf32>
    %670 = vector.broadcast %53 : f32 to vector<32x128xf32>
    %671 = arith.mulf %670, %196 : vector<32x128xf32>
    %672 = vector.broadcast %117 : f32 to vector<32x128xf32>
    %673 = arith.addf %671, %672 : vector<32x128xf32>
    %674 = vector.broadcast %cst : f32 to vector<32x128xf32>
    %675 = arith.maximumf %673, %674 : vector<32x128xf32>
    %676 = vector.broadcast %181 : f32 to vector<32x128xf32>
    %677 = arith.mulf %676, %675 : vector<32x128xf32>
    %678 = arith.addf %642, %677 : vector<32x128xf32>
    %679 = vector.broadcast %54 : f32 to vector<32x128xf32>
    %680 = arith.mulf %679, %196 : vector<32x128xf32>
    %681 = vector.broadcast %118 : f32 to vector<32x128xf32>
    %682 = arith.addf %680, %681 : vector<32x128xf32>
    %683 = vector.broadcast %cst : f32 to vector<32x128xf32>
    %684 = arith.maximumf %682, %683 : vector<32x128xf32>
    %685 = vector.broadcast %182 : f32 to vector<32x128xf32>
    %686 = arith.mulf %685, %684 : vector<32x128xf32>
    %687 = arith.addf %651, %686 : vector<32x128xf32>
    %688 = vector.broadcast %55 : f32 to vector<32x128xf32>
    %689 = arith.mulf %688, %196 : vector<32x128xf32>
    %690 = vector.broadcast %119 : f32 to vector<32x128xf32>
    %691 = arith.addf %689, %690 : vector<32x128xf32>
    %692 = vector.broadcast %cst : f32 to vector<32x128xf32>
    %693 = arith.maximumf %691, %692 : vector<32x128xf32>
    %694 = vector.broadcast %183 : f32 to vector<32x128xf32>
    %695 = arith.mulf %694, %693 : vector<32x128xf32>
    %696 = arith.addf %660, %695 : vector<32x128xf32>
    %697 = vector.broadcast %56 : f32 to vector<32x128xf32>
    %698 = arith.mulf %697, %196 : vector<32x128xf32>
    %699 = vector.broadcast %120 : f32 to vector<32x128xf32>
    %700 = arith.addf %698, %699 : vector<32x128xf32>
    %701 = vector.broadcast %cst : f32 to vector<32x128xf32>
    %702 = arith.maximumf %700, %701 : vector<32x128xf32>
    %703 = vector.broadcast %184 : f32 to vector<32x128xf32>
    %704 = arith.mulf %703, %702 : vector<32x128xf32>
    %705 = arith.addf %669, %704 : vector<32x128xf32>
    %706 = vector.broadcast %57 : f32 to vector<32x128xf32>
    %707 = arith.mulf %706, %196 : vector<32x128xf32>
    %708 = vector.broadcast %121 : f32 to vector<32x128xf32>
    %709 = arith.addf %707, %708 : vector<32x128xf32>
    %710 = vector.broadcast %cst : f32 to vector<32x128xf32>
    %711 = arith.maximumf %709, %710 : vector<32x128xf32>
    %712 = vector.broadcast %185 : f32 to vector<32x128xf32>
    %713 = arith.mulf %712, %711 : vector<32x128xf32>
    %714 = arith.addf %678, %713 : vector<32x128xf32>
    %715 = vector.broadcast %58 : f32 to vector<32x128xf32>
    %716 = arith.mulf %715, %196 : vector<32x128xf32>
    %717 = vector.broadcast %122 : f32 to vector<32x128xf32>
    %718 = arith.addf %716, %717 : vector<32x128xf32>
    %719 = vector.broadcast %cst : f32 to vector<32x128xf32>
    %720 = arith.maximumf %718, %719 : vector<32x128xf32>
    %721 = vector.broadcast %186 : f32 to vector<32x128xf32>
    %722 = arith.mulf %721, %720 : vector<32x128xf32>
    %723 = arith.addf %687, %722 : vector<32x128xf32>
    %724 = vector.broadcast %59 : f32 to vector<32x128xf32>
    %725 = arith.mulf %724, %196 : vector<32x128xf32>
    %726 = vector.broadcast %123 : f32 to vector<32x128xf32>
    %727 = arith.addf %725, %726 : vector<32x128xf32>
    %728 = vector.broadcast %cst : f32 to vector<32x128xf32>
    %729 = arith.maximumf %727, %728 : vector<32x128xf32>
    %730 = vector.broadcast %187 : f32 to vector<32x128xf32>
    %731 = arith.mulf %730, %729 : vector<32x128xf32>
    %732 = arith.addf %696, %731 : vector<32x128xf32>
    %733 = vector.broadcast %60 : f32 to vector<32x128xf32>
    %734 = arith.mulf %733, %196 : vector<32x128xf32>
    %735 = vector.broadcast %124 : f32 to vector<32x128xf32>
    %736 = arith.addf %734, %735 : vector<32x128xf32>
    %737 = vector.broadcast %cst : f32 to vector<32x128xf32>
    %738 = arith.maximumf %736, %737 : vector<32x128xf32>
    %739 = vector.broadcast %188 : f32 to vector<32x128xf32>
    %740 = arith.mulf %739, %738 : vector<32x128xf32>
    %741 = arith.addf %705, %740 : vector<32x128xf32>
    %742 = vector.broadcast %61 : f32 to vector<32x128xf32>
    %743 = arith.mulf %742, %196 : vector<32x128xf32>
    %744 = vector.broadcast %125 : f32 to vector<32x128xf32>
    %745 = arith.addf %743, %744 : vector<32x128xf32>
    %746 = vector.broadcast %cst : f32 to vector<32x128xf32>
    %747 = arith.maximumf %745, %746 : vector<32x128xf32>
    %748 = vector.broadcast %189 : f32 to vector<32x128xf32>
    %749 = arith.mulf %748, %747 : vector<32x128xf32>
    %750 = arith.addf %714, %749 : vector<32x128xf32>
    %751 = vector.broadcast %62 : f32 to vector<32x128xf32>
    %752 = arith.mulf %751, %196 : vector<32x128xf32>
    %753 = vector.broadcast %126 : f32 to vector<32x128xf32>
    %754 = arith.addf %752, %753 : vector<32x128xf32>
    %755 = vector.broadcast %cst : f32 to vector<32x128xf32>
    %756 = arith.maximumf %754, %755 : vector<32x128xf32>
    %757 = vector.broadcast %190 : f32 to vector<32x128xf32>
    %758 = arith.mulf %757, %756 : vector<32x128xf32>
    %759 = arith.addf %723, %758 : vector<32x128xf32>
    %760 = vector.broadcast %63 : f32 to vector<32x128xf32>
    %761 = arith.mulf %760, %196 : vector<32x128xf32>
    %762 = vector.broadcast %127 : f32 to vector<32x128xf32>
    %763 = arith.addf %761, %762 : vector<32x128xf32>
    %764 = vector.broadcast %cst : f32 to vector<32x128xf32>
    %765 = arith.maximumf %763, %764 : vector<32x128xf32>
    %766 = vector.broadcast %191 : f32 to vector<32x128xf32>
    %767 = arith.mulf %766, %765 : vector<32x128xf32>
    %768 = arith.addf %732, %767 : vector<32x128xf32>
    %769 = arith.addf %741, %750 : vector<32x128xf32>
    %770 = arith.addf %759, %768 : vector<32x128xf32>
    %771 = arith.addf %769, %770 : vector<32x128xf32>
    %772 = vector.broadcast %192 : f32 to vector<32x128xf32>
    %773 = arith.addf %771, %772 : vector<32x128xf32>
    %774 = arith.index_cast %194 : i32 to index
    %c0_130 = arith.constant 0 : index
    %775 = vector.load %arg6[%774, %c0_130] : memref<32x128xf32, #tpu.memory_space<vmem>>, vector<32x128xf32>
    tpu.vector_store %arg6[%774, %c0_130], %773 {strides = array<i32>} : memref<32x128xf32, #tpu.memory_space<vmem>>, vector<32x128xf32>,
    %c1_i32 = arith.constant 1 : i32
    return
  }
  func.func @transform_0(%arg0: i32) -> (i32, i32) {
    %c0_i32 = arith.constant 0 : i32
    %c0_i32_0 = arith.constant 0 : i32
    return %arg0, %c0_i32 : i32, i32
  }
  func.func @transform_1(%arg0: i32) -> i32 {
    %c0_i32 = arith.constant 0 : i32
    %c0_i32_0 = arith.constant 0 : i32
    return %c0_i32 : i32
  }
  func.func @transform_2(%arg0: i32) -> i32 {
    %c0_i32 = arith.constant 0 : i32
    %c0_i32_0 = arith.constant 0 : i32
    return %c0_i32 : i32
  }
  func.func @transform_3(%arg0: i32) -> i32 {
    %c0_i32 = arith.constant 0 : i32
    %c0_i32_0 = arith.constant 0 : i32
    return %c0_i32 : i32
  }
  func.func @transform_4(%arg0: i32) -> i32 {
    %c0_i32 = arith.constant 0 : i32
    %c0_i32_0 = arith.constant 0 : i32
    return %c0_i32 : i32
  }
  func.func @transform_5(%arg0: i32) -> (i32, i32) {
    %c0_i32 = arith.constant 0 : i32
    %c0_i32_0 = arith.constant 0 : i32
    return %arg0, %c0_i32 : i32, i32
  }
}

</mosaic_0001>

<bundles_post_ra>
// kernel: tpu_custom_call.1
= control target key start
LH: loop header
LB: loop body
LE: loop exit
PB: predicated region body
PF: predicated region fallthrough
CT: control target
= control target key end

     0   :  { %11 = vsyncpa [#allocation4], 0  ;;  %s4157_s0 = inlined_call_operand.hbm [shape: f32[32,128], index: 0, kind: input, shape index: {}]   ;;  %s4158_s1 = inlined_call_operand.vmem [shape: f32[64], index: 1, kind: input, shape index: {}]   ;;  %s4159_s2 = inlined_call_operand.vmem [shape: f32[64], index: 2, kind: input, shape index: {}]   ;;  %s4160_s3 = inlined_call_operand.vmem [shape: f32[64], index: 3, kind: input, shape index: {}]   ;;  %s4161_s4 = inlined_call_operand.<no memory space> [shape: f32[1], index: 4, kind: input, shape index: {}]   ;;  %s4162_s5 = inlined_call_operand.hbm [shape: f32[32,128], index: 5, kind: output, shape index: {}]  }
   0x1   :  { %12 = vsyncpa [#allocation6], 0 }
   0x2   :  { %13 = vsyncpa [#allocation9], 0  ;;  %s43_s20 = sshll.u32 %s4159_s2, 4  ;;  %s44_s20 = int_to_ptr.vmem [resolvable:$true] %s43_s20 }
   0x3   :  { %14 = vsyncpa [#allocation5], 0  ;;  %s1969_s21 = scalar_lea.vmem %s44_s20, 16  ;;  %p1974_p1 = scmp.lt.s32.totalorder %s44_s20, %s44_s20 }
   0x4   :  { %p1970_p0 = scmp.ne.s32.totalorder %s44_s20, %s1969_s21  ;;  %p1975_p2 = scmp.lt.s32.totalorder %s1969_s21, %s1969_s21 }
   0x6   :  { %p1976_p3 = por %p1975_p2, %p1974_p1 }
   0x8   :  { %p1977_p4 = pnand %p1976_p3, %p1970_p0 }
   0xa   :  { %1980 = shalt.err (!%p1977_p4)
}
   0xb   :  { %s2057_s22 = smov [#allocation8]   ;;  %s2058_s23 = smov [#allocation3]  }
   0xc   :  { %46 = dma.vmem_to_smem %s44_s20, 16, %s2057_s22, [#allocation9]  }
   0xd   :  { %s20_s24 = sshll.u32 %s2058_s23, 4  ;;  %s1981_s27 = scalar_lea.hbm %s4157_s0, 512  ;;  %s21_s24 = int_to_ptr.vmem [resolvable:$true] %s20_s24 }
   0xe   :  { %p1982_p5 = scmp.ne.s32.totalorder %s4157_s0, %s1981_s27  ;;  %p1985_p6 = scmp.lt.u32.totalorder %s1981_s27, %s4157_s0 }
  0x10   :  { %p1987_p7 = pnand %p1985_p6, %p1982_p5 }
  0x12   :  { %1990 = shalt.err (!%p1987_p7)
}
  0x13   :  { %s1991_s6 = scalar_lea.vmem %s21_s24, 512  ;;  %p1996_p9 = scmp.lt.s32.totalorder %s21_s24, %s21_s24 }
  0x14   :  { %p1992_p8 = scmp.ne.s32.totalorder %s21_s24, %s1991_s6  ;;  %p1997_p10 = scmp.lt.s32.totalorder %s1991_s6, %s1991_s6 }
  0x16   :  { %p1998_p11 = por %p1997_p10, %p1996_p9 }
  0x18   :  { %p1999_p12 = pnand %p1998_p11, %p1992_p8 }
  0x1a   :  { %2002 = shalt.err (!%p1999_p12)
}
  0x1b   :  { %s2059_s7 = smov 128   ;;  %s2060_s8 = smov 8  }
  0x1c   :  { %26 = dma.hbm_to_vmem [thread:$0]  %s4157_s0, 512, %s21_s24, [#allocation4], %s2059_s7, %s2059_s7, %s2060_s8  }
  0x1d   :  { %s33_s13 = sshll.u32 %s4158_s1, 4  ;;  %s53_s16 = sshll.u32 %s4160_s3, 4  ;;  %s34_s13 = int_to_ptr.vmem [resolvable:$true] %s33_s13  ;;  %s54_s16 = int_to_ptr.vmem [resolvable:$true] %s53_s16 }
  0x1e   :  { %s2003_s17 = scalar_lea.vmem %s34_s13, 16  ;;  %p2008_p0 = scmp.lt.s32.totalorder %s34_s13, %s34_s13 }
  0x1f   :  { %p2004_p13 = scmp.ne.s32.totalorder %s34_s13, %s2003_s17  ;;  %p2009_p1 = scmp.lt.s32.totalorder %s2003_s17, %s2003_s17 }
  0x21   :  { %p2010_p2 = por %p2009_p1, %p2008_p0 }
  0x23   :  { %p2011_p3 = pnand %p2010_p2, %p2004_p13 }
  0x25   :  { %2014 = shalt.err (!%p2011_p3)
}
  0x26   :  { %s2061_s18 = smov [#allocation7]   ;;  %s2015_s0 = scalar_lea.vmem %s54_s16, 16 }
  0x27   :  { %36 = dma.vmem_to_smem %s34_s13, 16, %s2061_s18, [#allocation6]  }
  0x28   :  { %p2016_p4 = scmp.ne.s32.totalorder %s54_s16, %s2015_s0  ;;  %p2020_p5 = scmp.lt.s32.totalorder %s54_s16, %s54_s16 }
  0x29   :  { %p2021_p6 = scmp.lt.s32.totalorder %s2015_s0, %s2015_s0 }
  0x2b   :  { %p2022_p7 = por %p2021_p6, %p2020_p5 }
  0x2d   :  { %p2023_p8 = pnand %p2022_p7, %p2016_p4 }
  0x2f   :  { %2026 = shalt.err (!%p2023_p8)
}
  0x30   :  { %s2062_s1 = smov [#allocation10]  }
  0x31   :  { %56 = dma.vmem_to_smem %s54_s16, 16, %s2062_s1, [#allocation9]  }
  0x32   :  { %2049 = dma.done.wait [#allocation4], 512  }
  0x33   :  { %2050 = vsyncadd [#allocation4], 4294966784 }
  0x34   :  { %2051 = dma.done.wait [#allocation6], 16  }
  0x35   :  { %2052 = vsyncadd [#allocation6], 4294967280 }
  0x36   :  { %2053 = dma.done.wait [#allocation9], 32  }
  0x37   :  { %2054 = vsyncadd [#allocation9], 4294967264 }
  0x38   :  { %71 = sfence }
  0x39   :  { %s72_s3 = sld [smem:[#allocation7]]  ;;  %s1765_s19 = sld [smem:[#allocation7 + $0x1]]  ;;  %v2120_v0 = vld [vmem:[#allocation3] sm:$0xff]  ;;  %v2124_v2 = vld [vmem:[#allocation3 + $0x8] sm:$0xff]  ;;  %v2126_v3 = vld [vmem:[#allocation3 + $0x10] sm:$0xff] }
  0x3a   :  { %s1766_s20 = sld [smem:[#allocation7 + $0x2]]  ;;  %s1767_s21 = sld [smem:[#allocation7 + $0x3]]  ;;  %v2128_v4 = vld [vmem:[#allocation3 + $0x18] sm:$0xff] }
  0x3b   :  { %s1768_s22 = sld [smem:[#allocation7 + $0x4]]  ;;  %s1769_s23 = sld [smem:[#allocation7 + $0x5]] }
  0x3c   :  { %s2118_s24 = sld [smem:[#allocation7 + $0x6]]  ;;  %s2122_s25 = sld [smem:[#allocation7 + $0x7]] }
  0x3d   :  { %s2130_s26 = sld [smem:[#allocation7 + $0x8]]  ;;  %s2132_s27 = sld [smem:[#allocation7 + $0x9]] }
  0x3e   :  { %s2146_s28 = sld [smem:[#allocation7 + $0xa]]  ;;  %s2157_s2 = sld [smem:[#allocation7 + $0xb]] }
  0x3f   :  { %v269_v1 = vstv %s72_s3  ;;  %v288_v5 = vstv %s1765_s19  ;;  %s2168_s29 = sld [smem:[#allocation7 + $0xc]]  ;;  %s2182_s30 = sld [smem:[#allocation7 + $0xd]] }
  0x40   :  { %v2135_v6 = vmul.f32 %v269_v1, %v2120_v0  ;;  %v307_v7 = vstv %s1766_s20  ;;  %v2138_v8 = vmul.f32 %v269_v1, %v2124_v2  ;;  %v2141_v9 = vmul.f32 %v269_v1, %v2126_v3  ;;  %s2204_s6 = sld [smem:[#allocation7 + $0xe]]  ;;  %s2216_s9 = sld [smem:[#allocation7 + $0xf]] }
  0x41   :  { %v2144_v10 = vmul.f32 %v269_v1, %v2128_v4  ;;  %v326_v11 = vstv %s1767_s21  ;;  %v2149_v12 = vmul.f32 %v288_v5, %v2120_v0  ;;  %v2152_v13 = vmul.f32 %v288_v5, %v2124_v2  ;;  %s2228_s10 = sld [smem:[#allocation7 + $0x10]]  ;;  %s2242_s11 = sld [smem:[#allocation7 + $0x11]] }
  0x42   :  { %v2155_v14 = vmul.f32 %v288_v5, %v2126_v3  ;;  %v345_v15 = vstv %s1768_s22  ;;  %v2160_v16 = vmul.f32 %v288_v5, %v2128_v4  ;;  %v2163_v17 = vmul.f32 %v307_v7, %v2120_v0  ;;  %s2264_s12 = sld [smem:[#allocation7 + $0x12]]  ;;  %s2276_s13 = sld [smem:[#allocation7 + $0x13]] }
  0x43   :  { %v2166_v18 = vmul.f32 %v307_v7, %v2124_v2  ;;  %v368_v19 = vstv %s1769_s23  ;;  %v2171_v20 = vmul.f32 %v307_v7, %v2126_v3  ;;  %v2174_v21 = vmul.f32 %v307_v7, %v2128_v4  ;;  %s2288_s14 = sld [smem:[#allocation7 + $0x14]]  ;;  %s2302_s15 = sld [smem:[#allocation7 + $0x15]] }
  0x44   :  { %v2177_v22 = vmul.f32 %v326_v11, %v2120_v0  ;;  %v2180_v23 = vmul.f32 %v326_v11, %v2124_v2  ;;  %v2185_v24 = vmul.f32 %v326_v11, %v2126_v3  ;;  %v2188_v25 = vmul.f32 %v326_v11, %v2128_v4  ;;  %s2324_s16 = sld [smem:[#allocation7 + $0x16]]  ;;  %s2346_s17 = sld [smem:[#allocation7 + $0x17]] }
  0x45   :  { %v2191_v26 = vmul.f32 %v345_v15, %v2120_v0  ;;  %v391_v27 = vstv %s2118_s24  ;;  %v2195_v28 = vmul.f32 %v345_v15, %v2124_v2  ;;  %v2198_v29 = vmul.f32 %v345_v15, %v2126_v3  ;;  %s2360_s18 = sld [smem:[#allocation7 + $0x18]]  ;;  %s2362_s0 = sld [smem:[#allocation7 + $0x19]] }
  0x46   :  { %v2201_v30 = vmul.f32 %v345_v15, %v2128_v4  ;;  %v414_v31 = vstv %s2122_s25  ;;  %v2207_v32 = vmul.f32 %v368_v19, %v2120_v0  ;;  %v2210_v33 = vmul.f32 %v368_v19, %v2124_v2  ;;  %s136_s1 = sld [smem:[#allocation8]]  ;;  %s1828_s3 = sld [smem:[#allocation8 + $0x1]] }
  0x47   :  { %v2213_v34 = vmul.f32 %v368_v19, %v2126_v3  ;;  %v437_v35 = vstv %s2130_s26  ;;  %v2219_v36 = vmul.f32 %v368_v19, %v2128_v4  ;;  %v2222_v37 = vmul.f32 %v391_v27, %v2120_v0  ;;  %s2416_s19 = sld [smem:[#allocation8 + $0x2]]  ;;  %s2428_s20 = sld [smem:[#allocation8 + $0x3]] }
  0x48   :  { %v2225_v38 = vmul.f32 %v391_v27, %v2124_v2  ;;  %v460_v39 = vstv %s2132_s27  ;;  %v2231_v40 = vmul.f32 %v391_v27, %v2126_v3  ;;  %v2234_v41 = vmul.f32 %v391_v27, %v2128_v4  ;;  %s2462_s21 = sld [smem:[#allocation8 + $0x4]]  ;;  %s2470_s22 = sld [smem:[#allocation8 + $0x5]] }
  0x49   :  { %v2237_v42 = vmul.f32 %v414_v31, %v2120_v0  ;;  %v2240_v43 = vmul.f32 %v414_v31, %v2124_v2  ;;  %v2245_v44 = vmul.f32 %v414_v31, %v2126_v3  ;;  %v2248_v45 = vmul.f32 %v414_v31, %v2128_v4  ;;  %s2519_s23 = sld [smem:[#allocation8 + $0x6]]  ;;  %s2536_s24 = sld [smem:[#allocation8 + $0x7]] }
  0x4a   :  { %v2251_v46 = vmul.f32 %v437_v35, %v2120_v0  ;;  %v483_v47 = vstv %s2146_s28  ;;  %v2255_v48 = vmul.f32 %v437_v35, %v2124_v2  ;;  %v2258_v49 = vmul.f32 %v437_v35, %v2126_v3  ;;  %s2556_s25 = sld [smem:[#allocation8 + $0x8]]  ;;  %s2564_s26 = sld [smem:[#allocation8 + $0x9]] }
  0x4b   :  { %v2261_v50 = vmul.f32 %v437_v35, %v2128_v4  ;;  %v506_v51 = vstv %s2157_s2  ;;  %v2267_v52 = vmul.f32 %v460_v39, %v2120_v0  ;;  %v2270_v53 = vmul.f32 %v460_v39, %v2124_v2  ;;  %s2600_s27 = sld [smem:[#allocation8 + $0xa]]  ;;  %s2614_s28 = sld [smem:[#allocation8 + $0xb]] }
  0x4c   :  { %v2273_v54 = vmul.f32 %v460_v39, %v2126_v3  ;;  %v529_v55 = vstv %s2168_s29  ;;  %v2279_v56 = vmul.f32 %v460_v39, %v2128_v4  ;;  %v2282_v57 = vmul.f32 %v483_v47, %v2120_v0  ;;  %s2630_s2 = sld [smem:[#allocation8 + $0xc]]  ;;  %s2632_s29 = sld [smem:[#allocation8 + $0xd]] }
  0x4d   :  { %v2285_v58 = vmul.f32 %v483_v47, %v2124_v2  ;;  %v552_v59 = vstv %s2182_s30  ;;  %v2291_v60 = vmul.f32 %v483_v47, %v2126_v3  ;;  %v2294_v61 = vmul.f32 %v483_v47, %v2128_v4  ;;  %s2682_s30 = sld [smem:[#allocation8 + $0xe]] }
  0x4e   :  { %v2297_v62 = vmul.f32 %v506_v51, %v2120_v0  ;;  %v2300_v63 = vmul.f32 %v506_v51, %v2124_v2  ;;  %v2305_v1 = vmul.f32 %v506_v51, %v2126_v3  ;;  %v2308_v5 = vmul.f32 %v506_v51, %v2128_v4 }
  0x4f   :  { %v2311_v7 = vmul.f32 %v529_v55, %v2120_v0  ;;  %v575_v11 = vstv %s2204_s6  ;;  %v2315_v15 = vmul.f32 %v529_v55, %v2124_v2  ;;  %v2318_v19 = vmul.f32 %v529_v55, %v2126_v3  ;;  %s2690_s6 = sld [smem:[#allocation8 + $0xf]] }
  0x50   :  { %v2321_v27 = vmul.f32 %v529_v55, %v2128_v4  ;;  %v598_v31 = vstv %s2216_s9  ;;  %v2327_v35 = vmul.f32 %v552_v59, %v2120_v0  ;;  %v2330_v39 = vmul.f32 %v552_v59, %v2124_v2  ;;  %s200_s9 = sld [smem:[#allocation10]] }
  0x51   :  { %4177 = vst [vmem:[#allocation16_spill] sm:$0xff] %v2311_v7  ;;  %4178 = vst [vmem:[#allocation17_spill] sm:$0xff] %v2315_v15  ;;  %v2333_v47 = vmul.f32 %v552_v59, %v2126_v3  ;;  %v621_v51 = vstv %s2228_s10  ;;  %v2337_v15 = vmul.f32 %v552_v59, %v2128_v4  ;;  %v2340_v55 = vmul.f32 %v575_v11, %v2120_v0  ;;  %s2698_s10 = sld [smem:[#allocation10 + $0x1]] }
  0x52   :  { %4179 = vst [vmem:[#allocation18_spill] sm:$0xff] %v2318_v19  ;;  %4180 = vst [vmem:[#allocation19_spill] sm:$0xff] %v2321_v27  ;;  %v2343_v27 = vmul.f32 %v575_v11, %v2124_v2  ;;  %v644_v19 = vstv %s2242_s11  ;;  %v2355_v59 = vmul.f32 %v598_v31, %v2120_v0  ;;  %s2708_s11 = sld [smem:[#allocation10 + $0x2]] }
  0x53   :  { %4181 = vst [vmem:[#allocation20_spill] sm:$0xff] %v2327_v35  ;;  %4182 = vst [vmem:[#allocation21_spill] sm:$0xff] %v2330_v39  ;;  %v2349_v39 = vmul.f32 %v575_v11, %v2126_v3  ;;  %v690_v35 = vstv %s2276_s13  ;;  %s2730_s13 = sld [smem:[#allocation10 + $0x3]] }
  0x54   :  { %4183 = vst [vmem:[#allocation22_spill] sm:$0xff] %v2333_v47  ;;  %4184 = vst [vmem:[#allocation23_spill] sm:$0xff] %v2337_v15  ;;  %v2352_v47 = vmul.f32 %v575_v11, %v2128_v4  ;;  %v2358_v15 = vmul.f32 %v598_v31, %v2124_v2  ;;  %v2371_v11 = vmul.f32 %v621_v51, %v2120_v0 }
  0x55   :  { %4185 = vst [vmem:[#allocation24_spill] sm:$0xff] %v2340_v55  ;;  %4186 = vst [vmem:[#allocation25_spill] sm:$0xff] %v2343_v27  ;;  %v2365_v27 = vmul.f32 %v598_v31, %v2126_v3  ;;  %v2368_v55 = vmul.f32 %v598_v31, %v2128_v4  ;;  %v2388_v31 = vmul.f32 %v644_v19, %v2124_v2 }
  0x56   :  { %4187 = vst [vmem:[#allocation26_spill] sm:$0xff] %v2349_v39  ;;  %4188 = vst [vmem:[#allocation27_spill] sm:$0xff] %v2352_v47  ;;  %v667_v47 = vstv %s2264_s12  ;;  %v2381_v39 = vmul.f32 %v621_v51, %v2128_v4  ;;  %s2718_s12 = sld [smem:[#allocation10 + $0x4]] }
  0x57   :  { %4189 = vst [vmem:[#allocation28_spill] sm:$0xff] %v2355_v59  ;;  %4190 = vst [vmem:[#allocation29_spill] sm:$0xff] %v2358_v15  ;;  %v2375_v59 = vmul.f32 %v621_v51, %v2124_v2  ;;  %v2378_v15 = vmul.f32 %v621_v51, %v2126_v3  ;;  %v2398_v51 = vmul.f32 %v667_v47, %v2120_v0 }
  0x58   :  { %4191 = vst [vmem:[#allocation30_spill] sm:$0xff] %v2365_v27  ;;  %4192 = vst [vmem:[#allocation31_spill] sm:$0xff] %v2368_v55  ;;  %v2385_v27 = vmul.f32 %v644_v19, %v2120_v0  ;;  %v2391_v55 = vmul.f32 %v644_v19, %v2126_v3 }
  0x59   :  { %4193 = vst [vmem:[#allocation32_spill] sm:$0xff] %v2371_v11  ;;  %4194 = vst [vmem:[#allocation33_spill] sm:$0xff] %v2375_v59  ;;  %v713_v11 = vstv %s2288_s14  ;;  %v2395_v59 = vmul.f32 %v644_v19, %v2128_v4  ;;  %v2414_v19 = vmul.f32 %v690_v35, %v2124_v2  ;;  %s2744_s14 = sld [smem:[#allocation10 + $0x5]] }
  0x5a   :  { %4195 = vst [vmem:[#allocation34_spill] sm:$0xff] %v2378_v15  ;;  %4196 = vst [vmem:[#allocation35_spill] sm:$0xff] %v2381_v39  ;;  %v2401_v39 = vmul.f32 %v667_v47, %v2124_v2  ;;  %v2405_v15 = vmul.f32 %v667_v47, %v2126_v3 }
  0x5b   :  { %4197 = vst [vmem:[#allocation36_spill] sm:$0xff] %v2385_v27  ;;  %4198 = vst [vmem:[#allocation37_spill] sm:$0xff] %v2388_v31  ;;  %v736_v27 = vstv %s2302_s15  ;;  %v2408_v31 = vmul.f32 %v667_v47, %v2128_v4  ;;  %v2425_v47 = vmul.f32 %v713_v11, %v2120_v0  ;;  %s2767_s15 = sld [smem:[#allocation10 + $0x6]] }
  0x5c   :  { %4199 = vst [vmem:[#allocation38_spill] sm:$0xff] %v2391_v55  ;;  %4200 = vst [vmem:[#allocation39_spill] sm:$0xff] %v2395_v59  ;;  %v2411_v55 = vmul.f32 %v690_v35, %v2120_v0  ;;  %v782_v59 = vstv %s2346_s17  ;;  %s2784_s17 = sld [smem:[#allocation10 + $0x8]] }
  0x5d   :  { %4201 = vst [vmem:[#allocation40_spill] sm:$0xff] %v2398_v51  ;;  %4202 = vst [vmem:[#allocation41_spill] sm:$0xff] %v2401_v39  ;;  %v2419_v51 = vmul.f32 %v690_v35, %v2126_v3  ;;  %v2422_v39 = vmul.f32 %v690_v35, %v2128_v4  ;;  %v2443_v35 = vmul.f32 %v736_v27, %v2124_v2 }
  0x5e   :  { %4203 = vst [vmem:[#allocation42_spill] sm:$0xff] %v2405_v15  ;;  %4204 = vst [vmem:[#allocation43_spill] sm:$0xff] %v2408_v31  ;;  %v759_v31 = vstv %s2324_s16  ;;  %v2437_v15 = vmul.f32 %v713_v11, %v2128_v4  ;;  %s2769_s16 = sld [smem:[#allocation10 + $0x7]] }
  0x5f   :  { %4205 = vst [vmem:[#allocation44_spill] sm:$0xff] %v2411_v55  ;;  %4206 = vst [vmem:[#allocation45_spill] sm:$0xff] %v2414_v19  ;;  %v2431_v55 = vmul.f32 %v713_v11, %v2124_v2  ;;  %v2434_v19 = vmul.f32 %v713_v11, %v2126_v3  ;;  %v805_v11 = vstv %s2360_s18  ;;  %v2465_v7 = vmul.f32 %v759_v31, %v2126_v3  ;;  %s2807_s18 = sld [smem:[#allocation10 + $0x9]] }
  0x60   :  { %4207 = vst [vmem:[#allocation46_spill] sm:$0xff] %v2419_v51  ;;  %4208 = vst [vmem:[#allocation47_spill] sm:$0xff] %v2422_v39  ;;  %v2440_v51 = vmul.f32 %v736_v27, %v2120_v0  ;;  %v2449_v39 = vmul.f32 %v736_v27, %v2128_v4 }
  0x61   :  { %4209 = vst [vmem:[#allocation48_spill] sm:$0xff] %v2425_v47  ;;  %4210 = vst [vmem:[#allocation49_spill] sm:$0xff] %v2431_v55  ;;  %v2446_v47 = vmul.f32 %v736_v27, %v2126_v3  ;;  %v2453_v55 = vmul.f32 %v759_v31, %v2120_v0  ;;  %v2468_v27 = vmul.f32 %v759_v31, %v2128_v4 }
  0x62   :  { %4211 = vst [vmem:[#allocation50_spill] sm:$0xff] %v2434_v19  ;;  %4212 = vst [vmem:[#allocation51_spill] sm:$0xff] %v2437_v15  ;;  %v2456_v19 = vmul.f32 %v759_v31, %v2124_v2  ;;  %v2460_v15 = vstv %s2362_s0  ;;  %s2839_s0 = sld [smem:[#allocation10 + $0xa]] }
  0x63   :  { %4213 = vst [vmem:[#allocation52_spill] sm:$0xff] %v2440_v51  ;;  %4214 = vst [vmem:[#allocation53_spill] sm:$0xff] %v2443_v35  ;;  %v274_v51 = vstv %s136_s1  ;;  %v293_v35 = vstv %s1828_s3  ;;  %s2841_s1 = sld [smem:[#allocation10 + $0xb]]  ;;  %s2860_s3 = sld [smem:[#allocation10 + $0xc]] }
  0x64   :  { %4215 = vst [vmem:[#allocation54_spill] sm:$0xff] %v2446_v47  ;;  %4216 = vst [vmem:[#allocation55_spill] sm:$0xff] %v2449_v39  ;;  %v2479_v39 = vmul.f32 %v782_v59, %v2126_v3  ;;  %v2482_v47 = vmul.f32 %v782_v59, %v2128_v4  ;;  %v2488_v31 = vadd.f32 %v274_v51, %v2138_v8 }
  0x65   :  { %4217 = vst [vmem:[#allocation56_spill] sm:$0xff] %v2453_v55  ;;  %4218 = vst [vmem:[#allocation57_spill] sm:$0xff] %v2456_v19  ;;  %v2473_v55 = vmul.f32 %v782_v59, %v2120_v0  ;;  %v2476_v19 = vmul.f32 %v782_v59, %v2124_v2  ;;  %v2503_v59 = vmul.f32 %v805_v11, %v2124_v2 }
  0x66   :  { %4219 = vst [vmem:[#allocation58_spill] sm:$0xff] %v2460_v15  ;;  %4220 = vst [vmem:[#allocation59_spill] sm:$0xff] %v2465_v7  ;;  %v2485_v7 = vadd.f32 %v274_v51, %v2135_v6  ;;  %v2506_v6 = vmul.f32 %v805_v11, %v2126_v3  ;;  %v2509_v8 = vadd.f32 %v293_v35, %v2152_v13 }
  0x67   :  { %4221 = vst [vmem:[#allocation60_spill] sm:$0xff] %v2468_v27  ;;  %4222 = vst [vmem:[#allocation61_spill] sm:$0xff] %v2473_v55  ;;  %v2491_v27 = vadd.f32 %v274_v51, %v2141_v9  ;;  %v2494_v55 = vadd.f32 %v274_v51, %v2144_v10  ;;  %v312_v9 = vstv %s2416_s19  ;;  %v2517_v10 = vmul.f32 %v2460_v15, %v2120_v0  ;;  %s2863_s19 = sld [smem:[#allocation10 + $0xd]] }
  0x68   :  { %4223 = vst [vmem:[#allocation62_spill] sm:$0xff] %v2476_v19  ;;  %4224 = vst [vmem:[#allocation63_spill] sm:$0xff] %v2479_v39  ;;  %v2497_v19 = vadd.f32 %v293_v35, %v2149_v12  ;;  %v2500_v39 = vmul.f32 %v805_v11, %v2120_v0  ;;  %v2522_v12 = vadd.f32 %v293_v35, %v2155_v14  ;;  %v331_v51 = vstv %s2428_s20  ;;  %s2887_s20 = sld [smem:[#allocation10 + $0xe]] }
  0x69   :  { %4225 = vst [vmem:[#allocation64_spill] sm:$0xff] %v2482_v47  ;;  %4227 = vst [vmem:[#allocation66_spill] sm:$0xff] %v2503_v59  ;;  %v2513_v47 = vmul.f32 %v805_v11, %v2128_v4  ;;  %v2525_v3 = vadd.f32 %v293_v35, %v2160_v16  ;;  %v2530_v13 = vmul.f32 %v2460_v15, %v2124_v2  ;;  %v350_v0 = vstv %s2462_s21  ;;  %v4244_v59 = vld [vmem:[#allocation21_spill] sm:$0xff]  ;;  %s2903_s21 = sld [smem:[#allocation8 + $0x10]] }
  0x6a   :  { %4226 = vst [vmem:[#allocation65_spill] sm:$0xff] %v2500_v39  ;;  %4228 = vst [vmem:[#allocation67_spill] sm:$0xff] %v2506_v6  ;;  %v2540_v16 = vadd.f32 %v312_v9, %v2163_v17  ;;  %v2543_v35 = vadd.f32 %v312_v9, %v2166_v18  ;;  %v2546_v2 = vadd.f32 %v312_v9, %v2171_v20  ;;  %v373_v20 = vstv %s2470_s22  ;;  %v4248_v39 = vld [vmem:[#allocation23_spill] sm:$0xff]  ;;  %s2917_s22 = sld [smem:[#allocation10 + $0xf]] }
  0x6b   :  { %4229 = vst [vmem:[#allocation68_spill] sm:$0xff] %v2513_v47  ;;  %4230 = vst [vmem:[#allocation69_spill] sm:$0xff] %v2517_v10  ;;  %v2550_v4 = vadd.f32 %v312_v9, %v2174_v21  ;;  %v2553_v10 = vadd.f32 %v331_v51, %v2177_v22  ;;  %v2561_v18 = vadd.f32 %v331_v51, %v2180_v23  ;;  %v4240_v47 = vld [vmem:[#allocation19_spill] sm:$0xff] }
  0x6c   :  { %4231 = vst [vmem:[#allocation70_spill] sm:$0xff] %v2530_v13  ;;  %v2567_v21 = vadd.f32 %v331_v51, %v2185_v24  ;;  %v2570_v22 = vadd.f32 %v331_v51, %v2188_v25  ;;  %v2573_v9 = vadd.f32 %v350_v0, %v2191_v26  ;;  %v2576_v17 = vadd.f32 %v350_v0, %v2195_v28 }
  0x6d   :  { %v2582_v13 = vadd.f32 %v350_v0, %v2198_v29  ;;  %v2587_v26 = vadd.f32 %v350_v0, %v2201_v30  ;;  %v2590_v28 = vadd.f32 %v373_v20, %v2207_v32  ;;  %v2594_v23 = vadd.f32 %v373_v20, %v2210_v33 }
  0x6e   :  { %v2597_v11 = vadd.f32 %v373_v20, %v2213_v34  ;;  %v396_v29 = vstv %s2519_s23  ;;  %v2608_v33 = vadd.f32 %v373_v20, %v2219_v36  ;;  %v419_v25 = vstv %s2536_s24  ;;  %s2935_s23 = sld [smem:[#allocation10 + $0x10]]  ;;  %s2946_s24 = sld [smem:[#allocation8 + $0x11]] }
  0x6f   :  { %v2611_v34 = vadd.f32 %v396_v29, %v2222_v37  ;;  %v2619_v0 = vadd.f32 %v396_v29, %v2225_v38  ;;  %v2622_v32 = vadd.f32 %v396_v29, %v2231_v40  ;;  %v2627_v37 = vadd.f32 %v396_v29, %v2234_v41 }
  0x70   :  { %v442_v51 = vstv %s2556_s25  ;;  %v2635_v30 = vadd.f32 %v419_v25, %v2237_v42  ;;  %v2638_v38 = vadd.f32 %v419_v25, %v2240_v43  ;;  %v2641_v40 = vadd.f32 %v419_v25, %v2245_v44  ;;  %s2954_s25 = sld [smem:[#allocation8 + $0x12]] }
  0x71   :  { %v465_v36 = vstv %s2564_s26  ;;  %v2647_v29 = vadd.f32 %v419_v25, %v2248_v45  ;;  %v2650_v24 = vadd.f32 %v442_v51, %v2251_v46  ;;  %v2655_v14 = vadd.f32 %v442_v51, %v2255_v48  ;;  %v4234_v25 = vld [vmem:[#allocation16_spill] sm:$0xff]  ;;  %s2967_s26 = sld [smem:[#allocation10 + $0x11]] }
  0x72   :  { %v2658_v44 = vadd.f32 %v442_v51, %v2258_v49  ;;  %v2662_v41 = vadd.f32 %v442_v51, %v2261_v50  ;;  %v2665_v45 = vadd.f32 %v465_v36, %v2267_v52  ;;  %v2668_v46 = vadd.f32 %v465_v36, %v2270_v53 }
  0x73   :  { %v488_v49 = vstv %s2600_s27  ;;  %v2677_v50 = vadd.f32 %v465_v36, %v2273_v54  ;;  %v2680_v52 = vadd.f32 %v465_v36, %v2279_v56  ;;  %v511_v42 = vstv %s2614_s28  ;;  %s2985_s27 = sld [smem:[#allocation10 + $0x12]]  ;;  %s2991_s28 = sld [smem:[#allocation8 + $0x13]] }
  0x74   :  { %v2687_v43 = vadd.f32 %v488_v49, %v2282_v57  ;;  %v2696_v36 = vadd.f32 %v488_v49, %v2285_v58  ;;  %v2701_v51 = vadd.f32 %v488_v49, %v2291_v60  ;;  %v2704_v57 = vadd.f32 %v488_v49, %v2294_v61  ;;  %v4242_v60 = vld [vmem:[#allocation20_spill] sm:$0xff] }
  0x75   :  { %v534_v53 = vstv %s2630_s2  ;;  %v557_v48 = vstv %s2632_s29  ;;  %v2713_v58 = vadd.f32 %v511_v42, %v2297_v62  ;;  %v2716_v54 = vadd.f32 %v511_v42, %v2300_v63  ;;  %v4236_v62 = vld [vmem:[#allocation17_spill] sm:$0xff]  ;;  %v4238_v63 = vld [vmem:[#allocation18_spill] sm:$0xff]  ;;  %s2993_s2 = sld [smem:[#allocation8 + $0x14]]  ;;  %s3006_s29 = sld [smem:[#allocation10 + $0x13]] }
  0x76   :  { %4232 = vst [vmem:[#allocation71_spill] sm:$0xff] %v2687_v43  ;;  %v2722_v61 = vadd.f32 %v511_v42, %v2305_v1  ;;  %v2725_v49 = vadd.f32 %v511_v42, %v2308_v5  ;;  %v2728_v20 = vadd.f32 %v534_v53, %v4234_v25  ;;  %v2733_v56 = vadd.f32 %v534_v53, %v4236_v62 }
  0x77   :  { %4233 = vst [vmem:[#allocation72_spill] sm:$0xff] %v2713_v58  ;;  %v2736_v15 = vadd.f32 %v534_v53, %v4238_v63  ;;  %v2739_v6 = vadd.f32 %v534_v53, %v4240_v47  ;;  %v2742_v1 = vadd.f32 %v557_v48, %v4242_v60  ;;  %v2750_v62 = vadd.f32 %v557_v48, %v4244_v59  ;;  %v4246_v53 = vld [vmem:[#allocation22_spill] sm:$0xff] }
  0x78   :  { %4235 = vst [vmem:[#allocation16_spill] sm:$0xff] %v2728_v20  ;;  %4237 = vst [vmem:[#allocation17_spill] sm:$0xff] %v2733_v56  ;;  %v2755_v60 = vadd.f32 %v557_v48, %v4246_v53  ;;  %v2758_v43 = vadd.f32 %v557_v48, %v4248_v39  ;;  %v283_v42 = vstv %s200_s9  ;;  %v302_v39 = vstv %s2698_s10  ;;  %s3040_s9 = sld [smem:[#allocation8 + $0x16]]  ;;  %s3051_s10 = sld [smem:[#allocation10 + $0x15]] }
  0x79   :  { %4239 = vst [vmem:[#allocation18_spill] sm:$0xff] %v2736_v15  ;;  %4241 = vst [vmem:[#allocation19_spill] sm:$0xff] %v2739_v6  ;;  %v2774_v5 = vstv %s2682_s30  ;;  %v2777_v59 = vstv %s2690_s6  ;;  %v4252_v63 = vmax.f32 %v2485_v7, 0.0  ;;  %v321_v47 = vstv %s2708_s11  ;;  %s3015_s30 = sld [smem:[#allocation10 + $0x14]]  ;;  %s3038_s6 = sld [smem:[#allocation8 + $0x15]] }
  0x7a   :  { %4243 = vst [vmem:[#allocation20_spill] sm:$0xff] %v2742_v1  ;;  %4245 = vst [vmem:[#allocation21_spill] sm:$0xff] %v2750_v62  ;;  %v4253_v1 = vmax.f32 %v2488_v31, 0.0  ;;  %v4254_v48 = vmax.f32 %v2491_v27, 0.0  ;;  %v359_v15 = vstv %s2718_s12  ;;  %v4256_v7 = vmax.f32 %v2497_v19, 0.0  ;;  %s3057_s11 = sld [smem:[#allocation10 + $0x16]] }
  0x7b   :  { %4247 = vst [vmem:[#allocation22_spill] sm:$0xff] %v2755_v60  ;;  %4249 = vst [vmem:[#allocation23_spill] sm:$0xff] %v2758_v43  ;;  %v284_v58 = vmul.f32 %v283_v42, %v4252_v63  ;;  %v4257_v56 = vmax.f32 %v2509_v8, 0.0  ;;  %v4258_v53 = vmax.f32 %v2522_v12, 0.0  ;;  %v340_v60 = vstv %s2730_s13  ;;  %s3079_s12 = sld [smem:[#allocation8 + $0x17]]  ;;  %s3081_s13 = sld [smem:[#allocation8 + $0x18]] }
  0x7c   :  { %4250 = vst [vmem:[#allocation73_spill] sm:$0xff] %v2774_v5  ;;  %4251 = vst [vmem:[#allocation74_spill] sm:$0xff] %v2777_v59  ;;  %v285_v6 = vmul.f32 %v283_v42, %v4253_v1  ;;  %v286_v62 = vmul.f32 %v283_v42, %v4254_v48  ;;  %v4255_v5 = vmax.f32 %v2494_v55, 0.0  ;;  %v303_v63 = vmul.f32 %v302_v39, %v4256_v7 }
  0x7d   :  { %v304_v25 = vmul.f32 %v302_v39, %v4257_v56  ;;  %v305_v43 = vmul.f32 %v302_v39, %v4258_v53  ;;  %v4259_v31 = vmax.f32 %v2525_v3, 0.0  ;;  %v4260_v27 = vmax.f32 %v2540_v16, 0.0 }
  0x7e   :  { %v287_v59 = vmul.f32 %v283_v42, %v4255_v5  ;;  %v4261_v55 = vmax.f32 %v2543_v35, 0.0  ;;  %v382_v42 = vstv %s2744_s14  ;;  %v4262_v19 = vmax.f32 %v2546_v2, 0.0  ;;  %s3095_s14 = sld [smem:[#allocation10 + $0x17]] }
  0x7f   :  { %v306_v1 = vmul.f32 %v302_v39, %v4259_v31  ;;  %v322_v48 = vmul.f32 %v321_v47, %v4260_v27  ;;  %v4263_v12 = vmax.f32 %v2550_v4, 0.0  ;;  %v4264_v3 = vmax.f32 %v2573_v9, 0.0 }
  0x80   :  { %v323_v5 = vmul.f32 %v321_v47, %v4261_v55  ;;  %v324_v8 = vmul.f32 %v321_v47, %v4262_v19  ;;  %v4265_v16 = vmax.f32 %v2576_v17, 0.0  ;;  %v4266_v35 = vmax.f32 %v2553_v10, 0.0 }
  0x81   :  { %v325_v56 = vmul.f32 %v321_v47, %v4263_v12  ;;  %v360_v53 = vmul.f32 %v359_v15, %v4264_v3  ;;  %v4267_v31 = vmax.f32 %v2561_v18, 0.0  ;;  %v4268_v55 = vmax.f32 %v2567_v21, 0.0 }
  0x82   :  { %v361_v39 = vmul.f32 %v359_v15, %v4265_v16  ;;  %v341_v7 = vmul.f32 %v340_v60, %v4266_v35  ;;  %v4269_v19 = vmax.f32 %v2582_v13, 0.0  ;;  %v4270_v4 = vmax.f32 %v2570_v22, 0.0 }
  0x83   :  { %v342_v27 = vmul.f32 %v340_v60, %v4267_v31  ;;  %v343_v2 = vmul.f32 %v340_v60, %v4268_v55  ;;  %v4271_v9 = vmax.f32 %v2587_v26, 0.0  ;;  %v4272_v17 = vmax.f32 %v2590_v28, 0.0 }
  0x84   :  { %v362_v20 = vmul.f32 %v359_v15, %v4269_v19  ;;  %v344_v47 = vmul.f32 %v340_v60, %v4270_v4  ;;  %v4273_v3 = vmax.f32 %v2594_v23, 0.0  ;;  %v4274_v16 = vmax.f32 %v2597_v11, 0.0 }
  0x85   :  { %v363_v12 = vmul.f32 %v359_v15, %v4271_v9  ;;  %v383_v10 = vmul.f32 %v382_v42, %v4272_v17  ;;  %v4275_v35 = vmax.f32 %v2608_v33, 0.0  ;;  %v405_v31 = vstv %s2767_s15  ;;  %s3101_s15 = sld [smem:[#allocation10 + $0x18]] }
  0x86   :  { %v384_v18 = vmul.f32 %v382_v42, %v4273_v3  ;;  %v385_v21 = vmul.f32 %v382_v42, %v4274_v16  ;;  %v428_v55 = vstv %s2769_s16  ;;  %v364_v15 = vadd.f32 %v360_v53, %v284_v58  ;;  %s3123_s16 = sld [smem:[#allocation8 + $0x19]] }
  0x87   :  { %v386_v13 = vmul.f32 %v382_v42, %v4275_v35  ;;  %v365_v22 = vadd.f32 %v361_v39, %v285_v6  ;;  %v4276_v26 = vmax.f32 %v2611_v34, 0.0  ;;  %v4277_v23 = vmax.f32 %v2619_v0, 0.0 }
  0x88   :  { %v366_v19 = vadd.f32 %v362_v20, %v286_v62  ;;  %v4278_v11 = vmax.f32 %v2622_v32, 0.0  ;;  %v4279_v42 = vmax.f32 %v2627_v37, 0.0  ;;  %v451_v9 = vstv %s2784_s17  ;;  %s3129_s17 = sld [smem:[#allocation7 + $0x1a]] }
  0x89   :  { %v406_v28 = vmul.f32 %v405_v31, %v4276_v26  ;;  %v407_v60 = vmul.f32 %v405_v31, %v4277_v23  ;;  %v4280_v17 = vmax.f32 %v2635_v30, 0.0  ;;  %v4281_v6 = vmax.f32 %v2638_v38, 0.0 }
  0x8a   :  { %v408_v33 = vmul.f32 %v405_v31, %v4278_v11  ;;  %v409_v4 = vmul.f32 %v405_v31, %v4279_v42  ;;  %v4282_v34 = vmax.f32 %v2641_v40, 0.0  ;;  %v4283_v0 = vmax.f32 %v2647_v29, 0.0 }
  0x8b   :  { %v429_v3 = vmul.f32 %v428_v55, %v4280_v17  ;;  %v430_v58 = vmul.f32 %v428_v55, %v4281_v6  ;;  %v367_v62 = vadd.f32 %v363_v12, %v287_v59  ;;  %v387_v32 = vadd.f32 %v383_v10, %v303_v63 }
  0x8c   :  { %v431_v53 = vmul.f32 %v428_v55, %v4282_v34  ;;  %v432_v20 = vmul.f32 %v428_v55, %v4283_v0  ;;  %v388_v39 = vadd.f32 %v384_v18, %v304_v25  ;;  %v389_v16 = vadd.f32 %v385_v21, %v305_v43 }
  0x8d   :  { %v390_v37 = vadd.f32 %v386_v13, %v306_v1  ;;  %v410_v35 = vadd.f32 %v406_v28, %v322_v48  ;;  %v411_v31 = vadd.f32 %v407_v60, %v323_v5  ;;  %v474_v30 = vstv %s2807_s18  ;;  %v4292_v28 = vld [vmem:[#allocation71_spill] sm:$0xff]  ;;  %s3131_s18 = sld [smem:[#allocation8 + $0x1a]] }
  0x8e   :  { %v412_v38 = vadd.f32 %v408_v33, %v324_v8  ;;  %v413_v40 = vadd.f32 %v409_v4, %v325_v56  ;;  %v4284_v26 = vmax.f32 %v2650_v24, 0.0  ;;  %v4285_v59 = vmax.f32 %v2655_v14, 0.0  ;;  %v4297_v33 = vld [vmem:[#allocation72_spill] sm:$0xff] }
  0x8f   :  { %v433_v25 = vadd.f32 %v429_v3, %v341_v7  ;;  %v434_v43 = vadd.f32 %v430_v58, %v342_v27  ;;  %v435_v12 = vadd.f32 %v431_v53, %v343_v2  ;;  %v436_v10 = vadd.f32 %v432_v20, %v344_v47 }
  0x90   :  { %v452_v29 = vmul.f32 %v451_v9, %v4284_v26  ;;  %v453_v63 = vmul.f32 %v451_v9, %v4285_v59  ;;  %v4286_v1 = vmax.f32 %v2658_v44, 0.0  ;;  %v4287_v5 = vmax.f32 %v2662_v41, 0.0  ;;  %v4306_v59 = vld [vmem:[#allocation18_spill] sm:$0xff] }
  0x91   :  { %v4288_v21 = vmax.f32 %v2665_v45, 0.0  ;;  %v4289_v56 = vmax.f32 %v2668_v46, 0.0  ;;  %v4290_v13 = vmax.f32 %v2677_v50, 0.0  ;;  %v4291_v7 = vmax.f32 %v2680_v52, 0.0 }
  0x92   :  { %v454_v48 = vmul.f32 %v451_v9, %v4286_v1  ;;  %v455_v18 = vmul.f32 %v451_v9, %v4287_v5  ;;  %v497_v2 = vstv %s2839_s0  ;;  %v520_v47 = vstv %s2841_s1  ;;  %v4310_v1 = vld [vmem:[#allocation20_spill] sm:$0xff]  ;;  %v4312_v5 = vld [vmem:[#allocation21_spill] sm:$0xff]  ;;  %s3141_s0 = sld [smem:[#allocation10 + $0x19]]  ;;  %s3165_s1 = sld [smem:[#allocation7 + $0x1b]] }
  0x93   :  { %v475_v8 = vmul.f32 %v474_v30, %v4288_v21  ;;  %v476_v24 = vmul.f32 %v474_v30, %v4289_v56  ;;  %v477_v14 = vmul.f32 %v474_v30, %v4290_v13  ;;  %v478_v27 = vmul.f32 %v474_v30, %v4291_v7  ;;  %v4314_v21 = vld [vmem:[#allocation24_spill] sm:$0xff] }
  0x94   :  { %v456_v55 = vadd.f32 %v452_v29, %v364_v15  ;;  %v457_v44 = vadd.f32 %v453_v63, %v365_v22  ;;  %v4293_v41 = vmax.f32 %v4292_v28, 0.0  ;;  %v4294_v45 = vmax.f32 %v2696_v36, 0.0  ;;  %v4308_v63 = vld [vmem:[#allocation19_spill] sm:$0xff] }
  0x95   :  { %v4295_v46 = vmax.f32 %v2701_v51, 0.0  ;;  %v4296_v52 = vmax.f32 %v2704_v57, 0.0  ;;  %v4298_v42 = vmax.f32 %v4297_v33, 0.0  ;;  %v4299_v22 = vmax.f32 %v2716_v54, 0.0 }
  0x96   :  { %v498_v23 = vmul.f32 %v497_v2, %v4293_v41  ;;  %v499_v60 = vmul.f32 %v497_v2, %v4294_v45  ;;  %v458_v9 = vadd.f32 %v454_v48, %v366_v19  ;;  %v459_v17 = vadd.f32 %v455_v18, %v367_v62 }
  0x97   :  { %v500_v50 = vmul.f32 %v497_v2, %v4295_v46  ;;  %v501_v11 = vmul.f32 %v497_v2, %v4296_v52  ;;  %v521_v15 = vmul.f32 %v520_v47, %v4298_v42  ;;  %v522_v4 = vmul.f32 %v520_v47, %v4299_v22  ;;  %v4324_v52 = vld [vmem:[#allocation74_spill] sm:$0xff]  ;;  %v4325_v22 = vld [vmem:[#allocation29_spill] sm:$0xff] }
  0x98   :  { %v4300_v36 = vmax.f32 %v2722_v61, 0.0  ;;  %v4301_v6 = vmax.f32 %v2725_v49, 0.0  ;;  %v479_v51 = vadd.f32 %v475_v8, %v387_v32  ;;  %v480_v34 = vadd.f32 %v476_v24, %v388_v39  ;;  %v4302_v32 = vld [vmem:[#allocation16_spill] sm:$0xff]  ;;  %v4315_v8 = vld [vmem:[#allocation73_spill] sm:$0xff] }
  0x99   :  { %v481_v53 = vadd.f32 %v477_v14, %v389_v16  ;;  %v543_v0 = vstv %s2860_s3  ;;  %v482_v57 = vadd.f32 %v478_v27, %v390_v37  ;;  %v502_v20 = vadd.f32 %v498_v23, %v410_v35  ;;  %v4304_v37 = vld [vmem:[#allocation17_spill] sm:$0xff]  ;;  %v4317_v14 = vld [vmem:[#allocation26_spill] sm:$0xff]  ;;  %v4318_v27 = vld [vmem:[#allocation27_spill] sm:$0xff]  ;;  %s3167_s3 = sld [smem:[#allocation10 + $0x1a]] }
  0x9a   :  { %v523_v3 = vmul.f32 %v520_v47, %v4300_v36  ;;  %v524_v58 = vmul.f32 %v520_v47, %v4301_v6  ;;  %v503_v30 = vadd.f32 %v499_v60, %v411_v31  ;;  %v566_v26 = vstv %s2863_s19  ;;  %v4316_v24 = vld [vmem:[#allocation25_spill] sm:$0xff]  ;;  %v4319_v47 = vld [vmem:[#allocation22_spill] sm:$0xff]  ;;  %v4321_v23 = vld [vmem:[#allocation23_spill] sm:$0xff]  ;;  %s3188_s19 = sld [smem:[#allocation7 + $0x1c]] }
  0x9b   :  { %v504_v54 = vadd.f32 %v500_v50, %v412_v38  ;;  %v505_v29 = vadd.f32 %v501_v11, %v413_v40  ;;  %v2905_v19 = vadd.f32 %v521_v15, %v433_v25  ;;  %v2907_v62 = vadd.f32 %v522_v4, %v434_v43  ;;  %v4323_v50 = vld [vmem:[#allocation28_spill] sm:$0xff]  ;;  %v4326_v6 = vld [vmem:[#allocation30_spill] sm:$0xff] }
  0x9c   :  { %v2909_v61 = vadd.f32 %v523_v3, %v435_v12  ;;  %v2911_v49 = vadd.f32 %v524_v58, %v436_v10  ;;  %v4303_v39 = vmax.f32 %v4302_v32, 0.0  ;;  %v4305_v35 = vmax.f32 %v4304_v37, 0.0 }
  0x9d   :  { %v4307_v38 = vmax.f32 %v4306_v59, 0.0  ;;  %v4309_v25 = vmax.f32 %v4308_v63, 0.0  ;;  %v4311_v12 = vmax.f32 %v4310_v1, 0.0  ;;  %v4313_v10 = vmax.f32 %v4312_v5, 0.0 }
  0x9e   :  { %v544_v16 = vmul.f32 %v543_v0, %v4303_v39  ;;  %v545_v31 = vmul.f32 %v543_v0, %v4305_v35  ;;  %v581_v56 = vadd.f32 %v4315_v8, %v4314_v21  ;;  %v582_v13 = vadd.f32 %v4315_v8, %v4316_v24 }
  0x9f   :  { %v546_v40 = vmul.f32 %v543_v0, %v4307_v38  ;;  %v547_v43 = vmul.f32 %v543_v0, %v4309_v25  ;;  %v567_v48 = vmul.f32 %v566_v26, %v4311_v12  ;;  %v568_v18 = vmul.f32 %v566_v26, %v4313_v10  ;;  %v4327_v0 = vld [vmem:[#allocation31_spill] sm:$0xff]  ;;  %v4329_v12 = vld [vmem:[#allocation33_spill] sm:$0xff] }
  0xa0   :  { %v583_v7 = vadd.f32 %v4315_v8, %v4317_v14  ;;  %v584_v2 = vadd.f32 %v4315_v8, %v4318_v27  ;;  %v4320_v28 = vmax.f32 %v4319_v47, 0.0  ;;  %v4322_v45 = vmax.f32 %v4321_v23, 0.0  ;;  %v4331_v10 = vld [vmem:[#allocation35_spill] sm:$0xff] }
  0xa1   :  { %v589_v46 = vstv %s2887_s20  ;;  %v604_v11 = vadd.f32 %v4324_v52, %v4323_v50  ;;  %v585_v33 = vmax.f32 %v581_v56, 0.0  ;;  %v586_v42 = vmax.f32 %v582_v13, 0.0  ;;  %s3192_s20 = sld [smem:[#allocation8 + $0x1b]] }
  0xa2   :  { %v569_v41 = vmul.f32 %v566_v26, %v4320_v28  ;;  %v570_v60 = vmul.f32 %v566_v26, %v4322_v45  ;;  %v587_v15 = vmax.f32 %v583_v7, 0.0  ;;  %v605_v4 = vadd.f32 %v4324_v52, %v4325_v22  ;;  %v4333_v45 = vld [vmem:[#allocation37_spill] sm:$0xff] }
  0xa3   :  { %v2948_v36 = vadd.f32 %v544_v16, %v456_v55  ;;  %v588_v3 = vmax.f32 %v584_v2, 0.0  ;;  %v606_v58 = vadd.f32 %v4324_v52, %v4326_v6  ;;  %v607_v26 = vadd.f32 %v4324_v52, %v4327_v0  ;;  %v4336_v0 = vld [vmem:[#allocation40_spill] sm:$0xff] }
  0xa4   :  { %v2956_v32 = vadd.f32 %v545_v31, %v457_v44  ;;  %v2958_v39 = vadd.f32 %v546_v40, %v458_v9  ;;  %v2960_v37 = vadd.f32 %v547_v43, %v459_v17  ;;  %v2962_v35 = vadd.f32 %v567_v48, %v479_v51  ;;  %v4328_v43 = vld [vmem:[#allocation32_spill] sm:$0xff]  ;;  %v4330_v48 = vld [vmem:[#allocation34_spill] sm:$0xff] }
  0xa5   :  { %v2964_v55 = vadd.f32 %v568_v18, %v480_v34  ;;  %v590_v16 = vmul.f32 %v589_v46, %v585_v33  ;;  %v591_v59 = vmul.f32 %v589_v46, %v586_v42  ;;  %v626_v38 = vstv %s2903_s21  ;;  %s3194_s21 = sld [smem:[#allocation8 + $0x1c]] }
  0xa6   :  { %v2969_v63 = vadd.f32 %v569_v41, %v481_v53  ;;  %v592_v25 = vmul.f32 %v589_v46, %v587_v15  ;;  %v608_v44 = vmax.f32 %v604_v11, 0.0  ;;  %v609_v31 = vmax.f32 %v605_v4, 0.0 }
  0xa7   :  { %v593_v1 = vmul.f32 %v589_v46, %v588_v3  ;;  %v610_v9 = vmax.f32 %v606_v58, 0.0  ;;  %v611_v40 = vmax.f32 %v607_v26, 0.0  ;;  %v612_v17 = vstv %s2917_s22  ;;  %v4334_v46 = vld [vmem:[#allocation38_spill] sm:$0xff]  ;;  %s3215_s22 = sld [smem:[#allocation10 + $0x1b]] }
  0xa8   :  { %v627_v51 = vadd.f32 %v626_v38, %v4328_v43  ;;  %v628_v34 = vadd.f32 %v626_v38, %v4329_v12  ;;  %v629_v5 = vadd.f32 %v626_v38, %v4330_v48  ;;  %v630_v18 = vadd.f32 %v626_v38, %v4331_v10  ;;  %v4338_v38 = vld [vmem:[#allocation42_spill] sm:$0xff] }
  0xa9   :  { %v2976_v21 = vadd.f32 %v570_v60, %v482_v57  ;;  %v2978_v53 = vadd.f32 %v590_v16, %v502_v20  ;;  %v2980_v8 = vadd.f32 %v591_v59, %v503_v30  ;;  %v635_v56 = vstv %s2935_s23  ;;  %v4332_v30 = vld [vmem:[#allocation36_spill] sm:$0xff]  ;;  %v4337_v16 = vld [vmem:[#allocation41_spill] sm:$0xff]  ;;  %s3232_s23 = sld [smem:[#allocation7 + $0x1d]] }
  0xaa   :  { %v2983_v24 = vadd.f32 %v592_v25, %v504_v54  ;;  %v613_v13 = vmul.f32 %v612_v17, %v608_v44  ;;  %v631_v14 = vmax.f32 %v627_v51, 0.0  ;;  %v632_v7 = vmax.f32 %v628_v34, 0.0 }
  0xab   :  { %v2987_v27 = vadd.f32 %v593_v1, %v505_v29  ;;  %v633_v2 = vmax.f32 %v629_v5, 0.0  ;;  %v634_v47 = vmax.f32 %v630_v18, 0.0  ;;  %v649_v57 = vstv %s2946_s24  ;;  %v4335_v29 = vld [vmem:[#allocation39_spill] sm:$0xff]  ;;  %s3237_s24 = sld [smem:[#allocation8 + $0x1d]] }
  0xac   :  { %v614_v28 = vmul.f32 %v612_v17, %v609_v31  ;;  %v615_v41 = vmul.f32 %v612_v17, %v610_v9  ;;  %v616_v20 = vmul.f32 %v612_v17, %v611_v40  ;;  %v672_v23 = vstv %s2954_s25  ;;  %v4339_v1 = vld [vmem:[#allocation43_spill] sm:$0xff]  ;;  %s3239_s25 = sld [smem:[#allocation10 + $0x1c]] }
  0xad   :  { %v650_v54 = vadd.f32 %v649_v57, %v4332_v30  ;;  %v651_v60 = vadd.f32 %v649_v57, %v4333_v45  ;;  %v652_v50 = vadd.f32 %v649_v57, %v4334_v46  ;;  %v653_v52 = vadd.f32 %v649_v57, %v4335_v29  ;;  %v4344_v30 = vld [vmem:[#allocation48_spill] sm:$0xff] }
  0xae   :  { %v3000_v11 = vadd.f32 %v613_v13, %v2905_v19  ;;  %v636_v33 = vmul.f32 %v635_v56, %v631_v14  ;;  %v637_v42 = vmul.f32 %v635_v56, %v632_v7  ;;  %v658_v15 = vstv %s2967_s26  ;;  %s3246_s26 = sld [smem:[#allocation7 + $0x1e]] }
  0xaf   :  { %v638_v22 = vmul.f32 %v635_v56, %v633_v2  ;;  %v639_v4 = vmul.f32 %v635_v56, %v634_v47  ;;  %v654_v3 = vmax.f32 %v650_v54, 0.0  ;;  %v655_v6 = vmax.f32 %v651_v60, 0.0  ;;  %v4341_v47 = vld [vmem:[#allocation45_spill] sm:$0xff]  ;;  %v4346_v60 = vld [vmem:[#allocation50_spill] sm:$0xff] }
  0xb0   :  { %v656_v58 = vmax.f32 %v652_v50, 0.0  ;;  %v673_v26 = vadd.f32 %v672_v23, %v4336_v0  ;;  %v674_v59 = vadd.f32 %v672_v23, %v4337_v16  ;;  %v675_v25 = vadd.f32 %v672_v23, %v4338_v38  ;;  %v4347_v50 = vld [vmem:[#allocation51_spill] sm:$0xff] }
  0xb1   :  { %v3009_v19 = vadd.f32 %v614_v28, %v2907_v62  ;;  %v3012_v44 = vadd.f32 %v615_v41, %v2909_v61  ;;  %v657_v31 = vmax.f32 %v653_v52, 0.0  ;;  %v676_v9 = vadd.f32 %v672_v23, %v4339_v1  ;;  %v4342_v28 = vld [vmem:[#allocation46_spill] sm:$0xff] }
  0xb2   :  { %v659_v40 = vmul.f32 %v658_v15, %v654_v3  ;;  %v677_v17 = vmax.f32 %v673_v26, 0.0  ;;  %v678_v43 = vmax.f32 %v674_v59, 0.0  ;;  %v679_v51 = vmax.f32 %v675_v25, 0.0 }
  0xb3   :  { %v3018_v12 = vadd.f32 %v616_v20, %v2911_v49  ;;  %v3021_v62 = vadd.f32 %v636_v33, %v2948_v36  ;;  %v3024_v61 = vadd.f32 %v637_v42, %v2956_v32  ;;  %v681_v34 = vstv %s2985_s27  ;;  %v4343_v20 = vld [vmem:[#allocation47_spill] sm:$0xff]  ;;  %s3248_s27 = sld [smem:[#allocation10 + $0x1d]] }
  0xb4   :  { %v3028_v48 = vadd.f32 %v638_v22, %v2958_v39  ;;  %v3031_v5 = vadd.f32 %v639_v4, %v2960_v37  ;;  %v660_v10 = vmul.f32 %v658_v15, %v655_v6  ;;  %v661_v18 = vmul.f32 %v658_v15, %v656_v58  ;;  %v4340_v39 = vld [vmem:[#allocation44_spill] sm:$0xff] }
  0xb5   :  { %v662_v56 = vmul.f32 %v658_v15, %v657_v31  ;;  %v680_v13 = vmax.f32 %v676_v9, 0.0  ;;  %v695_v14 = vstv %s2991_s28  ;;  %v718_v49 = vstv %s2993_s2  ;;  %s3256_s28 = sld [smem:[#allocation8 + $0x1e]]  ;;  %s3270_s2 = sld [smem:[#allocation7 + $0x1f]] }
  0xb6   :  { %v3036_v7 = vadd.f32 %v659_v40, %v2962_v35  ;;  %v682_v36 = vmul.f32 %v681_v34, %v677_v17  ;;  %v683_v32 = vmul.f32 %v681_v34, %v678_v43  ;;  %v684_v2 = vmul.f32 %v681_v34, %v679_v51  ;;  %v4345_v35 = vld [vmem:[#allocation49_spill] sm:$0xff] }
  0xb7   :  { %v696_v37 = vadd.f32 %v695_v14, %v4340_v39  ;;  %v697_v57 = vadd.f32 %v695_v14, %v4341_v47  ;;  %v698_v41 = vadd.f32 %v695_v14, %v4342_v28  ;;  %v699_v23 = vadd.f32 %v695_v14, %v4343_v20  ;;  %v4351_v14 = vld [vmem:[#allocation55_spill] sm:$0xff] }
  0xb8   :  { %v719_v54 = vadd.f32 %v718_v49, %v4344_v30  ;;  %v720_v45 = vadd.f32 %v718_v49, %v4345_v35  ;;  %v721_v46 = vadd.f32 %v718_v49, %v4346_v60  ;;  %v722_v29 = vadd.f32 %v718_v49, %v4347_v50 }
  0xb9   :  { %v685_v52 = vmul.f32 %v681_v34, %v680_v13  ;;  %v700_v33 = vmax.f32 %v696_v37, 0.0  ;;  %v701_v42 = vmax.f32 %v697_v57, 0.0  ;;  %v704_v15 = vstv %s3006_s29  ;;  %v4354_v37 = vld [vmem:[#allocation59_spill] sm:$0xff]  ;;  %v4355_v57 = vld [vmem:[#allocation60_spill] sm:$0xff]  ;;  %s3282_s29 = sld [smem:[#allocation10 + $0x1e]] }
  0xba   :  { %v702_v22 = vmax.f32 %v698_v41, 0.0  ;;  %v703_v4 = vmax.f32 %v699_v23, 0.0  ;;  %v723_v3 = vmax.f32 %v719_v54, 0.0  ;;  %v724_v6 = vmax.f32 %v720_v45, 0.0 }
  0xbb   :  { %v3054_v58 = vadd.f32 %v660_v10, %v2964_v55  ;;  %v725_v0 = vmax.f32 %v721_v46, 0.0  ;;  %v726_v26 = vmax.f32 %v722_v29, 0.0  ;;  %v727_v16 = vstv %s3015_s30  ;;  %s3298_s30 = sld [smem:[#allocation7 + $0x20]] }
  0xbc   :  { %v3060_v59 = vadd.f32 %v661_v18, %v2969_v63  ;;  %v3063_v38 = vadd.f32 %v662_v56, %v2976_v21  ;;  %v3066_v25 = vadd.f32 %v682_v36, %v2978_v53  ;;  %v3069_v31 = vadd.f32 %v683_v32, %v2980_v8  ;;  %v4348_v8 = vld [vmem:[#allocation52_spill] sm:$0xff]  ;;  %v4349_v18 = vld [vmem:[#allocation53_spill] sm:$0xff]  ;;  %v4350_v56 = vld [vmem:[#allocation54_spill] sm:$0xff] }
  0xbd   :  { %v3072_v55 = vadd.f32 %v684_v2, %v2983_v24  ;;  %v3075_v1 = vadd.f32 %v685_v52, %v2987_v27  ;;  %v705_v9 = vmul.f32 %v704_v15, %v700_v33  ;;  %v706_v40 = vmul.f32 %v704_v15, %v701_v42  ;;  %v4352_v36 = vld [vmem:[#allocation56_spill] sm:$0xff]  ;;  %v4353_v2 = vld [vmem:[#allocation57_spill] sm:$0xff] }
  0xbe   :  { %v707_v17 = vmul.f32 %v704_v15, %v702_v22  ;;  %v708_v63 = vmul.f32 %v704_v15, %v703_v4  ;;  %v728_v43 = vmul.f32 %v727_v16, %v723_v3  ;;  %v729_v51 = vmul.f32 %v727_v16, %v724_v6 }
  0xbf   :  { %v730_v21 = vmul.f32 %v727_v16, %v725_v0  ;;  %v731_v34 = vmul.f32 %v727_v16, %v726_v26  ;;  %v741_v53 = vstv %s3038_s6  ;;  %v764_v10 = vstv %s3040_s9  ;;  %s3300_s6 = sld [smem:[#allocation8 + $0x1f]]  ;;  %s3303_s9 = sld [smem:[#allocation8 + $0x20]] }
  0xc0   :  { %v742_v24 = vadd.f32 %v741_v53, %v4348_v8  ;;  %v743_v27 = vadd.f32 %v741_v53, %v4349_v18  ;;  %v744_v13 = vadd.f32 %v741_v53, %v4350_v56  ;;  %v745_v49 = vadd.f32 %v741_v53, %v4351_v14  ;;  %v4363_v14 = vld [vmem:[#allocation68_spill] sm:$0xff] }
  0xc1   :  { %v765_v32 = vadd.f32 %v764_v10, %v4352_v36  ;;  %v766_v39 = vadd.f32 %v764_v10, %v4353_v2  ;;  %v767_v47 = vadd.f32 %v764_v10, %v4354_v37  ;;  %v768_v28 = vadd.f32 %v764_v10, %v4355_v57  ;;  %v4361_v10 = vld [vmem:[#allocation66_spill] sm:$0xff] }
  0xc2   :  { %v3092_v41 = vadd.f32 %v705_v9, %v3000_v11  ;;  %v746_v20 = vmax.f32 %v742_v24, 0.0  ;;  %v747_v23 = vmax.f32 %v743_v27, 0.0  ;;  %v750_v30 = vstv %s3051_s10  ;;  %v4362_v24 = vld [vmem:[#allocation67_spill] sm:$0xff]  ;;  %s3319_s10 = sld [smem:[#allocation10 + $0x1f]] }
  0xc3   :  { %v748_v54 = vmax.f32 %v744_v13, 0.0  ;;  %v749_v35 = vmax.f32 %v745_v49, 0.0  ;;  %v769_v45 = vmax.f32 %v765_v32, 0.0  ;;  %v770_v60 = vmax.f32 %v766_v39, 0.0 }
  0xc4   :  { %v3098_v46 = vadd.f32 %v706_v40, %v3009_v19  ;;  %v771_v50 = vmax.f32 %v767_v47, 0.0  ;;  %v772_v29 = vmax.f32 %v768_v28, 0.0  ;;  %v773_v52 = vstv %s3057_s11  ;;  %s3334_s11 = sld [smem:[#allocation7 + $0x21]] }
  0xc5   :  { %v3104_v11 = vadd.f32 %v707_v17, %v3012_v44  ;;  %v3107_v33 = vadd.f32 %v708_v63, %v3018_v12  ;;  %v3110_v42 = vadd.f32 %v728_v43, %v3021_v62  ;;  %v3113_v15 = vadd.f32 %v729_v51, %v3024_v61  ;;  %v4356_v61 = vld [vmem:[#allocation61_spill] sm:$0xff]  ;;  %v4358_v63 = vld [vmem:[#allocation63_spill] sm:$0xff]  ;;  %v4359_v43 = vld [vmem:[#allocation64_spill] sm:$0xff] }
  0xc6   :  { %v3116_v19 = vadd.f32 %v730_v21, %v3028_v48  ;;  %v3119_v22 = vadd.f32 %v731_v34, %v3031_v5  ;;  %v751_v4 = vmul.f32 %v750_v30, %v746_v20  ;;  %v752_v3 = vmul.f32 %v750_v30, %v747_v23  ;;  %v4357_v48 = vld [vmem:[#allocation62_spill] sm:$0xff]  ;;  %v4360_v34 = vld [vmem:[#allocation65_spill] sm:$0xff] }
  0xc7   :  { %v753_v6 = vmul.f32 %v750_v30, %v748_v54  ;;  %v754_v44 = vmul.f32 %v750_v30, %v749_v35  ;;  %v774_v0 = vmul.f32 %v773_v52, %v769_v45  ;;  %v775_v26 = vmul.f32 %v773_v52, %v770_v60 }
  0xc8   :  { %v776_v12 = vmul.f32 %v773_v52, %v771_v50  ;;  %v777_v16 = vmul.f32 %v773_v52, %v772_v29  ;;  %v787_v62 = vstv %s3079_s12  ;;  %v810_v9 = vstv %s3081_s13  ;;  %v4364_v50 = vld [vmem:[#allocation58_spill] sm:$0xff]  ;;  %v3173_v29 = vld [vmem:[#allocation3 + $0x18] sm:$0xff]  ;;  %s3337_s12 = sld [smem:[#allocation8 + $0x21]]  ;;  %s3339_s13 = sld [smem:[#allocation10 + $0x20]] }
  0xc9   :  { %v788_v40 = vadd.f32 %v787_v62, %v4356_v61  ;;  %v789_v17 = vadd.f32 %v787_v62, %v4357_v48  ;;  %v790_v5 = vadd.f32 %v787_v62, %v4358_v63  ;;  %v791_v51 = vadd.f32 %v787_v62, %v4359_v43 }
  0xca   :  { %v3134_v21 = vadd.f32 %v751_v4, %v3036_v7  ;;  %v811_v53 = vadd.f32 %v810_v9, %v4360_v34  ;;  %v812_v8 = vadd.f32 %v810_v9, %v4361_v10  ;;  %v813_v18 = vadd.f32 %v810_v9, %v4362_v24 }
  0xcb   :  { %v792_v27 = vmax.f32 %v788_v40, 0.0  ;;  %v793_v56 = vmax.f32 %v789_v17, 0.0  ;;  %v796_v13 = vstv %s3095_s14  ;;  %v814_v49 = vadd.f32 %v810_v9, %v4363_v14  ;;  %v3182_v9 = vld [vmem:[#allocation3] sm:$0xff]  ;;  %v3185_v40 = vld [vmem:[#allocation3 + $0x8] sm:$0xff]  ;;  %s3346_s14 = sld [smem:[#allocation7 + $0x22]] }
  0xcc   :  { %v794_v36 = vmax.f32 %v790_v5, 0.0  ;;  %v795_v32 = vmax.f32 %v791_v51, 0.0  ;;  %v815_v2 = vmax.f32 %v811_v53, 0.0  ;;  %v816_v39 = vmax.f32 %v812_v8, 0.0 }
  0xcd   :  { %v3144_v7 = vadd.f32 %v752_v3, %v3054_v58  ;;  %v3147_v37 = vadd.f32 %v753_v6, %v3060_v59  ;;  %v817_v47 = vmax.f32 %v813_v18, 0.0  ;;  %v819_v57 = vstv %s3101_s15  ;;  %v4365_v3 = vld [vmem:[#allocation69_spill] sm:$0xff]  ;;  %s3348_s15 = sld [smem:[#allocation10 + $0x21]] }
  0xce   :  { %v3151_v28 = vadd.f32 %v754_v44, %v3063_v38  ;;  %v3154_v20 = vadd.f32 %v774_v0, %v3066_v25  ;;  %v3157_v23 = vadd.f32 %v775_v26, %v3069_v31  ;;  %v3160_v30 = vadd.f32 %v776_v12, %v3072_v55  ;;  %v3169_v55 = vld [vmem:[#allocation3 + $0x10] sm:$0xff] }
  0xcf   :  { %v3163_v58 = vadd.f32 %v777_v16, %v3075_v1  ;;  %v797_v59 = vmul.f32 %v796_v13, %v792_v27  ;;  %v798_v54 = vmul.f32 %v796_v13, %v793_v56  ;;  %v818_v35 = vmax.f32 %v814_v49, 0.0  ;;  %v4366_v44 = vld [vmem:[#allocation70_spill] sm:$0xff] }
  0xd0   :  { %v799_v38 = vmul.f32 %v796_v13, %v794_v36  ;;  %v800_v45 = vmul.f32 %v796_v13, %v795_v32  ;;  %v820_v60 = vmul.f32 %v819_v57, %v815_v2  ;;  %v821_v25 = vmul.f32 %v819_v57, %v816_v39 }
  0xd1   :  { %v822_v31 = vmul.f32 %v819_v57, %v817_v47  ;;  %v831_v1 = vmul.f32 %v3169_v55, %v4364_v50  ;;  %v832_v52 = vmul.f32 %v3173_v29, %v4364_v50  ;;  %v833_v4 = vstv %s3123_s16  ;;  %s3356_s16 = sld [smem:[#allocation8 + $0x22]] }
  0xd2   :  { %v834_v6 = vadd.f32 %v833_v4, %v4365_v3  ;;  %v835_v0 = vadd.f32 %v833_v4, %v4366_v44  ;;  %v851_v26 = vstv %s3129_s17  ;;  %v856_v12 = vstv %s3131_s18  ;;  %s3370_s17 = sld [smem:[#allocation7 + $0x23]]  ;;  %s3382_s18 = sld [smem:[#allocation10 + $0x22]] }
  0xd3   :  { %v823_v16 = vmul.f32 %v819_v57, %v818_v35  ;;  %v836_v62 = vadd.f32 %v833_v4, %v831_v1  ;;  %v852_v61 = vmul.f32 %v3182_v9, %v851_v26  ;;  %v853_v48 = vmul.f32 %v3185_v40, %v851_v26 }
  0xd4   :  { %v837_v17 = vadd.f32 %v833_v4, %v832_v52  ;;  %v838_v63 = vmax.f32 %v834_v6, 0.0  ;;  %v854_v5 = vmul.f32 %v3169_v55, %v851_v26  ;;  %v855_v43 = vmul.f32 %v3173_v29, %v851_v26 }
  0xd5   :  { %v3197_v51 = vadd.f32 %v797_v59, %v3092_v41  ;;  %v842_v34 = vstv %s3141_s0  ;;  %v857_v53 = vadd.f32 %v856_v12, %v852_v61  ;;  %v858_v10 = vadd.f32 %v856_v12, %v853_v48  ;;  %s3398_s0 = sld [smem:[#allocation7 + $0x24]] }
  0xd6   :  { %v3201_v8 = vadd.f32 %v798_v54, %v3098_v46  ;;  %v839_v24 = vmax.f32 %v835_v0, 0.0  ;;  %v840_v18 = vmax.f32 %v836_v62, 0.0  ;;  %v859_v27 = vadd.f32 %v856_v12, %v854_v5 }
  0xd7   :  { %v3204_v56 = vadd.f32 %v799_v38, %v3104_v11  ;;  %v3207_v13 = vadd.f32 %v800_v45, %v3107_v33  ;;  %v3210_v41 = vadd.f32 %v820_v60, %v3110_v42  ;;  %v3213_v14 = vadd.f32 %v821_v25, %v3113_v15 }
  0xd8   :  { %v841_v49 = vmax.f32 %v837_v17, 0.0  ;;  %v843_v36 = vmul.f32 %v842_v34, %v838_v63  ;;  %v860_v46 = vadd.f32 %v856_v12, %v855_v43  ;;  %v861_v32 = vmax.f32 %v857_v53, 0.0 }
  0xd9   :  { %v3218_v2 = vadd.f32 %v822_v31, %v3116_v19  ;;  %v862_v11 = vmax.f32 %v858_v10, 0.0  ;;  %v865_v39 = vstv %s3167_s3  ;;  %v874_v33 = vstv %s3165_s1  ;;  %s3400_s1 = sld [smem:[#allocation8 + $0x23]]  ;;  %s3403_s3 = sld [smem:[#allocation8 + $0x24]] }
  0xda   :  { %v3223_v42 = vadd.f32 %v823_v16, %v3119_v22  ;;  %v844_v15 = vmul.f32 %v842_v34, %v839_v24  ;;  %v845_v47 = vmul.f32 %v842_v34, %v840_v18  ;;  %v863_v57 = vmax.f32 %v859_v27, 0.0 }
  0xdb   :  { %v875_v59 = vmul.f32 %v3182_v9, %v874_v33  ;;  %v876_v54 = vmul.f32 %v3185_v40, %v874_v33  ;;  %v877_v35 = vmul.f32 %v3169_v55, %v874_v33  ;;  %v878_v19 = vmul.f32 %v3173_v29, %v874_v33 }
  0xdc   :  { %v846_v38 = vmul.f32 %v842_v34, %v841_v49  ;;  %v3230_v45 = vadd.f32 %v843_v36, %v3134_v21  ;;  %v864_v60 = vmax.f32 %v860_v46, 0.0  ;;  %v866_v25 = vmul.f32 %v865_v39, %v861_v32 }
  0xdd   :  { %v867_v22 = vmul.f32 %v865_v39, %v862_v11  ;;  %v879_v31 = vstv %s3192_s20  ;;  %v897_v50 = vstv %s3188_s19  ;;  %v902_v1 = vstv %s3194_s21  ;;  %s3419_s19 = sld [smem:[#allocation10 + $0x23]]  ;;  %s3434_s20 = sld [smem:[#allocation7 + $0x25]] }
  0xde   :  { %v880_v52 = vadd.f32 %v879_v31, %v875_v59  ;;  %v881_v4 = vadd.f32 %v879_v31, %v876_v54  ;;  %v882_v3 = vadd.f32 %v879_v31, %v877_v35  ;;  %v883_v6 = vadd.f32 %v879_v31, %v878_v19  ;;  %s3437_s21 = sld [smem:[#allocation8 + $0x25]] }
  0xdf   :  { %v868_v44 = vmul.f32 %v865_v39, %v863_v57  ;;  %v898_v21 = vmul.f32 %v3182_v9, %v897_v50  ;;  %v899_v0 = vmul.f32 %v3185_v40, %v897_v50  ;;  %v900_v26 = vmul.f32 %v3169_v55, %v897_v50 }
  0xe0   :  { %v884_v12 = vmax.f32 %v880_v52, 0.0  ;;  %v885_v16 = vmax.f32 %v881_v4, 0.0  ;;  %v886_v62 = vmax.f32 %v882_v3, 0.0  ;;  %v901_v61 = vmul.f32 %v3173_v29, %v897_v50 }
  0xe1   :  { %v869_v48 = vmul.f32 %v865_v39, %v864_v60  ;;  %v887_v17 = vmax.f32 %v883_v6, 0.0  ;;  %v888_v63 = vstv %s3215_s22  ;;  %v903_v5 = vadd.f32 %v902_v1, %v898_v21  ;;  %s3439_s22 = sld [smem:[#allocation10 + $0x24]] }
  0xe2   :  { %v3251_v43 = vadd.f32 %v844_v15, %v3144_v7  ;;  %v3254_v34 = vadd.f32 %v845_v47, %v3147_v37  ;;  %v904_v53 = vadd.f32 %v902_v1, %v899_v0  ;;  %v905_v10 = vadd.f32 %v902_v1, %v900_v26 }
  0xe3   :  { %v3259_v24 = vadd.f32 %v846_v38, %v3151_v28  ;;  %v3262_v18 = vadd.f32 %v866_v25, %v3154_v20  ;;  %v3265_v27 = vadd.f32 %v867_v22, %v3157_v23  ;;  %v3268_v7 = vadd.f32 %v868_v44, %v3160_v30 }
  0xe4   :  { %v889_v37 = vmul.f32 %v888_v63, %v884_v12  ;;  %v890_v49 = vmul.f32 %v888_v63, %v885_v16  ;;  %v891_v36 = vmul.f32 %v888_v63, %v886_v62  ;;  %v906_v46 = vadd.f32 %v902_v1, %v901_v61 }
  0xe5   :  { %v3273_v32 = vadd.f32 %v869_v48, %v3163_v58  ;;  %v892_v28 = vmul.f32 %v888_v63, %v887_v17  ;;  %v907_v11 = vmax.f32 %v903_v5, 0.0  ;;  %v920_v39 = vstv %s3232_s23  ;;  %s3446_s23 = sld [smem:[#allocation7 + $0x26]] }
  0xe6   :  { %v908_v20 = vmax.f32 %v904_v53, 0.0  ;;  %v909_v33 = vmax.f32 %v905_v10, 0.0  ;;  %v911_v15 = vstv %s3239_s25  ;;  %v925_v23 = vstv %s3237_s24  ;;  %s3448_s24 = sld [smem:[#allocation10 + $0x25]]  ;;  %s3456_s25 = sld [smem:[#allocation8 + $0x26]] }
  0xe7   :  { %v921_v30 = vmul.f32 %v3182_v9, %v920_v39  ;;  %v922_v47 = vmul.f32 %v3185_v40, %v920_v39  ;;  %v923_v57 = vmul.f32 %v3169_v55, %v920_v39  ;;  %v924_v59 = vmul.f32 %v3173_v29, %v920_v39 }
  0xe8   :  { %v3285_v58 = vadd.f32 %v889_v37, %v3197_v51  ;;  %v3288_v54 = vadd.f32 %v890_v49, %v3201_v8  ;;  %v3291_v35 = vadd.f32 %v891_v36, %v3204_v56  ;;  %v910_v19 = vmax.f32 %v906_v46, 0.0 }
  0xe9   :  { %v3294_v38 = vadd.f32 %v892_v28, %v3207_v13  ;;  %v912_v60 = vmul.f32 %v911_v15, %v907_v11  ;;  %v926_v25 = vadd.f32 %v925_v23, %v921_v30  ;;  %v927_v22 = vadd.f32 %v925_v23, %v922_v47 }
  0xea   :  { %v913_v31 = vmul.f32 %v911_v15, %v908_v20  ;;  %v928_v50 = vadd.f32 %v925_v23, %v923_v57  ;;  %v934_v1 = vstv %s3248_s27  ;;  %v943_v51 = vstv %s3246_s26  ;;  %s3470_s26 = sld [smem:[#allocation7 + $0x27]]  ;;  %s3482_s27 = sld [smem:[#allocation10 + $0x26]] }
  0xeb   :  { %v914_v8 = vmul.f32 %v911_v15, %v909_v33  ;;  %v929_v52 = vadd.f32 %v925_v23, %v924_v59  ;;  %v930_v56 = vmax.f32 %v926_v25, 0.0  ;;  %v948_v4 = vstv %s3256_s28  ;;  %s3498_s28 = sld [smem:[#allocation7 + $0x28]] }
  0xec   :  { %v944_v13 = vmul.f32 %v3182_v9, %v943_v51  ;;  %v945_v3 = vmul.f32 %v3185_v40, %v943_v51  ;;  %v946_v6 = vmul.f32 %v3169_v55, %v943_v51  ;;  %v947_v44 = vmul.f32 %v3173_v29, %v943_v51 }
  0xed   :  { %v915_v21 = vmul.f32 %v911_v15, %v910_v19  ;;  %v3310_v0 = vadd.f32 %v912_v60, %v3210_v41  ;;  %v931_v26 = vmax.f32 %v927_v22, 0.0  ;;  %v966_v12 = vstv %s3270_s2  ;;  %s3500_s2 = sld [smem:[#allocation8 + $0x27]] }
  0xee   :  { %v932_v16 = vmax.f32 %v928_v50, 0.0  ;;  %v949_v62 = vadd.f32 %v948_v4, %v944_v13  ;;  %v950_v61 = vadd.f32 %v948_v4, %v945_v3  ;;  %v951_v48 = vadd.f32 %v948_v4, %v946_v6 }
  0xef   :  { %v3314_v17 = vadd.f32 %v913_v31, %v3213_v14  ;;  %v3317_v63 = vadd.f32 %v914_v8, %v3218_v2  ;;  %v933_v5 = vmax.f32 %v929_v52, 0.0  ;;  %v935_v53 = vmul.f32 %v934_v1, %v930_v56 }
  0xf0   :  { %v952_v41 = vadd.f32 %v948_v4, %v947_v44  ;;  %v953_v10 = vmax.f32 %v949_v62, 0.0  ;;  %v954_v37 = vmax.f32 %v950_v61, 0.0  ;;  %v957_v49 = vstv %s3282_s29  ;;  %s3503_s29 = sld [smem:[#allocation8 + $0x28]] }
  0xf1   :  { %v967_v36 = vmul.f32 %v3182_v9, %v966_v12  ;;  %v968_v46 = vmul.f32 %v3185_v40, %v966_v12  ;;  %v969_v14 = vmul.f32 %v3169_v55, %v966_v12  ;;  %v970_v2 = vmul.f32 %v3173_v29, %v966_v12 }
  0xf2   :  { %v3327_v28 = vadd.f32 %v915_v21, %v3223_v42  ;;  %v936_v11 = vmul.f32 %v934_v1, %v931_v26  ;;  %v937_v39 = vmul.f32 %v934_v1, %v932_v16  ;;  %v955_v20 = vmax.f32 %v951_v48, 0.0 }
  0xf3   :  { %v938_v33 = vmul.f32 %v934_v1, %v933_v5  ;;  %v3330_v15 = vadd.f32 %v935_v53, %v3230_v45  ;;  %v971_v23 = vstv %s3300_s6  ;;  %v989_v30 = vstv %s3298_s30  ;;  %s3519_s30 = sld [smem:[#allocation10 + $0x27]]  ;;  %s3534_s6 = sld [smem:[#allocation7 + $0x29]] }
  0xf4   :  { %v956_v47 = vmax.f32 %v952_v41, 0.0  ;;  %v958_v57 = vmul.f32 %v957_v49, %v953_v10  ;;  %v959_v59 = vmul.f32 %v957_v49, %v954_v37  ;;  %v994_v19 = vstv %s3303_s9  ;;  %s3537_s9 = sld [smem:[#allocation8 + $0x29]] }
  0xf5   :  { %v972_v42 = vadd.f32 %v971_v23, %v967_v36  ;;  %v973_v60 = vadd.f32 %v971_v23, %v968_v46  ;;  %v974_v25 = vadd.f32 %v971_v23, %v969_v14  ;;  %v975_v22 = vadd.f32 %v971_v23, %v970_v2 }
  0xf6   :  { %v960_v31 = vmul.f32 %v957_v49, %v955_v20  ;;  %v990_v45 = vmul.f32 %v3182_v9, %v989_v30  ;;  %v991_v50 = vmul.f32 %v3185_v40, %v989_v30  ;;  %v992_v1 = vmul.f32 %v3169_v55, %v989_v30 }
  0xf7   :  { %v976_v51 = vmax.f32 %v972_v42, 0.0  ;;  %v977_v8 = vmax.f32 %v973_v60, 0.0  ;;  %v978_v52 = vmax.f32 %v974_v25, 0.0  ;;  %v993_v56 = vmul.f32 %v3173_v29, %v989_v30 }
  0xf8   :  { %v961_v4 = vmul.f32 %v957_v49, %v956_v47  ;;  %v979_v13 = vmax.f32 %v975_v22, 0.0  ;;  %v980_v3 = vstv %s3319_s10  ;;  %v995_v6 = vadd.f32 %v994_v19, %v990_v45  ;;  %s3539_s10 = sld [smem:[#allocation10 + $0x28]] }
  0xf9   :  { %v3351_v44 = vadd.f32 %v936_v11, %v3251_v43  ;;  %v3354_v21 = vadd.f32 %v937_v39, %v3254_v34  ;;  %v996_v26 = vadd.f32 %v994_v19, %v991_v50  ;;  %v997_v12 = vadd.f32 %v994_v19, %v992_v1 }
  0xfa   :  { %v3359_v16 = vadd.f32 %v938_v33, %v3259_v24  ;;  %v3362_v62 = vadd.f32 %v958_v57, %v3262_v18  ;;  %v3365_v61 = vadd.f32 %v959_v59, %v3265_v27  ;;  %v3368_v43 = vadd.f32 %v960_v31, %v3268_v7 }
  0xfb   :  { %v981_v34 = vmul.f32 %v980_v3, %v976_v51  ;;  %v982_v48 = vmul.f32 %v980_v3, %v977_v8  ;;  %v983_v5 = vmul.f32 %v980_v3, %v978_v52  ;;  %v998_v53 = vadd.f32 %v994_v19, %v993_v56 }
  0xfc   :  { %v3373_v41 = vadd.f32 %v961_v4, %v3273_v32  ;;  %v984_v24 = vmul.f32 %v980_v3, %v979_v13  ;;  %v999_v10 = vmax.f32 %v995_v6, 0.0  ;;  %v1012_v37 = vstv %s3334_s11  ;;  %s3546_s11 = sld [smem:[#allocation7 + $0x2a]] }
  0xfd   :  { %v1000_v18 = vmax.f32 %v996_v26, 0.0  ;;  %v1001_v49 = vmax.f32 %v997_v12, 0.0  ;;  %v1003_v36 = vstv %s3339_s13  ;;  %v1017_v27 = vstv %s3337_s12  ;;  %s3548_s12 = sld [smem:[#allocation10 + $0x29]]  ;;  %s3556_s13 = sld [smem:[#allocation8 + $0x2a]] }
  0xfe   :  { %v1013_v7 = vmul.f32 %v3182_v9, %v1012_v37  ;;  %v1014_v46 = vmul.f32 %v3185_v40, %v1012_v37  ;;  %v1015_v14 = vmul.f32 %v3169_v55, %v1012_v37  ;;  %v1016_v2 = vmul.f32 %v3173_v29, %v1012_v37 }
  0xff   :  { %v3385_v32 = vadd.f32 %v981_v34, %v3285_v58  ;;  %v3388_v11 = vadd.f32 %v982_v48, %v3288_v54  ;;  %v3391_v39 = vadd.f32 %v983_v5, %v3291_v35  ;;  %v1002_v20 = vmax.f32 %v998_v53, 0.0 }
 0x100   :  { %v3394_v33 = vadd.f32 %v984_v24, %v3294_v38  ;;  %v1004_v23 = vmul.f32 %v1003_v36, %v999_v10  ;;  %v1018_v30 = vadd.f32 %v1017_v27, %v1013_v7  ;;  %v1019_v47 = vadd.f32 %v1017_v27, %v1014_v46 }
 0x101   :  { %v1005_v57 = vmul.f32 %v1003_v36, %v1000_v18  ;;  %v1020_v59 = vadd.f32 %v1017_v27, %v1015_v14  ;;  %v1026_v19 = vstv %s3348_s15  ;;  %v1035_v58 = vstv %s3346_s14  ;;  %s3570_s14 = sld [smem:[#allocation7 + $0x2b]]  ;;  %s3582_s15 = sld [smem:[#allocation10 + $0x2a]] }
 0x102   :  { %v1006_v54 = vmul.f32 %v1003_v36, %v1001_v49  ;;  %v1021_v42 = vadd.f32 %v1017_v27, %v1016_v2  ;;  %v1022_v35 = vmax.f32 %v1018_v30, 0.0  ;;  %v1040_v60 = vstv %s3356_s16  ;;  %s3598_s16 = sld [smem:[#allocation7 + $0x2c]] }
 0x103   :  { %v1036_v38 = vmul.f32 %v3182_v9, %v1035_v58  ;;  %v1037_v25 = vmul.f32 %v3185_v40, %v1035_v58  ;;  %v1038_v22 = vmul.f32 %v3169_v55, %v1035_v58  ;;  %v1039_v31 = vmul.f32 %v3173_v29, %v1035_v58 }
 0x104   :  { %v1007_v45 = vmul.f32 %v1003_v36, %v1002_v20  ;;  %v3410_v50 = vadd.f32 %v1004_v23, %v3310_v0  ;;  %v1023_v1 = vmax.f32 %v1019_v47, 0.0  ;;  %v1058_v51 = vstv %s3370_s17  ;;  %s3600_s17 = sld [smem:[#allocation8 + $0x2b]] }
 0x105   :  { %v1024_v8 = vmax.f32 %v1020_v59, 0.0  ;;  %v1041_v52 = vadd.f32 %v1040_v60, %v1036_v38  ;;  %v1042_v56 = vadd.f32 %v1040_v60, %v1037_v25  ;;  %v1043_v4 = vadd.f32 %v1040_v60, %v1038_v22 }
 0x106   :  { %v3414_v13 = vadd.f32 %v1005_v57, %v3314_v17  ;;  %v3417_v3 = vadd.f32 %v1006_v54, %v3317_v63  ;;  %v1025_v6 = vmax.f32 %v1021_v42, 0.0  ;;  %v1027_v26 = vmul.f32 %v1026_v19, %v1022_v35 }
 0x107   :  { %v1044_v0 = vadd.f32 %v1040_v60, %v1039_v31  ;;  %v1045_v12 = vmax.f32 %v1041_v52, 0.0  ;;  %v1046_v34 = vmax.f32 %v1042_v56, 0.0  ;;  %v1049_v48 = vstv %s3382_s18  ;;  %s3603_s18 = sld [smem:[#allocation8 + $0x2c]] }
 0x108   :  { %v1059_v5 = vmul.f32 %v3182_v9, %v1058_v51  ;;  %v1060_v53 = vmul.f32 %v3185_v40, %v1058_v51  ;;  %v1061_v17 = vmul.f32 %v3169_v55, %v1058_v51  ;;  %v1062_v63 = vmul.f32 %v3173_v29, %v1058_v51 }
 0x109   :  { %v3427_v24 = vadd.f32 %v1007_v45, %v3327_v28  ;;  %v1028_v10 = vmul.f32 %v1026_v19, %v1023_v1  ;;  %v1029_v37 = vmul.f32 %v1026_v19, %v1024_v8  ;;  %v1047_v18 = vmax.f32 %v1043_v4, 0.0 }
 0x10a   :  { %v1030_v49 = vmul.f32 %v1026_v19, %v1025_v6  ;;  %v3430_v36 = vadd.f32 %v1027_v26, %v3330_v15  ;;  %v1063_v27 = vstv %s3400_s1  ;;  %v1081_v7 = vstv %s3398_s0  ;;  %s3619_s0 = sld [smem:[#allocation10 + $0x2b]]  ;;  %s3634_s1 = sld [smem:[#allocation7 + $0x2d]] }
 0x10b   :  { %v1048_v46 = vmax.f32 %v1044_v0, 0.0  ;;  %v1050_v14 = vmul.f32 %v1049_v48, %v1045_v12  ;;  %v1051_v2 = vmul.f32 %v1049_v48, %v1046_v34  ;;  %v1086_v20 = vstv %s3403_s3  ;;  %s3637_s3 = sld [smem:[#allocation8 + $0x2d]] }
 0x10c   :  { %v1064_v28 = vadd.f32 %v1063_v27, %v1059_v5  ;;  %v1065_v23 = vadd.f32 %v1063_v27, %v1060_v53  ;;  %v1066_v30 = vadd.f32 %v1063_v27, %v1061_v17  ;;  %v1067_v47 = vadd.f32 %v1063_v27, %v1062_v63 }
 0x10d   :  { %v1052_v57 = vmul.f32 %v1049_v48, %v1047_v18  ;;  %v1082_v15 = vmul.f32 %v3182_v9, %v1081_v7  ;;  %v1083_v59 = vmul.f32 %v3185_v40, %v1081_v7  ;;  %v1084_v19 = vmul.f32 %v3169_v55, %v1081_v7 }
 0x10e   :  { %v1068_v58 = vmax.f32 %v1064_v28, 0.0  ;;  %v1069_v54 = vmax.f32 %v1065_v23, 0.0  ;;  %v1070_v42 = vmax.f32 %v1066_v30, 0.0  ;;  %v1085_v35 = vmul.f32 %v3173_v29, %v1081_v7 }
 0x10f   :  { %v1053_v60 = vmul.f32 %v1049_v48, %v1048_v46  ;;  %v1071_v38 = vmax.f32 %v1067_v47, 0.0  ;;  %v1072_v25 = vstv %s3419_s19  ;;  %v1087_v22 = vadd.f32 %v1086_v20, %v1082_v15  ;;  %s3639_s19 = sld [smem:[#allocation10 + $0x2c]] }
 0x110   :  { %v3451_v31 = vadd.f32 %v1028_v10, %v3351_v44  ;;  %v3454_v45 = vadd.f32 %v1029_v37, %v3354_v21  ;;  %v1088_v1 = vadd.f32 %v1086_v20, %v1083_v59  ;;  %v1089_v51 = vadd.f32 %v1086_v20, %v1084_v19 }
 0x111   :  { %v3459_v8 = vadd.f32 %v1030_v49, %v3359_v16  ;;  %v3462_v52 = vadd.f32 %v1050_v14, %v3362_v62  ;;  %v3465_v56 = vadd.f32 %v1051_v2, %v3365_v61  ;;  %v3468_v44 = vadd.f32 %v1052_v57, %v3368_v43 }
 0x112   :  { %v1073_v21 = vmul.f32 %v1072_v25, %v1068_v58  ;;  %v1074_v4 = vmul.f32 %v1072_v25, %v1069_v54  ;;  %v1075_v6 = vmul.f32 %v1072_v25, %v1070_v42  ;;  %v1090_v26 = vadd.f32 %v1086_v20, %v1085_v35 }
 0x113   :  { %v3473_v0 = vadd.f32 %v1053_v60, %v3373_v41  ;;  %v1076_v16 = vmul.f32 %v1072_v25, %v1071_v38  ;;  %v1091_v12 = vmax.f32 %v1087_v22, 0.0  ;;  %v1104_v34 = vstv %s3434_s20  ;;  %s3646_s20 = sld [smem:[#allocation7 + $0x2e]] }
 0x114   :  { %v1092_v62 = vmax.f32 %v1088_v1, 0.0  ;;  %v1093_v48 = vmax.f32 %v1089_v51, 0.0  ;;  %v1095_v5 = vstv %s3439_s22  ;;  %v1109_v61 = vstv %s3437_s21  ;;  %s3648_s21 = sld [smem:[#allocation10 + $0x2d]]  ;;  %s3656_s22 = sld [smem:[#allocation8 + $0x2e]] }
 0x115   :  { %v1105_v43 = vmul.f32 %v3182_v9, %v1104_v34  ;;  %v1106_v53 = vmul.f32 %v3185_v40, %v1104_v34  ;;  %v1107_v17 = vmul.f32 %v3169_v55, %v1104_v34  ;;  %v1108_v63 = vmul.f32 %v3173_v29, %v1104_v34 }
 0x116   :  { %v3485_v41 = vadd.f32 %v1073_v21, %v3385_v32  ;;  %v3488_v10 = vadd.f32 %v1074_v4, %v3388_v11  ;;  %v3491_v37 = vadd.f32 %v1075_v6, %v3391_v39  ;;  %v1094_v18 = vmax.f32 %v1090_v26, 0.0 }
 0x117   :  { %v3494_v49 = vadd.f32 %v1076_v16, %v3394_v33  ;;  %v1096_v27 = vmul.f32 %v1095_v5, %v1091_v12  ;;  %v1110_v7 = vadd.f32 %v1109_v61, %v1105_v43  ;;  %v1111_v46 = vadd.f32 %v1109_v61, %v1106_v53 }
 0x118   :  { %v1097_v14 = vmul.f32 %v1095_v5, %v1092_v62  ;;  %v1112_v2 = vadd.f32 %v1109_v61, %v1107_v17  ;;  %v1118_v20 = vstv %s3448_s24  ;;  %v1127_v32 = vstv %s3446_s23  ;;  %s3670_s23 = sld [smem:[#allocation7 + $0x2f]]  ;;  %s3686_s24 = sld [smem:[#allocation10 + $0x2e]] }
 0x119   :  { %v1098_v11 = vmul.f32 %v1095_v5, %v1093_v48  ;;  %v1113_v28 = vadd.f32 %v1109_v61, %v1108_v63  ;;  %v1114_v39 = vmax.f32 %v1110_v7, 0.0  ;;  %v1132_v23 = vstv %s3456_s25  ;;  %s3702_s25 = sld [smem:[#allocation7 + $0x30]] }
 0x11a   :  { %v1128_v33 = vmul.f32 %v3182_v9, %v1127_v32  ;;  %v1129_v30 = vmul.f32 %v3185_v40, %v1127_v32  ;;  %v1130_v47 = vmul.f32 %v3169_v55, %v1127_v32  ;;  %v1131_v57 = vmul.f32 %v3173_v29, %v1127_v32 }
 0x11b   :  { %v1099_v15 = vmul.f32 %v1095_v5, %v1094_v18  ;;  %v3510_v59 = vadd.f32 %v1096_v27, %v3410_v50  ;;  %v1115_v19 = vmax.f32 %v1111_v46, 0.0  ;;  %v1150_v58 = vstv %s3470_s26  ;;  %s3704_s26 = sld [smem:[#allocation8 + $0x2f]] }
 0x11c   :  { %v1116_v54 = vmax.f32 %v1112_v2, 0.0  ;;  %v1133_v42 = vadd.f32 %v1132_v23, %v1128_v33  ;;  %v1134_v35 = vadd.f32 %v1132_v23, %v1129_v30  ;;  %v1135_v60 = vadd.f32 %v1132_v23, %v1130_v47 }
 0x11d   :  { %v3514_v38 = vadd.f32 %v1097_v14, %v3414_v13  ;;  %v3517_v25 = vadd.f32 %v1098_v11, %v3417_v3  ;;  %v1117_v22 = vmax.f32 %v1113_v28, 0.0  ;;  %v1119_v1 = vmul.f32 %v1118_v20, %v1114_v39 }
 0x11e   :  { %v1136_v50 = vadd.f32 %v1132_v23, %v1131_v57  ;;  %v1137_v51 = vmax.f32 %v1133_v42, 0.0  ;;  %v1138_v21 = vmax.f32 %v1134_v35, 0.0  ;;  %v1141_v4 = vstv %s3482_s27  ;;  %s3707_s27 = sld [smem:[#allocation8 + $0x30]] }
 0x11f   :  { %v1151_v6 = vmul.f32 %v3182_v9, %v1150_v58  ;;  %v1152_v26 = vmul.f32 %v3185_v40, %v1150_v58  ;;  %v1153_v13 = vmul.f32 %v3169_v55, %v1150_v58  ;;  %v1154_v3 = vmul.f32 %v3173_v29, %v1150_v58 }
 0x120   :  { %v3527_v16 = vadd.f32 %v1099_v15, %v3427_v24  ;;  %v1120_v12 = vmul.f32 %v1118_v20, %v1115_v19  ;;  %v1121_v34 = vmul.f32 %v1118_v20, %v1116_v54  ;;  %v1139_v62 = vmax.f32 %v1135_v60, 0.0 }
 0x121   :  { %v1122_v48 = vmul.f32 %v1118_v20, %v1117_v22  ;;  %v3530_v5 = vadd.f32 %v1119_v1, %v3430_v36  ;;  %v1155_v61 = vstv %s3500_s2  ;;  %v1173_v43 = vstv %s3498_s28  ;;  %s3727_s28 = sld [smem:[#allocation10 + $0x2f]]  ;;  %s3742_s2 = sld [smem:[#allocation7 + $0x31]] }
 0x122   :  { %v1140_v53 = vmax.f32 %v1136_v50, 0.0  ;;  %v1142_v17 = vmul.f32 %v1141_v4, %v1137_v51  ;;  %v1143_v63 = vmul.f32 %v1141_v4, %v1138_v21  ;;  %v1178_v18 = vstv %s3503_s29  ;;  %s3745_s29 = sld [smem:[#allocation8 + $0x31]] }
 0x123   :  { %v1156_v24 = vadd.f32 %v1155_v61, %v1151_v6  ;;  %v1157_v27 = vadd.f32 %v1155_v61, %v1152_v26  ;;  %v1158_v7 = vadd.f32 %v1155_v61, %v1153_v13  ;;  %v1159_v46 = vadd.f32 %v1155_v61, %v1154_v3 }
 0x124   :  { %v1144_v14 = vmul.f32 %v1141_v4, %v1139_v62  ;;  %v1174_v36 = vmul.f32 %v3182_v9, %v1173_v43  ;;  %v1175_v2 = vmul.f32 %v3185_v40, %v1173_v43  ;;  %v1176_v20 = vmul.f32 %v3169_v55, %v1173_v43 }
 0x125   :  { %v1160_v32 = vmax.f32 %v1156_v24, 0.0  ;;  %v1161_v11 = vmax.f32 %v1157_v27, 0.0  ;;  %v1162_v28 = vmax.f32 %v1158_v7, 0.0  ;;  %v1177_v39 = vmul.f32 %v3173_v29, %v1173_v43 }
 0x126   :  { %v1145_v23 = vmul.f32 %v1141_v4, %v1140_v53  ;;  %v1163_v33 = vmax.f32 %v1159_v46, 0.0  ;;  %v1164_v30 = vstv %s3519_s30  ;;  %v1179_v47 = vadd.f32 %v1178_v18, %v1174_v36  ;;  %s3747_s30 = sld [smem:[#allocation10 + $0x30]] }
 0x127   :  { %v3551_v57 = vadd.f32 %v1120_v12, %v3451_v31  ;;  %v3554_v15 = vadd.f32 %v1121_v34, %v3454_v45  ;;  %v1180_v19 = vadd.f32 %v1178_v18, %v1175_v2  ;;  %v1181_v58 = vadd.f32 %v1178_v18, %v1176_v20 }
 0x128   :  { %v3559_v54 = vadd.f32 %v1122_v48, %v3459_v8  ;;  %v3562_v42 = vadd.f32 %v1142_v17, %v3462_v52  ;;  %v3565_v35 = vadd.f32 %v1143_v63, %v3465_v56  ;;  %v3568_v31 = vadd.f32 %v1144_v14, %v3468_v44 }
 0x129   :  { %v1165_v45 = vmul.f32 %v1164_v30, %v1160_v32  ;;  %v1166_v60 = vmul.f32 %v1164_v30, %v1161_v11  ;;  %v1167_v22 = vmul.f32 %v1164_v30, %v1162_v28  ;;  %v1182_v1 = vadd.f32 %v1178_v18, %v1177_v39 }
 0x12a   :  { %v3573_v50 = vadd.f32 %v1145_v23, %v3473_v0  ;;  %v1168_v8 = vmul.f32 %v1164_v30, %v1163_v33  ;;  %v1183_v51 = vmax.f32 %v1179_v47, 0.0  ;;  %v1196_v21 = vstv %s3534_s6  ;;  %s3754_s6 = sld [smem:[#allocation7 + $0x32]] }
 0x12b   :  { %v1184_v52 = vmax.f32 %v1180_v19, 0.0  ;;  %v1185_v4 = vmax.f32 %v1181_v58, 0.0  ;;  %v1187_v6 = vstv %s3539_s10  ;;  %v1201_v56 = vstv %s3537_s9  ;;  %s3756_s9 = sld [smem:[#allocation10 + $0x31]]  ;;  %s3764_s10 = sld [smem:[#allocation8 + $0x32]] }
 0x12c   :  { %v1197_v44 = vmul.f32 %v3182_v9, %v1196_v21  ;;  %v1198_v26 = vmul.f32 %v3185_v40, %v1196_v21  ;;  %v1199_v13 = vmul.f32 %v3169_v55, %v1196_v21  ;;  %v1200_v3 = vmul.f32 %v3173_v29, %v1196_v21 }
 0x12d   :  { %v3585_v0 = vadd.f32 %v1165_v45, %v3485_v41  ;;  %v3588_v12 = vadd.f32 %v1166_v60, %v3488_v10  ;;  %v3591_v34 = vadd.f32 %v1167_v22, %v3491_v37  ;;  %v1186_v62 = vmax.f32 %v1182_v1, 0.0 }
 0x12e   :  { %v3594_v48 = vadd.f32 %v1168_v8, %v3494_v49  ;;  %v1188_v61 = vmul.f32 %v1187_v6, %v1183_v51  ;;  %v1202_v43 = vadd.f32 %v1201_v56, %v1197_v44  ;;  %v1203_v53 = vadd.f32 %v1201_v56, %v1198_v26 }
 0x12f   :  { %v1189_v17 = vmul.f32 %v1187_v6, %v1184_v52  ;;  %v1204_v63 = vadd.f32 %v1201_v56, %v1199_v13  ;;  %v1210_v18 = vstv %s3548_s12  ;;  %v1219_v41 = vstv %s3546_s11  ;;  %s3778_s11 = sld [smem:[#allocation7 + $0x33]]  ;;  %s3790_s12 = sld [smem:[#allocation10 + $0x32]] }
 0x130   :  { %v1190_v10 = vmul.f32 %v1187_v6, %v1185_v4  ;;  %v1205_v24 = vadd.f32 %v1201_v56, %v1200_v3  ;;  %v1206_v37 = vmax.f32 %v1202_v43, 0.0  ;;  %v1224_v27 = vstv %s3556_s13  ;;  %s3806_s13 = sld [smem:[#allocation7 + $0x34]] }
 0x131   :  { %v1220_v49 = vmul.f32 %v3182_v9, %v1219_v41  ;;  %v1221_v7 = vmul.f32 %v3185_v40, %v1219_v41  ;;  %v1222_v46 = vmul.f32 %v3169_v55, %v1219_v41  ;;  %v1223_v14 = vmul.f32 %v3173_v29, %v1219_v41 }
 0x132   :  { %v1191_v36 = vmul.f32 %v1187_v6, %v1186_v62  ;;  %v3610_v2 = vadd.f32 %v1188_v61, %v3510_v59  ;;  %v1207_v20 = vmax.f32 %v1203_v53, 0.0  ;;  %v1242_v32 = vstv %s3570_s14  ;;  %s3808_s14 = sld [smem:[#allocation8 + $0x33]] }
 0x133   :  { %v1208_v11 = vmax.f32 %v1204_v63, 0.0  ;;  %v1225_v28 = vadd.f32 %v1224_v27, %v1220_v49  ;;  %v1226_v39 = vadd.f32 %v1224_v27, %v1221_v7  ;;  %v1227_v23 = vadd.f32 %v1224_v27, %v1222_v46 }
 0x134   :  { %v3614_v33 = vadd.f32 %v1189_v17, %v3514_v38  ;;  %v3617_v30 = vadd.f32 %v1190_v10, %v3517_v25  ;;  %v1209_v47 = vmax.f32 %v1205_v24, 0.0  ;;  %v1211_v19 = vmul.f32 %v1210_v18, %v1206_v37 }
 0x135   :  { %v1228_v59 = vadd.f32 %v1224_v27, %v1223_v14  ;;  %v1229_v58 = vmax.f32 %v1225_v28, 0.0  ;;  %v1230_v45 = vmax.f32 %v1226_v39, 0.0  ;;  %v1233_v60 = vstv %s3582_s15  ;;  %s3811_s15 = sld [smem:[#allocation8 + $0x34]] }
 0x136   :  { %v1243_v22 = vmul.f32 %v3182_v9, %v1242_v32  ;;  %v1244_v1 = vmul.f32 %v3185_v40, %v1242_v32  ;;  %v1245_v38 = vmul.f32 %v3169_v55, %v1242_v32  ;;  %v1246_v25 = vmul.f32 %v3173_v29, %v1242_v32 }
 0x137   :  { %v3627_v8 = vadd.f32 %v1191_v36, %v3527_v16  ;;  %v1212_v51 = vmul.f32 %v1210_v18, %v1207_v20  ;;  %v1213_v21 = vmul.f32 %v1210_v18, %v1208_v11  ;;  %v1231_v52 = vmax.f32 %v1227_v23, 0.0 }
 0x138   :  { %v1214_v4 = vmul.f32 %v1210_v18, %v1209_v47  ;;  %v3630_v6 = vadd.f32 %v1211_v19, %v3530_v5  ;;  %v1247_v56 = vstv %s3600_s17  ;;  %v1265_v44 = vstv %s3598_s16  ;;  %s3827_s16 = sld [smem:[#allocation10 + $0x33]]  ;;  %s3842_s17 = sld [smem:[#allocation7 + $0x35]] }
 0x139   :  { %v1232_v26 = vmax.f32 %v1228_v59, 0.0  ;;  %v1234_v13 = vmul.f32 %v1233_v60, %v1229_v58  ;;  %v1235_v3 = vmul.f32 %v1233_v60, %v1230_v45  ;;  %v1270_v62 = vstv %s3603_s18  ;;  %s3845_s18 = sld [smem:[#allocation8 + $0x35]] }
 0x13a   :  { %v1248_v16 = vadd.f32 %v1247_v56, %v1243_v22  ;;  %v1249_v61 = vadd.f32 %v1247_v56, %v1244_v1  ;;  %v1250_v43 = vadd.f32 %v1247_v56, %v1245_v38  ;;  %v1251_v53 = vadd.f32 %v1247_v56, %v1246_v25  ;;  %v3680_v22 = vld [vmem:[#allocation3 + $0x10] sm:$0xff]  ;;  %v3683_v38 = vld [vmem:[#allocation3 + $0x18] sm:$0xff] }
 0x13b   :  { %v1236_v17 = vmul.f32 %v1233_v60, %v1231_v52  ;;  %v1266_v5 = vmul.f32 %v3182_v9, %v1265_v44  ;;  %v1267_v63 = vmul.f32 %v3185_v40, %v1265_v44  ;;  %v1268_v18 = vmul.f32 %v3169_v55, %v1265_v44 }
 0x13c   :  { %v1252_v41 = vmax.f32 %v1248_v16, 0.0  ;;  %v1253_v10 = vmax.f32 %v1249_v61, 0.0  ;;  %v1254_v24 = vmax.f32 %v1250_v43, 0.0  ;;  %v1269_v37 = vmul.f32 %v3173_v29, %v1265_v44  ;;  %v3712_v61 = vld [vmem:[#allocation3 + $0x8] sm:$0xff] }
 0x13d   :  { %v1237_v27 = vmul.f32 %v1233_v60, %v1232_v26  ;;  %v1255_v49 = vmax.f32 %v1251_v53, 0.0  ;;  %v1256_v7 = vstv %s3619_s0  ;;  %v1271_v46 = vadd.f32 %v1270_v62, %v1266_v5  ;;  %s3847_s0 = sld [smem:[#allocation10 + $0x34]] }
 0x13e   :  { %v3651_v14 = vadd.f32 %v1212_v51, %v3551_v57  ;;  %v3654_v36 = vadd.f32 %v1213_v21, %v3554_v15  ;;  %v1272_v55 = vadd.f32 %v1270_v62, %v1267_v63  ;;  %v1273_v20 = vadd.f32 %v1270_v62, %v1268_v18 }
 0x13f   :  { %v3659_v29 = vadd.f32 %v1214_v4, %v3559_v54  ;;  %v3662_v32 = vadd.f32 %v1234_v13, %v3562_v42  ;;  %v3665_v11 = vadd.f32 %v1235_v3, %v3565_v35  ;;  %v3668_v57 = vadd.f32 %v1236_v17, %v3568_v31 }
 0x140   :  { %v1257_v15 = vmul.f32 %v1256_v7, %v1252_v41  ;;  %v1258_v28 = vmul.f32 %v1256_v7, %v1253_v10  ;;  %v1259_v39 = vmul.f32 %v1256_v7, %v1254_v24  ;;  %v1274_v23 = vadd.f32 %v1270_v62, %v1269_v37 }
 0x141   :  { %v3673_v47 = vadd.f32 %v1237_v27, %v3573_v50  ;;  %v1260_v54 = vmul.f32 %v1256_v7, %v1255_v49  ;;  %v1275_v19 = vmax.f32 %v1271_v46, 0.0  ;;  %v1288_v59 = vstv %s3634_s1  ;;  %s3854_s1 = sld [smem:[#allocation7 + $0x36]] }
 0x142   :  { %v1276_v42 = vmax.f32 %v1272_v55, 0.0  ;;  %v1277_v58 = vmax.f32 %v1273_v20, 0.0  ;;  %v1279_v45 = vstv %s3639_s19  ;;  %v1293_v35 = vstv %s3637_s3  ;;  %s3856_s3 = sld [smem:[#allocation10 + $0x35]]  ;;  %s3864_s19 = sld [smem:[#allocation8 + $0x36]] }
 0x143   :  { %v1289_v60 = vmul.f32 %v3182_v9, %v1288_v59  ;;  %v1290_v31 = vmul.f32 %v3185_v40, %v1288_v59  ;;  %v1291_v1 = vmul.f32 %v3680_v22, %v1288_v59  ;;  %v1292_v50 = vmul.f32 %v3683_v38, %v1288_v59 }
 0x144   :  { %v3689_v25 = vadd.f32 %v1257_v15, %v3585_v0  ;;  %v3692_v51 = vadd.f32 %v1258_v28, %v3588_v12  ;;  %v3695_v9 = vadd.f32 %v1259_v39, %v3591_v34  ;;  %v1278_v40 = vmax.f32 %v1274_v23, 0.0 }
 0x145   :  { %v3698_v21 = vadd.f32 %v1260_v54, %v3594_v48  ;;  %v1280_v52 = vmul.f32 %v1279_v45, %v1275_v19  ;;  %v1294_v4 = vadd.f32 %v1293_v35, %v1289_v60  ;;  %v1295_v56 = vadd.f32 %v1293_v35, %v1290_v31  ;;  %v3709_v48 = vld [vmem:[#allocation3] sm:$0xff] }
 0x146   :  { %v1281_v44 = vmul.f32 %v1279_v45, %v1276_v42  ;;  %v1296_v26 = vadd.f32 %v1293_v35, %v1291_v1  ;;  %v1302_v13 = vstv %s3648_s21  ;;  %v1311_v3 = vstv %s3646_s20  ;;  %s3878_s20 = sld [smem:[#allocation7 + $0x37]]  ;;  %s3890_s21 = sld [smem:[#allocation10 + $0x36]] }
 0x147   :  { %v1282_v0 = vmul.f32 %v1279_v45, %v1277_v58  ;;  %v1297_v12 = vadd.f32 %v1293_v35, %v1292_v50  ;;  %v1298_v34 = vmax.f32 %v1294_v4, 0.0  ;;  %v1316_v62 = vstv %s3656_s22  ;;  %s3906_s22 = sld [smem:[#allocation7 + $0x38]] }
 0x148   :  { %v1312_v16 = vmul.f32 %v3709_v48, %v1311_v3  ;;  %v1313_v43 = vmul.f32 %v3712_v61, %v1311_v3  ;;  %v1314_v53 = vmul.f32 %v3680_v22, %v1311_v3  ;;  %v1315_v17 = vmul.f32 %v3683_v38, %v1311_v3 }
 0x149   :  { %v1283_v5 = vmul.f32 %v1279_v45, %v1278_v40  ;;  %v3718_v63 = vadd.f32 %v1280_v52, %v3610_v2  ;;  %v1299_v18 = vmax.f32 %v1295_v56, 0.0  ;;  %v1334_v41 = vstv %s3670_s23  ;;  %s3908_s23 = sld [smem:[#allocation8 + $0x37]] }
 0x14a   :  { %v1300_v10 = vmax.f32 %v1296_v26, 0.0  ;;  %v1317_v24 = vadd.f32 %v1316_v62, %v1312_v16  ;;  %v1318_v37 = vadd.f32 %v1316_v62, %v1313_v43  ;;  %v1319_v27 = vadd.f32 %v1316_v62, %v1314_v53 }
 0x14b   :  { %v3722_v49 = vadd.f32 %v1281_v44, %v3614_v33  ;;  %v3725_v7 = vadd.f32 %v1282_v0, %v3617_v30  ;;  %v1301_v46 = vmax.f32 %v1297_v12, 0.0  ;;  %v1303_v55 = vmul.f32 %v1302_v13, %v1298_v34 }
 0x14c   :  { %v1320_v2 = vadd.f32 %v1316_v62, %v1315_v17  ;;  %v1321_v20 = vmax.f32 %v1317_v24, 0.0  ;;  %v1322_v15 = vmax.f32 %v1318_v37, 0.0  ;;  %v1325_v28 = vstv %s3686_s24  ;;  %s3911_s24 = sld [smem:[#allocation8 + $0x38]] }
 0x14d   :  { %v1335_v39 = vmul.f32 %v3709_v48, %v1334_v41  ;;  %v1336_v23 = vmul.f32 %v3712_v61, %v1334_v41  ;;  %v1337_v33 = vmul.f32 %v3680_v22, %v1334_v41  ;;  %v1338_v30 = vmul.f32 %v3683_v38, %v1334_v41 }
 0x14e   :  { %v3735_v54 = vadd.f32 %v1283_v5, %v3627_v8  ;;  %v1304_v19 = vmul.f32 %v1302_v13, %v1299_v18  ;;  %v1305_v59 = vmul.f32 %v1302_v13, %v1300_v10  ;;  %v1323_v42 = vmax.f32 %v1319_v27, 0.0 }
 0x14f   :  { %v1306_v58 = vmul.f32 %v1302_v13, %v1301_v46  ;;  %v3738_v45 = vadd.f32 %v1303_v55, %v3630_v6  ;;  %v1339_v35 = vstv %s3704_s26  ;;  %v1357_v60 = vstv %s3702_s25  ;;  %s3927_s25 = sld [smem:[#allocation10 + $0x37]]  ;;  %s3942_s26 = sld [smem:[#allocation7 + $0x39]] }
 0x150   :  { %v1324_v31 = vmax.f32 %v1320_v2, 0.0  ;;  %v1326_v1 = vmul.f32 %v1325_v28, %v1321_v20  ;;  %v1327_v50 = vmul.f32 %v1325_v28, %v1322_v15  ;;  %v1362_v40 = vstv %s3707_s27  ;;  %s3945_s27 = sld [smem:[#allocation8 + $0x39]] }
 0x151   :  { %v1340_v8 = vadd.f32 %v1339_v35, %v1335_v39  ;;  %v1341_v52 = vadd.f32 %v1339_v35, %v1336_v23  ;;  %v1342_v4 = vadd.f32 %v1339_v35, %v1337_v33  ;;  %v1343_v56 = vadd.f32 %v1339_v35, %v1338_v30 }
 0x152   :  { %v1328_v44 = vmul.f32 %v1325_v28, %v1323_v42  ;;  %v1358_v6 = vmul.f32 %v3709_v48, %v1357_v60  ;;  %v1359_v26 = vmul.f32 %v3712_v61, %v1357_v60  ;;  %v1360_v13 = vmul.f32 %v3680_v22, %v1357_v60 }
 0x153   :  { %v1344_v3 = vmax.f32 %v1340_v8, 0.0  ;;  %v1345_v0 = vmax.f32 %v1341_v52, 0.0  ;;  %v1346_v12 = vmax.f32 %v1342_v4, 0.0  ;;  %v1361_v34 = vmul.f32 %v3683_v38, %v1357_v60 }
 0x154   :  { %v1329_v62 = vmul.f32 %v1325_v28, %v1324_v31  ;;  %v1347_v16 = vmax.f32 %v1343_v56, 0.0  ;;  %v1348_v43 = vstv %s3727_s28  ;;  %v1363_v53 = vadd.f32 %v1362_v40, %v1358_v6  ;;  %s3947_s28 = sld [smem:[#allocation10 + $0x38]] }
 0x155   :  { %v3759_v17 = vadd.f32 %v1304_v19, %v3651_v14  ;;  %v3762_v5 = vadd.f32 %v1305_v59, %v3654_v36  ;;  %v1364_v18 = vadd.f32 %v1362_v40, %v1359_v26  ;;  %v1365_v41 = vadd.f32 %v1362_v40, %v1360_v13 }
 0x156   :  { %v3767_v10 = vadd.f32 %v1306_v58, %v3659_v29  ;;  %v3770_v24 = vadd.f32 %v1326_v1, %v3662_v32  ;;  %v3773_v37 = vadd.f32 %v1327_v50, %v3665_v11  ;;  %v3776_v14 = vadd.f32 %v1328_v44, %v3668_v57 }
 0x157   :  { %v1349_v36 = vmul.f32 %v1348_v43, %v1344_v3  ;;  %v1350_v27 = vmul.f32 %v1348_v43, %v1345_v0  ;;  %v1351_v46 = vmul.f32 %v1348_v43, %v1346_v12  ;;  %v1366_v55 = vadd.f32 %v1362_v40, %v1361_v34 }
 0x158   :  { %v3781_v2 = vadd.f32 %v1329_v62, %v3673_v47  ;;  %v1352_v29 = vmul.f32 %v1348_v43, %v1347_v16  ;;  %v1367_v20 = vmax.f32 %v1363_v53, 0.0  ;;  %v1380_v15 = vstv %s3742_s2  ;;  %s3954_s2 = sld [smem:[#allocation7 + $0x3a]] }
 0x159   :  { %v1368_v32 = vmax.f32 %v1364_v18, 0.0  ;;  %v1369_v28 = vmax.f32 %v1365_v41, 0.0  ;;  %v1371_v39 = vstv %s3747_s30  ;;  %v1385_v11 = vstv %s3745_s29  ;;  %s3956_s29 = sld [smem:[#allocation10 + $0x39]]  ;;  %s3964_s30 = sld [smem:[#allocation8 + $0x3a]] }
 0x15a   :  { %v1381_v57 = vmul.f32 %v3709_v48, %v1380_v15  ;;  %v1382_v23 = vmul.f32 %v3712_v61, %v1380_v15  ;;  %v1383_v33 = vmul.f32 %v3680_v22, %v1380_v15  ;;  %v1384_v30 = vmul.f32 %v3683_v38, %v1380_v15 }
 0x15b   :  { %v3793_v47 = vadd.f32 %v1349_v36, %v3689_v25  ;;  %v3796_v19 = vadd.f32 %v1350_v27, %v3692_v51  ;;  %v3799_v59 = vadd.f32 %v1351_v46, %v3695_v9  ;;  %v1370_v42 = vmax.f32 %v1366_v55, 0.0 }
 0x15c   :  { %v3802_v58 = vadd.f32 %v1352_v29, %v3698_v21  ;;  %v1372_v35 = vmul.f32 %v1371_v39, %v1367_v20  ;;  %v1386_v60 = vadd.f32 %v1385_v11, %v1381_v57  ;;  %v1387_v31 = vadd.f32 %v1385_v11, %v1382_v23 }
 0x15d   :  { %v1373_v1 = vmul.f32 %v1371_v39, %v1368_v32  ;;  %v1388_v50 = vadd.f32 %v1385_v11, %v1383_v33  ;;  %v1394_v40 = vstv %s3756_s9  ;;  %v1403_v25 = vstv %s3754_s6  ;;  %s3978_s6 = sld [smem:[#allocation7 + $0x3b]]  ;;  %s3990_s9 = sld [smem:[#allocation10 + $0x3a]] }
 0x15e   :  { %v1374_v51 = vmul.f32 %v1371_v39, %v1369_v28  ;;  %v1389_v8 = vadd.f32 %v1385_v11, %v1384_v30  ;;  %v1390_v9 = vmax.f32 %v1386_v60, 0.0  ;;  %v1408_v52 = vstv %s3764_s10  ;;  %s4006_s10 = sld [smem:[#allocation7 + $0x3c]] }
 0x15f   :  { %v1404_v21 = vmul.f32 %v3709_v48, %v1403_v25  ;;  %v1405_v4 = vmul.f32 %v3712_v61, %v1403_v25  ;;  %v1406_v56 = vmul.f32 %v3680_v22, %v1403_v25  ;;  %v1407_v44 = vmul.f32 %v3683_v38, %v1403_v25 }
 0x160   :  { %v1375_v6 = vmul.f32 %v1371_v39, %v1370_v42  ;;  %v3818_v26 = vadd.f32 %v1372_v35, %v3718_v63  ;;  %v1391_v13 = vmax.f32 %v1387_v31, 0.0  ;;  %v1426_v3 = vstv %s3778_s11  ;;  %s4008_s11 = sld [smem:[#allocation8 + $0x3b]] }
 0x161   :  { %v1392_v0 = vmax.f32 %v1388_v50, 0.0  ;;  %v1409_v12 = vadd.f32 %v1408_v52, %v1404_v21  ;;  %v1410_v34 = vadd.f32 %v1408_v52, %v1405_v4  ;;  %v1411_v62 = vadd.f32 %v1408_v52, %v1406_v56 }
 0x162   :  { %v3822_v16 = vadd.f32 %v1373_v1, %v3722_v49  ;;  %v3825_v43 = vadd.f32 %v1374_v51, %v3725_v7  ;;  %v1393_v53 = vmax.f32 %v1389_v8, 0.0  ;;  %v1395_v18 = vmul.f32 %v1394_v40, %v1390_v9 }
 0x163   :  { %v1412_v63 = vadd.f32 %v1408_v52, %v1407_v44  ;;  %v1413_v41 = vmax.f32 %v1409_v12, 0.0  ;;  %v1414_v36 = vmax.f32 %v1410_v34, 0.0  ;;  %v1417_v27 = vstv %s3790_s12  ;;  %s4011_s12 = sld [smem:[#allocation8 + $0x3c]] }
 0x164   :  { %v1427_v46 = vmul.f32 %v3709_v48, %v1426_v3  ;;  %v1428_v55 = vmul.f32 %v3712_v61, %v1426_v3  ;;  %v1429_v49 = vmul.f32 %v3680_v22, %v1426_v3  ;;  %v1430_v7 = vmul.f32 %v3683_v38, %v1426_v3 }
 0x165   :  { %v3835_v29 = vadd.f32 %v1375_v6, %v3735_v54  ;;  %v1396_v20 = vmul.f32 %v1394_v40, %v1391_v13  ;;  %v1397_v15 = vmul.f32 %v1394_v40, %v1392_v0  ;;  %v1415_v32 = vmax.f32 %v1411_v62, 0.0 }
 0x166   :  { %v1398_v28 = vmul.f32 %v1394_v40, %v1393_v53  ;;  %v3838_v39 = vadd.f32 %v1395_v18, %v3738_v45  ;;  %v1431_v11 = vstv %s3808_s14  ;;  %v1449_v57 = vstv %s3806_s13  ;;  %s4027_s13 = sld [smem:[#allocation10 + $0x3b]]  ;;  %s4042_s14 = sld [smem:[#allocation7 + $0x3d]] }
 0x167   :  { %v1416_v23 = vmax.f32 %v1412_v63, 0.0  ;;  %v1418_v33 = vmul.f32 %v1417_v27, %v1413_v41  ;;  %v1419_v30 = vmul.f32 %v1417_v27, %v1414_v36  ;;  %v1454_v42 = vstv %s3811_s15  ;;  %s4045_s15 = sld [smem:[#allocation8 + $0x3d]] }
 0x168   :  { %v1432_v54 = vadd.f32 %v1431_v11, %v1427_v46  ;;  %v1433_v35 = vadd.f32 %v1431_v11, %v1428_v55  ;;  %v1434_v60 = vadd.f32 %v1431_v11, %v1429_v49  ;;  %v1435_v31 = vadd.f32 %v1431_v11, %v1430_v7 }
 0x169   :  { %v1420_v1 = vmul.f32 %v1417_v27, %v1415_v32  ;;  %v1450_v45 = vmul.f32 %v3709_v48, %v1449_v57  ;;  %v1451_v50 = vmul.f32 %v3712_v61, %v1449_v57  ;;  %v1452_v40 = vmul.f32 %v3680_v22, %v1449_v57 }
 0x16a   :  { %v1436_v25 = vmax.f32 %v1432_v54, 0.0  ;;  %v1437_v51 = vmax.f32 %v1433_v35, 0.0  ;;  %v1438_v8 = vmax.f32 %v1434_v60, 0.0  ;;  %v1453_v9 = vmul.f32 %v3683_v38, %v1449_v57 }
 0x16b   :  { %v1421_v52 = vmul.f32 %v1417_v27, %v1416_v23  ;;  %v1439_v21 = vmax.f32 %v1435_v31, 0.0  ;;  %v1440_v4 = vstv %s3827_s16  ;;  %v1455_v56 = vadd.f32 %v1454_v42, %v1450_v45  ;;  %s4047_s16 = sld [smem:[#allocation10 + $0x3c]] }
 0x16c   :  { %v3859_v44 = vadd.f32 %v1396_v20, %v3759_v17  ;;  %v3862_v6 = vadd.f32 %v1397_v15, %v3762_v5  ;;  %v1456_v13 = vadd.f32 %v1454_v42, %v1451_v50  ;;  %v1457_v3 = vadd.f32 %v1454_v42, %v1452_v40 }
 0x16d   :  { %v3867_v0 = vadd.f32 %v1398_v28, %v3767_v10  ;;  %v3870_v12 = vadd.f32 %v1418_v33, %v3770_v24  ;;  %v3873_v34 = vadd.f32 %v1419_v30, %v3773_v37  ;;  %v3876_v17 = vadd.f32 %v1420_v1, %v3776_v14 }
 0x16e   :  { %v1441_v5 = vmul.f32 %v1440_v4, %v1436_v25  ;;  %v1442_v62 = vmul.f32 %v1440_v4, %v1437_v51  ;;  %v1443_v53 = vmul.f32 %v1440_v4, %v1438_v8  ;;  %v1458_v18 = vadd.f32 %v1454_v42, %v1453_v9 }
 0x16f   :  { %v3881_v63 = vadd.f32 %v1421_v52, %v3781_v2  ;;  %v1444_v10 = vmul.f32 %v1440_v4, %v1439_v21  ;;  %v1459_v41 = vmax.f32 %v1455_v56, 0.0  ;;  %v1472_v36 = vstv %s3842_s17  ;;  %s4054_s17 = sld [smem:[#allocation7 + $0x3e]] }
 0x170   :  { %v1460_v24 = vmax.f32 %v1456_v13, 0.0  ;;  %v1461_v27 = vmax.f32 %v1457_v3, 0.0  ;;  %v1463_v46 = vstv %s3847_s0  ;;  %v1477_v37 = vstv %s3845_s18  ;;  %s4056_s18 = sld [smem:[#allocation10 + $0x3d]]  ;;  %s4064_s0 = sld [smem:[#allocation8 + $0x3e]] }
 0x171   :  { %v1473_v14 = vmul.f32 %v3709_v48, %v1472_v36  ;;  %v1474_v55 = vmul.f32 %v3712_v61, %v1472_v36  ;;  %v1475_v49 = vmul.f32 %v3680_v22, %v1472_v36  ;;  %v1476_v7 = vmul.f32 %v3683_v38, %v1472_v36 }
 0x172   :  { %v3893_v2 = vadd.f32 %v1441_v5, %v3793_v47  ;;  %v3896_v20 = vadd.f32 %v1442_v62, %v3796_v19  ;;  %v3899_v15 = vadd.f32 %v1443_v53, %v3799_v59  ;;  %v1462_v32 = vmax.f32 %v1458_v18, 0.0 }
 0x173   :  { %v3902_v28 = vadd.f32 %v1444_v10, %v3802_v58  ;;  %v1464_v11 = vmul.f32 %v1463_v46, %v1459_v41  ;;  %v1478_v57 = vadd.f32 %v1477_v37, %v1473_v14  ;;  %v1479_v23 = vadd.f32 %v1477_v37, %v1474_v55 }
 0x174   :  { %v1465_v33 = vmul.f32 %v1463_v46, %v1460_v24  ;;  %v1480_v30 = vadd.f32 %v1477_v37, %v1475_v49  ;;  %v1486_v42 = vstv %s3856_s3  ;;  %v1495_v47 = vstv %s3854_s1  ;;  %s4078_s1 = sld [smem:[#allocation7 + $0x3f]]  ;;  %s4086_s3 = sld [smem:[#allocation10 + $0x3e]] }
 0x175   :  { %v1466_v19 = vmul.f32 %v1463_v46, %v1461_v27  ;;  %v1481_v54 = vadd.f32 %v1477_v37, %v1476_v7  ;;  %v1482_v59 = vmax.f32 %v1478_v57, 0.0  ;;  %v1500_v35 = vstv %s3864_s19  ;;  %s4106_s19 = sld [smem:[#allocation8 + $0x3f]] }
 0x176   :  { %v1496_v58 = vmul.f32 %v3709_v48, %v1495_v47  ;;  %v1497_v60 = vmul.f32 %v3712_v61, %v1495_v47  ;;  %v1498_v31 = vmul.f32 %v3680_v22, %v1495_v47  ;;  %v1499_v1 = vmul.f32 %v3683_v38, %v1495_v47 }
 0x177   :  { %v1467_v45 = vmul.f32 %v1463_v46, %v1462_v32  ;;  %v3918_v50 = vadd.f32 %v1464_v11, %v3818_v26  ;;  %v1483_v40 = vmax.f32 %v1479_v23, 0.0  ;;  %v1518_v25 = vstv %s3878_s20  ;;  %s4114_s20 = sld [smem:[#allocation10 + $0x3f]] }
 0x178   :  { %v1484_v51 = vmax.f32 %v1480_v30, 0.0  ;;  %v1501_v8 = vadd.f32 %v1500_v35, %v1496_v58  ;;  %v1502_v9 = vadd.f32 %v1500_v35, %v1497_v60  ;;  %v1503_v52 = vadd.f32 %v1500_v35, %v1498_v31 }
 0x179   :  { %v3922_v21 = vadd.f32 %v1465_v33, %v3822_v16  ;;  %v3925_v4 = vadd.f32 %v1466_v19, %v3825_v43  ;;  %v1485_v56 = vmax.f32 %v1481_v54, 0.0  ;;  %v1487_v13 = vmul.f32 %v1486_v42, %v1482_v59 }
 0x17a   :  { %v1504_v26 = vadd.f32 %v1500_v35, %v1499_v1  ;;  %v1505_v3 = vmax.f32 %v1501_v8, 0.0  ;;  %v1506_v5 = vmax.f32 %v1502_v9, 0.0  ;;  %v1509_v62 = vstv %s3890_s21 }
 0x17b   :  { %v1519_v53 = vmul.f32 %v3709_v48, %v1518_v25  ;;  %v1520_v18 = vmul.f32 %v3712_v61, %v1518_v25  ;;  %v1521_v16 = vmul.f32 %v3680_v22, %v1518_v25  ;;  %v1522_v43 = vmul.f32 %v3683_v38, %v1518_v25 }
 0x17c   :  { %v3935_v10 = vadd.f32 %v1467_v45, %v3835_v29  ;;  %v1488_v41 = vmul.f32 %v1486_v42, %v1483_v40  ;;  %v1489_v36 = vmul.f32 %v1486_v42, %v1484_v51  ;;  %v1507_v24 = vmax.f32 %v1503_v52, 0.0 }
 0x17d   :  { %v1490_v27 = vmul.f32 %v1486_v42, %v1485_v56  ;;  %v3938_v46 = vadd.f32 %v1487_v13, %v3838_v39  ;;  %v1523_v37 = vstv %s3908_s23  ;;  %v1541_v14 = vstv %s3906_s22  ;;  %s2063_s23 = smov [#allocation11]  }
 0x17e   :  { %v1508_v55 = vmax.f32 %v1504_v26, 0.0  ;;  %v1510_v49 = vmul.f32 %v1509_v62, %v1505_v3  ;;  %v1511_v7 = vmul.f32 %v1509_v62, %v1506_v5  ;;  %v1546_v32 = vstv %s3911_s24  ;;  %s1751_s24 = sshll.u32 %s2063_s23, 4  ;;  %s1752_s24 = int_to_ptr.vmem [resolvable:$true] %s1751_s24 }
 0x17f   :  { %v1524_v29 = vadd.f32 %v1523_v37, %v1519_v53  ;;  %v1525_v11 = vadd.f32 %v1523_v37, %v1520_v18  ;;  %v1526_v57 = vadd.f32 %v1523_v37, %v1521_v16  ;;  %v1527_v23 = vadd.f32 %v1523_v37, %v1522_v43  ;;  %p2032_p10 = scmp.lt.s32.totalorder %s1752_s24, %s1752_s24 }
 0x180   :  { %v1512_v33 = vmul.f32 %v1509_v62, %v1507_v24  ;;  %v1542_v39 = vmul.f32 %v3709_v48, %v1541_v14  ;;  %v1543_v30 = vmul.f32 %v3712_v61, %v1541_v14  ;;  %v1544_v42 = vmul.f32 %v3680_v22, %v1541_v14 }
 0x181   :  { %v1528_v47 = vmax.f32 %v1524_v29, 0.0  ;;  %v1529_v19 = vmax.f32 %v1525_v11, 0.0  ;;  %v1530_v54 = vmax.f32 %v1526_v57, 0.0  ;;  %v1545_v59 = vmul.f32 %v3683_v38, %v1541_v14 }
 0x182   :  { %v1513_v35 = vmul.f32 %v1509_v62, %v1508_v55  ;;  %v1531_v58 = vmax.f32 %v1527_v23, 0.0  ;;  %v1532_v60 = vstv %s3927_s25  ;;  %v1547_v31 = vadd.f32 %v1546_v32, %v1542_v39  ;;  %s2027_s25 = scalar_lea.vmem %s1752_s24, 512 }
 0x183   :  { %v3959_v1 = vadd.f32 %v1488_v41, %v3859_v44  ;;  %v3962_v45 = vadd.f32 %v1489_v36, %v3862_v6  ;;  %v1548_v40 = vadd.f32 %v1546_v32, %v1543_v30  ;;  %v1549_v25 = vadd.f32 %v1546_v32, %v1544_v42  ;;  %p2028_p9 = scmp.ne.s32.totalorder %s1752_s24, %s2027_s25  ;;  %p2033_p11 = scmp.lt.s32.totalorder %s2027_s25, %s2027_s25 }
 0x184   :  { %v3967_v51 = vadd.f32 %v1490_v27, %v3867_v0  ;;  %v3970_v8 = vadd.f32 %v1510_v49, %v3870_v12  ;;  %v3973_v9 = vadd.f32 %v1511_v7, %v3873_v34  ;;  %v3976_v44 = vadd.f32 %v1512_v33, %v3876_v17 }
 0x185   :  { %v1533_v6 = vmul.f32 %v1532_v60, %v1528_v47  ;;  %v1534_v52 = vmul.f32 %v1532_v60, %v1529_v19  ;;  %v1535_v56 = vmul.f32 %v1532_v60, %v1530_v54  ;;  %v1550_v13 = vadd.f32 %v1546_v32, %v1545_v59  ;;  %p2034_p12 = por %p2033_p11, %p2032_p10 }
 0x186   :  { %v3981_v26 = vadd.f32 %v1513_v35, %v3881_v63  ;;  %v1536_v0 = vmul.f32 %v1532_v60, %v1531_v58  ;;  %v1551_v3 = vmax.f32 %v1547_v31, 0.0  ;;  %v1564_v5 = vstv %s3942_s26 }
 0x187   :  { %v1552_v12 = vmax.f32 %v1548_v40, 0.0  ;;  %v1553_v62 = vmax.f32 %v1549_v25, 0.0  ;;  %v1555_v53 = vstv %s3947_s28  ;;  %v1569_v34 = vstv %s3945_s27  ;;  %p2035_p13 = pnand %p2034_p12, %p2028_p9 }
 0x188   :  { %v1565_v17 = vmul.f32 %v3709_v48, %v1564_v5  ;;  %v1566_v18 = vmul.f32 %v3712_v61, %v1564_v5  ;;  %v1567_v16 = vmul.f32 %v3680_v22, %v1564_v5  ;;  %v1568_v43 = vmul.f32 %v3683_v38, %v1564_v5 }
 0x189   :  { %v3993_v63 = vadd.f32 %v1533_v6, %v3893_v2  ;;  %v3996_v41 = vadd.f32 %v1534_v52, %v3896_v20  ;;  %v3999_v36 = vadd.f32 %v1535_v56, %v3899_v15  ;;  %v1554_v24 = vmax.f32 %v1550_v13, 0.0 }
 0x18a   :  { %v4002_v27 = vadd.f32 %v1536_v0, %v3902_v28  ;;  %v1556_v37 = vmul.f32 %v1555_v53, %v1551_v3  ;;  %v1570_v14 = vadd.f32 %v1569_v34, %v1565_v17  ;;  %v1571_v55 = vadd.f32 %v1569_v34, %v1566_v18 }
 0x18b   :  { %v1557_v49 = vmul.f32 %v1555_v53, %v1552_v12  ;;  %v1572_v7 = vadd.f32 %v1569_v34, %v1567_v16  ;;  %v1578_v32 = vstv %s3956_s29  ;;  %v1587_v2 = vstv %s3954_s2 }
 0x18c   :  { %v1558_v20 = vmul.f32 %v1555_v53, %v1553_v62  ;;  %v1573_v29 = vadd.f32 %v1569_v34, %v1568_v43  ;;  %v1574_v15 = vmax.f32 %v1570_v14, 0.0  ;;  %v1592_v11 = vstv %s3964_s30 }
 0x18d   :  { %v1588_v28 = vmul.f32 %v3709_v48, %v1587_v2  ;;  %v1589_v57 = vmul.f32 %v3712_v61, %v1587_v2  ;;  %v1590_v23 = vmul.f32 %v3680_v22, %v1587_v2  ;;  %v1591_v33 = vmul.f32 %v3683_v38, %v1587_v2 }
 0x18e   :  { %v1559_v39 = vmul.f32 %v1555_v53, %v1554_v24  ;;  %v4018_v30 = vadd.f32 %v1556_v37, %v3918_v50  ;;  %v1575_v42 = vmax.f32 %v1571_v55, 0.0  ;;  %v1610_v47 = vstv %s3978_s6 }
 0x18f   :  { %v1576_v19 = vmax.f32 %v1572_v7, 0.0  ;;  %v1593_v54 = vadd.f32 %v1592_v11, %v1588_v28  ;;  %v1594_v59 = vadd.f32 %v1592_v11, %v1589_v57  ;;  %v1595_v35 = vadd.f32 %v1592_v11, %v1590_v23 }
 0x190   :  { %v4022_v58 = vadd.f32 %v1557_v49, %v3922_v21  ;;  %v4025_v60 = vadd.f32 %v1558_v20, %v3925_v4  ;;  %v1577_v31 = vmax.f32 %v1573_v29, 0.0  ;;  %v1579_v40 = vmul.f32 %v1578_v32, %v1574_v15 }
 0x191   :  { %v1596_v50 = vadd.f32 %v1592_v11, %v1591_v33  ;;  %v1597_v25 = vmax.f32 %v1593_v54, 0.0  ;;  %v1598_v6 = vmax.f32 %v1594_v59, 0.0  ;;  %v1601_v52 = vstv %s3990_s9 }
 0x192   :  { %v1611_v56 = vmul.f32 %v3709_v48, %v1610_v47  ;;  %v1612_v13 = vmul.f32 %v3712_v61, %v1610_v47  ;;  %v1613_v21 = vmul.f32 %v3680_v22, %v1610_v47  ;;  %v1614_v4 = vmul.f32 %v3683_v38, %v1610_v47 }
 0x193   :  { %v4035_v0 = vadd.f32 %v1559_v39, %v3935_v10  ;;  %v1580_v3 = vmul.f32 %v1578_v32, %v1575_v42  ;;  %v1581_v5 = vmul.f32 %v1578_v32, %v1576_v19  ;;  %v1599_v12 = vmax.f32 %v1595_v35, 0.0 }
 0x194   :  { %v1582_v62 = vmul.f32 %v1578_v32, %v1577_v31  ;;  %v4038_v53 = vadd.f32 %v1579_v40, %v3938_v46  ;;  %v1615_v34 = vstv %s4008_s11  ;;  %v1633_v17 = vstv %s4006_s10 }
 0x195   :  { %v1600_v18 = vmax.f32 %v1596_v50, 0.0  ;;  %v1602_v16 = vmul.f32 %v1601_v52, %v1597_v25  ;;  %v1603_v43 = vmul.f32 %v1601_v52, %v1598_v6  ;;  %v1638_v24 = vstv %s4011_s12 }
 0x196   :  { %v1616_v10 = vadd.f32 %v1615_v34, %v1611_v56  ;;  %v1617_v37 = vadd.f32 %v1615_v34, %v1612_v13  ;;  %v1618_v14 = vadd.f32 %v1615_v34, %v1613_v21  ;;  %v1619_v55 = vadd.f32 %v1615_v34, %v1614_v4 }
 0x197   :  { %v1604_v49 = vmul.f32 %v1601_v52, %v1599_v12  ;;  %v1634_v46 = vmul.f32 %v3709_v48, %v1633_v17  ;;  %v1635_v7 = vmul.f32 %v3712_v61, %v1633_v17  ;;  %v1636_v32 = vmul.f32 %v3680_v22, %v1633_v17 }
 0x198   :  { %v1620_v2 = vmax.f32 %v1616_v10, 0.0  ;;  %v1621_v20 = vmax.f32 %v1617_v37, 0.0  ;;  %v1622_v29 = vmax.f32 %v1618_v14, 0.0  ;;  %v1637_v15 = vmul.f32 %v3683_v38, %v1633_v17 }
 0x199   :  { %v1605_v11 = vmul.f32 %v1601_v52, %v1600_v18  ;;  %v1623_v28 = vmax.f32 %v1619_v55, 0.0  ;;  %v1624_v57 = vstv %s4027_s13  ;;  %v1639_v23 = vadd.f32 %v1638_v24, %v1634_v46 }
 0x19a   :  { %v4059_v33 = vadd.f32 %v1580_v3, %v3959_v1  ;;  %v4062_v39 = vadd.f32 %v1581_v5, %v3962_v45  ;;  %v1640_v42 = vadd.f32 %v1638_v24, %v1635_v7  ;;  %v1641_v47 = vadd.f32 %v1638_v24, %v1636_v32 }
 0x19b   :  { %v4067_v19 = vadd.f32 %v1582_v62, %v3967_v51  ;;  %v4070_v54 = vadd.f32 %v1602_v16, %v3970_v8  ;;  %v4073_v59 = vadd.f32 %v1603_v43, %v3973_v9  ;;  %v4076_v1 = vadd.f32 %v1604_v49, %v3976_v44 }
 0x19c   :  { %v1625_v45 = vmul.f32 %v1624_v57, %v1620_v2  ;;  %v1626_v35 = vmul.f32 %v1624_v57, %v1621_v20  ;;  %v1627_v31 = vmul.f32 %v1624_v57, %v1622_v29  ;;  %v1642_v40 = vadd.f32 %v1638_v24, %v1637_v15 }
 0x19d   :  { %v4081_v50 = vadd.f32 %v1605_v11, %v3981_v26  ;;  %v1628_v51 = vmul.f32 %v1624_v57, %v1623_v28  ;;  %v1643_v25 = vmax.f32 %v1639_v23, 0.0  ;;  %v1656_v6 = vstv %s4042_s14 }
 0x19e   :  { %v1644_v8 = vmax.f32 %v1640_v42, 0.0  ;;  %v1645_v52 = vmax.f32 %v1641_v47, 0.0  ;;  %v1647_v56 = vstv %s4047_s16  ;;  %v1661_v9 = vstv %s4045_s15 }
 0x19f   :  { %v1657_v44 = vmul.f32 %v3709_v48, %v1656_v6  ;;  %v1658_v13 = vmul.f32 %v3712_v61, %v1656_v6  ;;  %v1659_v21 = vmul.f32 %v3680_v22, %v1656_v6  ;;  %v1660_v26 = vmul.f32 %v3683_v38, %v1656_v6 }
 0x1a0   :  { %v4093_v4 = vadd.f32 %v1625_v45, %v3993_v63  ;;  %v4096_v3 = vadd.f32 %v1626_v35, %v3996_v41  ;;  %v4099_v5 = vadd.f32 %v1627_v31, %v3999_v36  ;;  %v1646_v12 = vmax.f32 %v1642_v40, 0.0 }
 0x1a1   :  { %v1662_v62 = vadd.f32 %v1661_v9, %v1657_v44  ;;  %v1663_v34 = vadd.f32 %v1661_v9, %v1658_v13  ;;  %v1664_v17 = vadd.f32 %v1661_v9, %v1659_v21  ;;  %v1665_v18 = vadd.f32 %v1661_v9, %v1660_v26 }
 0x1a2   :  { %v4102_v16 = vadd.f32 %v1628_v51, %v4002_v27  ;;  %v1648_v43 = vmul.f32 %v1647_v56, %v1643_v25  ;;  %v1670_v24 = vstv %s4056_s18  ;;  %v1679_v63 = vstv %s4054_s17 }
 0x1a3   :  { %v1649_v10 = vmul.f32 %v1647_v56, %v1644_v8  ;;  %v1650_v41 = vmul.f32 %v1647_v56, %v1645_v52  ;;  %v1666_v37 = vmax.f32 %v1662_v62, 0.0  ;;  %v1684_v14 = vstv %s4064_s0 }
 0x1a4   :  { %v1680_v36 = vmul.f32 %v3709_v48, %v1679_v63  ;;  %v1681_v55 = vmul.f32 %v3712_v61, %v1679_v63  ;;  %v1682_v49 = vmul.f32 %v3680_v22, %v1679_v63  ;;  %v1683_v27 = vmul.f32 %v3683_v38, %v1679_v63 }
 0x1a5   :  { %v1667_v46 = vmax.f32 %v1663_v34, 0.0  ;;  %v1668_v7 = vmax.f32 %v1664_v17, 0.0  ;;  %v1669_v32 = vmax.f32 %v1665_v18, 0.0  ;;  %v1702_v2 = vstv %s4078_s1 }
 0x1a6   :  { %v1685_v20 = vadd.f32 %v1684_v14, %v1680_v36  ;;  %v1686_v29 = vadd.f32 %v1684_v14, %v1681_v55  ;;  %v1687_v15 = vadd.f32 %v1684_v14, %v1682_v49  ;;  %v1688_v11 = vadd.f32 %v1684_v14, %v1683_v27 }
 0x1a7   :  { %v1651_v28 = vmul.f32 %v1647_v56, %v1646_v12  ;;  %v1652_v57 = vadd.f32 %v1648_v43, %v4018_v30  ;;  %v1671_v23 = vmul.f32 %v1670_v24, %v1666_v37  ;;  %v1693_v42 = vstv %s4086_s3 }
 0x1a8   :  { %v1689_v47 = vmax.f32 %v1685_v20, 0.0  ;;  %v1690_v45 = vmax.f32 %v1686_v29, 0.0  ;;  %v1691_v35 = vmax.f32 %v1687_v15, 0.0  ;;  %v1692_v31 = vmax.f32 %v1688_v11, 0.0 }
 0x1a9   :  { %v1703_v40 = vmul.f32 %v3709_v48, %v1702_v2  ;;  %v1704_v51 = vmul.f32 %v3712_v61, %v1702_v2  ;;  %v1705_v25 = vmul.f32 %v3680_v22, %v1702_v2  ;;  %v1706_v6 = vmul.f32 %v3683_v38, %v1702_v2 }
 0x1aa   :  { %v1653_v8 = vadd.f32 %v1649_v10, %v4022_v58  ;;  %v1672_v52 = vmul.f32 %v1670_v24, %v1667_v46  ;;  %v1673_v56 = vmul.f32 %v1670_v24, %v1668_v7  ;;  %v1674_v30 = vmul.f32 %v1670_v24, %v1669_v32 }
 0x1ab   :  { %v1654_v9 = vadd.f32 %v1650_v41, %v4025_v60  ;;  %v1655_v44 = vadd.f32 %v1651_v28, %v4035_v0  ;;  %v1675_v13 = vadd.f32 %v1671_v23, %v4038_v53  ;;  %v1707_v21 = vstv %s4106_s19 }
 0x1ac   :  { %v1694_v48 = vmul.f32 %v1693_v42, %v1689_v47  ;;  %v1695_v26 = vmul.f32 %v1693_v42, %v1690_v45  ;;  %v1696_v61 = vmul.f32 %v1693_v42, %v1691_v35  ;;  %v1697_v12 = vmul.f32 %v1693_v42, %v1692_v31 }
 0x1ad   :  { %v1708_v22 = vadd.f32 %v1707_v21, %v1703_v40  ;;  %v1709_v62 = vadd.f32 %v1707_v21, %v1704_v51  ;;  %v1710_v38 = vadd.f32 %v1707_v21, %v1705_v25  ;;  %v1711_v34 = vadd.f32 %v1707_v21, %v1706_v6 }
 0x1ae   :  { %v1676_v58 = vadd.f32 %v1672_v52, %v4059_v33  ;;  %v1677_v17 = vadd.f32 %v1673_v56, %v4062_v39  ;;  %v1678_v18 = vadd.f32 %v1674_v30, %v4067_v19  ;;  %v1716_v60 = vstv %s4114_s20 }
 0x1af   :  { %v1712_v43 = vmax.f32 %v1708_v22, 0.0  ;;  %v1713_v0 = vmax.f32 %v1709_v62, 0.0  ;;  %v1714_v24 = vmax.f32 %v1710_v38, 0.0  ;;  %v1715_v53 = vmax.f32 %v1711_v34, 0.0 }
 0x1b0   :  { %v1698_v63 = vadd.f32 %v1694_v48, %v4070_v54  ;;  %v1699_v10 = vadd.f32 %v1695_v26, %v4073_v59  ;;  %v1700_v41 = vadd.f32 %v1696_v61, %v4076_v1  ;;  %v1701_v37 = vadd.f32 %v1697_v12, %v4081_v50 }
 0x1b1   :  { %v1717_v14 = vmul.f32 %v1716_v60, %v1712_v43  ;;  %v1718_v36 = vmul.f32 %v1716_v60, %v1713_v0  ;;  %v1719_v33 = vmul.f32 %v1716_v60, %v1714_v24  ;;  %v1720_v55 = vmul.f32 %v1716_v60, %v1715_v53 }
 0x1b2   :  { %v1725_v39 = vadd.f32 %v1675_v13, %v1652_v57  ;;  %v1726_v49 = vadd.f32 %v1676_v58, %v1653_v8  ;;  %v1727_v19 = vadd.f32 %v1677_v17, %v1654_v9  ;;  %v1728_v27 = vadd.f32 %v1678_v18, %v1655_v44 }
 0x1b3   :  { %v1721_v46 = vadd.f32 %v1717_v14, %v4093_v4  ;;  %v1722_v7 = vadd.f32 %v1718_v36, %v4096_v3  ;;  %v1723_v54 = vadd.f32 %v1719_v33, %v4099_v5  ;;  %v1724_v59 = vadd.f32 %v1720_v55, %v4102_v16 }
 0x1b4   :  { %v1737_v20 = vstv %s4161_s4 }
 0x1b5   :  { %v1729_v32 = vadd.f32 %v1721_v46, %v1698_v63  ;;  %v1730_v1 = vadd.f32 %v1722_v7, %v1699_v10  ;;  %v1731_v2 = vadd.f32 %v1723_v54, %v1700_v41  ;;  %v1732_v50 = vadd.f32 %v1724_v59, %v1701_v37 }
 0x1b7   :  { %v1733_v29 = vadd.f32 %v1729_v32, %v1725_v39  ;;  %v1734_v15 = vadd.f32 %v1730_v1, %v1726_v49  ;;  %v1735_v11 = vadd.f32 %v1731_v2, %v1727_v19  ;;  %v1736_v4 = vadd.f32 %v1732_v50, %v1728_v27 }
 0x1b9   :  { %v1738_v28 = vadd.f32 %v1737_v20, %v1733_v29  ;;  %v1739_v3 = vadd.f32 %v1737_v20, %v1734_v15  ;;  %v1740_v57 = vadd.f32 %v1737_v20, %v1735_v11  ;;  %v1741_v5 = vadd.f32 %v1737_v20, %v1736_v4 }
 0x1bb   :  { %1742 = vst [vmem:[#allocation11] sm:$0xff] %v1738_v28  ;;  %1743 = vst [vmem:[#allocation11 + $0x8] sm:$0xff] %v1739_v3 }
 0x1bc   :  { %1744 = vst [vmem:[#allocation11 + $0x10] sm:$0xff] %v1740_v57  ;;  %1745 = vst [vmem:[#allocation11 + $0x18] sm:$0xff] %v1741_v5 }
 0x1bd   :  { %2038 = shalt.err (!%p2035_p13)
}
 0x1be   :  { %s2039_s27 = scalar_lea.hbm %s4162_s5, 512 }
 0x1bf   :  { %p2040_p0 = scmp.ne.s32.totalorder %s4162_s5, %s2039_s27  ;;  %p2043_p1 = scmp.lt.u32.totalorder %s2039_s27, %s4162_s5 }
 0x1c1   :  { %p2045_p2 = pnand %p2043_p1, %p2040_p0 }
 0x1c3   :  { %2048 = shalt.err (!%p2045_p2)
}
 0x1c4   :  { %1757 = dma.vmem_to_hbm [thread:$0]  %s1752_s24, 512, %s4162_s5, [#allocation5], %s2059_s7, %s2059_s7, %s2060_s8  }
 0x1c5   :  { %2055 = dma.done.wait [#allocation5], 512  }
 0x1c6   :  { %2056 = vsyncadd [#allocation5], 4294966784 }
 0x1c7   :  { %1761 = vsyncpa [#allocation4], 1 }
 0x1c8   :  { %1762 = vsyncpa [#allocation5], 1 }
 0x1c9   :  { %1763 = vsyncpa [#allocation6], 1 }
 0x1ca   :  { %1764 = vsyncpa [#allocation9], 1 }

</bundles_post_ra>
